<compile_context>
chip_gen: v7x
topology: tpu7x:2x2x1
jax: 0.10.0
libtpu: 0.0.40
codegen_flags: <defaults>
</compile_context>

<pallas_src>
import functools

import jax
import jax.numpy as jnp
from jax.experimental import pallas as pl
from jax.experimental.pallas import tpu as pltpu

# ----------------------------------------------------------------------------
# Model configuration (synthetic, deterministic)
# ----------------------------------------------------------------------------
NUM_LAYERS = 2        # rgn.num_layers
HIDDEN = 32           # rgn.rgn_hidden_dim
GLOBAL = 16           # rgn.rgn_global_dim
X_DIM = 4             # node feature dim
N_NODES = 8
N_EDGES = 16
AE_HIDDEN = 32
NUM_STEPS = 3         # len(seq_graphs)
D_IN = N_NODES * (X_DIM + HIDDEN)

W_COLS = 32           # lane width of the packed weight slab
MISC_COLS = 32        # lane width of the packed bias/misc slab

_MAX_F = HIDDEN if NUM_LAYERS > 1 else X_DIM
EDGE_CAT_W = 2 * _MAX_F + HIDDEN + GLOBAL     # 112
NODE_CAT_W = _MAX_F + 2 * HIDDEN + GLOBAL     # 112
GLOB_CAT_W = 2 * HIDDEN + GLOBAL              # 80
AE_CAT_W = N_NODES * HIDDEN                   # 256

# Packing assumptions of this (synthetic) configuration.
assert HIDDEN == W_COLS and AE_HIDDEN <= W_COLS and GLOBAL <= W_COLS
assert N_NODES * X_DIM <= MISC_COLS and HIDDEN <= MISC_COLS and GLOBAL <= MISC_COLS


# ----------------------------------------------------------------------------
# Parameter init (same synthetic rgn/ae as before, concatenated weight form)
# ----------------------------------------------------------------------------
def xavier_normal(key, shape):
    fan_in, fan_out = shape[0], shape[1]
    std = jnp.sqrt(2.0 / (fan_in + fan_out))
    return std * jax.random.normal(key, shape, dtype=jnp.float32)


def init_params(key):
    params = {"rgn": [], "ae": {}}
    for l in range(NUM_LAYERS):
        node_feat = X_DIM if l == 0 else HIDDEN
        key, k1, k2, k3 = jax.random.split(key, 4)
        layer = {
            # edge update:  [src_feat, dst_feat, h_e_prev, global] -> H
            "We": xavier_normal(k1, (2 * node_feat + HIDDEN + GLOBAL, HIDDEN)),
            "be": jnp.zeros((HIDDEN,), jnp.float32),
            # node update:  [node_feat, h_v_prev, agg_edges, global] -> H
            "Wv": xavier_normal(k2, (node_feat + 2 * HIDDEN + GLOBAL, HIDDEN)),
            "bv": jnp.zeros((HIDDEN,), jnp.float32),
            # global update: [mean_v, mean_e, global] -> G
            "Wg": xavier_normal(k3, (2 * HIDDEN + GLOBAL, GLOBAL)),
            "bg": jnp.zeros((GLOBAL,), jnp.float32),
        }
        params["rgn"].append(layer)

    key, k1, k2 = jax.random.split(key, 3)
    params["ae"]["Wenc"] = xavier_normal(k1, (D_IN, AE_HIDDEN))
    params["ae"]["benc"] = jnp.zeros((AE_HIDDEN,), jnp.float32)
    params["ae"]["Wdec"] = xavier_normal(k2, (AE_HIDDEN, D_IN))
    params["ae"]["bdec"] = jnp.zeros((D_IN,), jnp.float32)

    # nn.init.xavier_normal_(torch.empty(1, rgn_global_dim)).squeeze()
    key, kg = jax.random.split(key)
    params["global_attr"] = xavier_normal(kg, (1, GLOBAL))[0]
    return params


# ----------------------------------------------------------------------------
# Host-side packing: 7 DMAs total (graph tensors + 2 slabs + decoder)
# ----------------------------------------------------------------------------
def _pad_rows(m, mult=8):
    pad = (-m.shape[0]) % mult
    return jnp.pad(m, ((0, pad), (0, 0))) if pad else m


def _pad_cols(m, width):
    pad = width - m.shape[1]
    return jnp.pad(m, ((0, 0), (0, pad))) if pad else m


def pack_kernel_args(params, seq_graphs, graph_input):
    bf16 = jnp.bfloat16
    x_seq = jnp.stack([g["x"] for g in seq_graphs], 0)               # (T,N,X) f32
    sd_seq = jnp.stack([jnp.concatenate([g["S"], g["D"]], 0)
                        for g in seq_graphs], 0).astype(bf16)        # (T,2E,N)
    dt_seq = jnp.stack([g["D"].T for g in seq_graphs], 0).astype(bf16)  # (T,N,E)

    # ---- one bf16 weight slab (all matmul RHS); rows padded to x8 so the
    # in-kernel static slices start on sublane boundaries -------------------
    w_layout, blocks, off = {}, [], 0

    def add_w(name, mat):
        nonlocal off
        mat = _pad_cols(mat, W_COLS)          # Wg: zero-pad 16 -> 32 cols
        w_layout[name] = (off, mat.shape[0])  # (offset, valid rows)
        padded = _pad_rows(mat)
        blocks.append(padded.astype(bf16))
        off += padded.shape[0]

    for l in range(NUM_LAYERS):
        p = params["rgn"][l]
        add_w(f"We{l}", p["We"])
        add_w(f"Wv{l}", p["Wv"])
        add_w(f"Wg{l}", p["Wg"])

    # AE encoder rows regrouped per node so no in-kernel reshape is needed:
    # flat @ Wenc == x_in_flat @ WencX  +  flat(final_v) @ WencV
    wenc3 = params["ae"]["Wenc"].reshape(N_NODES, X_DIM + HIDDEN, AE_HIDDEN)
    add_w("WencX", wenc3[:, :X_DIM, :].reshape(N_NODES * X_DIM, AE_HIDDEN))
    add_w("WencV", wenc3[:, X_DIM:, :].reshape(N_NODES * HIDDEN, AE_HIDDEN))
    w_slab = jnp.concatenate(blocks, 0)                              # (~816, 32)

    # ---- one f32 misc slab: biases + flattened graph_input.x + global_attr
    m_layout, rows = {}, []

    def add_m(name, vec):
        m_layout[name] = len(rows)
        rows.append(jnp.zeros((MISC_COLS,), jnp.float32).at[:vec.shape[0]].set(vec))

    for l in range(NUM_LAYERS):
        p = params["rgn"][l]
        add_m(f"be{l}", p["be"])
        add_m(f"bv{l}", p["bv"])
        add_m(f"bg{l}", p["bg"])
    add_m("benc", params["ae"]["benc"])
    add_m("x_in", graph_input["x"].reshape(-1))
    add_m("g0", params["global_attr"])
    misc = jnp.stack(rows, 0)                                        # (9, 32)

    wdec = params["ae"]["Wdec"].astype(bf16)                         # (32, 288)
    bdec = params["ae"]["bdec"].reshape(1, -1)                       # (1, 288)

    args = (x_seq, sd_seq, dt_seq, w_slab, misc, wdec, bdec)
    return args, {"w": w_layout, "m": m_layout}


# ----------------------------------------------------------------------------
# Fused Pallas kernel: whole RGN_AE forward in one launch
# ----------------------------------------------------------------------------
def rgn_ae_kernel(x_seq, sd_seq, dt_seq, w_slab, misc, wdec, bdec,
                  out_ref, g_out_ref,
                  edge_cat, node_cat, glob_cat, ae_cat,
                  *, layout, num_steps, num_layers):
    f32 = jnp.float32
    bf16 = jnp.bfloat16

    def mm(a, b):
        # bf16 MXU operands (single-pass matmul), f32 accumulation.
        return jnp.dot(a.astype(bf16), b.astype(bf16),
                       preferred_element_type=f32)

    def w(name):                       # weight slab slice at point of use
        off, rows = layout["w"][name]
        return w_slab[off:off + rows, :]

    def b(name):                       # (1, MISC_COLS) f32 bias / misc row
        r = layout["m"][name]
        return misc[r:r + 1, :]

    n_edges = edge_cat.shape[0]
    n_nodes = node_cat.shape[0]
    hidden = HIDDEN

    g0_row = layout["m"]["g0"]
    g = misc[g0_row:g0_row + 1, :GLOBAL]                         # (1, G) f32
    h_e = [jnp.zeros((n_edges, hidden), f32) for _ in range(num_layers)]
    h_v = [jnp.zeros((n_nodes, hidden), f32) for _ in range(num_layers)]

    # Fully unrolled recurrence (num_steps x num_layers are small, static).
    for step in range(num_steps):
        sd = sd_seq[step]            # (2E, N) bf16 one-hot [S; D]
        dt = dt_seq[step]            # (N, E)  bf16 one-hot D^T
        node_in = x_seq[step]        # (N, f)  f32
        for l in range(num_layers):
            f = node_in.shape[1]

            # gather src/dst endpoint features with ONE fused one-hot matmul
            sdf = mm(sd, node_in)                                # (2E, f) f32

            # edge update: stage [src, dst, h_e, g] in scratch -> ONE dot
            ew = 2 * f + hidden + GLOBAL
            edge_cat[:, 0:f] = sdf[0:n_edges, :]
            edge_cat[:, f:2 * f] = sdf[n_edges:2 * n_edges, :]
            edge_cat[:, 2 * f:2 * f + hidden] = h_e[l]
            edge_cat[:, 2 * f + hidden:ew] = jnp.broadcast_to(g, (n_edges, GLOBAL))
            e_new = jnp.tanh(mm(edge_cat[:, 0:ew], w(f"We{l}")) + b(f"be{l}"))

            # node update: scatter-add (D^T @ e), stage [x, h_v, agg, g] -> ONE dot
            agg = mm(dt, e_new)                                  # (N, H) f32
            vw = f + 2 * hidden + GLOBAL
            node_cat[:, 0:f] = node_in
            node_cat[:, f:f + hidden] = h_v[l]
            node_cat[:, f + hidden:f + 2 * hidden] = agg
            node_cat[:, f + 2 * hidden:vw] = jnp.broadcast_to(g, (n_nodes, GLOBAL))
            v_new = jnp.tanh(mm(node_cat[:, 0:vw], w(f"Wv{l}")) + b(f"bv{l}"))

            # global update: stage [mean_v, mean_e, g] -> ONE dot
            glob_cat[:, 0:hidden] = jnp.mean(v_new, axis=0, keepdims=True)
            glob_cat[:, hidden:2 * hidden] = jnp.mean(e_new, axis=0, keepdims=True)
            glob_cat[:, 2 * hidden:2 * hidden + GLOBAL] = g
            # Wg / bg are zero-padded to W_COLS columns; extra outputs are
            # tanh(0) = 0, so slicing the first GLOBAL lanes is exact.
            g_full = jnp.tanh(mm(glob_cat[...], w(f"Wg{l}")) + b(f"bg{l}"))
            g = g_full[:, :GLOBAL]

            h_e[l] = e_new
            h_v[l] = v_new
            node_in = v_new

    # ---- AE tail: flat(cat[x_in, final_v]) @ Wenc -> relu -> @ Wdec --------
    final_v = h_v[num_layers - 1]                                # (N, H) f32
    for n in range(n_nodes):                                     # lane-stage rows
        ae_cat[:, n * hidden:(n + 1) * hidden] = final_v[n:n + 1, :]
    x_in = b("x_in")[:, :N_NODES * X_DIM]                        # (1, N*X)
    h_pre = (mm(x_in, w("WencX"))
             + mm(ae_cat[...], w("WencV"))                       # ONE (1,256) dot
             + b("benc"))
    h_act = jnp.maximum(h_pre, 0.0)
    out_ref[...] = (mm(h_act, wdec[...]) + bdec[...]).astype(out_ref.dtype)
    g_out_ref[...] = g.astype(g_out_ref.dtype)


def rgn_ae_forward(params, seq_graphs, graph_input):
    """Mirrors RGN_AE.forward; returns (ae_out, global_attr)."""
    num_steps = len(seq_graphs)
    if num_steps == 0:
        # TODO(synk): num_steps == 0 path (cat_x = x only, size N*X_DIM=32) is
        # dimension-incompatible with the AE (expects 288) in the reference
        # module too; not supported by the fused kernel.
        raise NotImplementedError("num_steps == 0 not supported")

    args, layout = pack_kernel_args(params, seq_graphs, graph_input)
    vmem = pltpu.MemorySpace.VMEM
    kernel = functools.partial(rgn_ae_kernel, layout=layout,
                               num_steps=num_steps, num_layers=NUM_LAYERS)
    out, g = pl.pallas_call(
        kernel,
        out_shape=(jax.ShapeDtypeStruct((1, D_IN), jnp.float32),
                   jax.ShapeDtypeStruct((1, GLOBAL), jnp.float32)),
        in_specs=[pl.BlockSpec(memory_space=vmem) for _ in args],
        out_specs=(pl.BlockSpec(memory_space=vmem),
                   pl.BlockSpec(memory_space=vmem)),
        scratch_shapes=[
            pltpu.VMEM((N_EDGES, EDGE_CAT_W), jnp.float32),   # edge concat stage
            pltpu.VMEM((N_NODES, NODE_CAT_W), jnp.float32),   # node concat stage
            pltpu.VMEM((1, GLOB_CAT_W), jnp.float32),         # global concat stage
            pltpu.VMEM((1, AE_CAT_W), jnp.float32),           # flattened final_v
        ],
    )(*args)
    return out[0], g[0]


# ----------------------------------------------------------------------------
# Pure-JAX reference: the module's concat formulation, with the same
# bf16-at-the-MXU-boundary rounding the kernel uses (f32 accumulation,
# f32 element-wise math).  With matmul_dtype=jnp.float32 it reproduces the
# original full-f32 formulation for offline comparison.
# ----------------------------------------------------------------------------
def rgn_ae_reference(params, seq_graphs, graph_input, matmul_dtype=jnp.bfloat16):
    def dot(a, b):
        return jnp.dot(a.astype(matmul_dtype), b.astype(matmul_dtype),
                       preferred_element_type=jnp.float32)

    g = params["global_attr"]
    hidden = [(jnp.zeros((N_EDGES, HIDDEN), jnp.float32),
               jnp.zeros((N_NODES, HIDDEN), jnp.float32))
              for _ in range(NUM_LAYERS)]
    for graph in seq_graphs:
        s_mat, d_mat, x = graph["S"], graph["D"], graph["x"]
        node_in = x
        new_hidden = []
        for l in range(NUM_LAYERS):
            p = params["rgn"][l]
            h_e, h_v = hidden[l]
            src_f = dot(s_mat, node_in)
            dst_f = dot(d_mat, node_in)
            g_e = jnp.broadcast_to(g[None, :], (N_EDGES, GLOBAL))
            e_new = jnp.tanh(dot(jnp.concatenate(
                [src_f, dst_f, h_e, g_e], -1), p["We"]) + p["be"])
            agg = dot(d_mat.T, e_new)
            g_v = jnp.broadcast_to(g[None, :], (N_NODES, GLOBAL))
            v_new = jnp.tanh(dot(jnp.concatenate(
                [node_in, h_v, agg, g_v], -1), p["Wv"]) + p["bv"])
            g_in = jnp.concatenate(
                [jnp.mean(v_new, 0), jnp.mean(e_new, 0), g], -1)
            g = jnp.tanh(dot(g_in, p["Wg"]) + p["bg"])
            new_hidden.append((e_new, v_new))
            node_in = v_new
        hidden = new_hidden
    final_v = hidden[NUM_LAYERS - 1][1]
    flat = jnp.concatenate([graph_input["x"], final_v], -1).reshape(-1)
    h = jnp.maximum(dot(flat, params["ae"]["Wenc"]) + params["ae"]["benc"], 0.0)
    out = dot(h, params["ae"]["Wdec"]) + params["ae"]["bdec"]
    return out, g


# ----------------------------------------------------------------------------
# Driver
# ----------------------------------------------------------------------------
def make_graph(key_feat):
    src = jnp.arange(N_EDGES) % N_NODES
    dst = (jnp.arange(N_EDGES) * 3 + 1) % N_NODES
    s_mat = jax.nn.one_hot(src, N_NODES, dtype=jnp.float32)   # (E, N)
    d_mat = jax.nn.one_hot(dst, N_NODES, dtype=jnp.float32)   # (E, N)
    x = jax.random.normal(key_feat, (N_NODES, X_DIM), dtype=jnp.float32)
    return {"x": x, "S": s_mat, "D": d_mat}


if __name__ == "__main__":
    key = jax.random.PRNGKey(0)
    key, kp = jax.random.split(key)
    params = init_params(kp)

    seq_graphs = []
    for _ in range(NUM_STEPS):
        key, kf = jax.random.split(key)
        seq_graphs.append(make_graph(kf))
    key, kf = jax.random.split(key)
    graph_input = make_graph(kf)

    out, g = rgn_ae_forward(params, seq_graphs, graph_input)
    jax.block_until_ready((out, g))

    assert out.shape == (D_IN,)
    assert g.shape == (GLOBAL,)
    assert bool(jnp.all(jnp.isfinite(out))) and bool(jnp.all(jnp.isfinite(g)))

    # numerical check against the bf16-matched pure-JAX reference
    out_ref, g_ref = rgn_ae_reference(params, seq_graphs, graph_input)
    assert bool(jnp.max(jnp.abs(out - out_ref)) < 3e-2), "ae output mismatch"
    assert bool(jnp.max(jnp.abs(g - g_ref)) < 3e-2), "global_attr mismatch"

    print("KERNEL_OK")
</pallas_src>

<mosaic_0001>
module attributes {stable_mosaic.version = 11 : i64} {
  func.func @rgn_ae_kernel(%arg0: memref<3x8x4xf32, #tpu.memory_space<vmem>>, %arg1: memref<3x32x8xbf16, #tpu.memory_space<vmem>>, %arg2: memref<3x8x16xbf16, #tpu.memory_space<vmem>>, %arg3: memref<816x32xbf16, #tpu.memory_space<vmem>>, %arg4: memref<9x32xf32, #tpu.memory_space<vmem>>, %arg5: memref<32x288xbf16, #tpu.memory_space<vmem>>, %arg6: memref<1x288xf32, #tpu.memory_space<vmem>>, %arg7: memref<1x288xf32, #tpu.memory_space<vmem>>, %arg8: memref<1x16xf32, #tpu.memory_space<vmem>>, %arg9: memref<16x112xf32, #tpu.memory_space<vmem>>, %arg10: memref<8x112xf32, #tpu.memory_space<vmem>>, %arg11: memref<1x80xf32, #tpu.memory_space<vmem>>, %arg12: memref<1x256xf32, #tpu.memory_space<vmem>>) attributes {dimension_semantics = [], scalar_prefetch = 0 : i64, scratch_operands = 4 : i64, tpu.core_type = #tpu.core_type<tc>} {
    %c8 = arith.constant 8 : index
    %c0 = arith.constant 0 : index
    %0 = vector.load %arg4[%c8, %c0] : memref<9x32xf32, #tpu.memory_space<vmem>>, vector<1x16xf32>
    %cst = arith.constant 0.000000e+00 : f32
    %1 = vector.broadcast %cst : f32 to vector<16x32xf32>
    %cst_0 = arith.constant 0.000000e+00 : f32
    %2 = vector.broadcast %cst_0 : f32 to vector<16x32xf32>
    %cst_1 = arith.constant 0.000000e+00 : f32
    %3 = vector.broadcast %cst_1 : f32 to vector<8x32xf32>
    %cst_2 = arith.constant 0.000000e+00 : f32
    %4 = vector.broadcast %cst_2 : f32 to vector<8x32xf32>
    %c0_3 = arith.constant 0 : index
    %c0_4 = arith.constant 0 : index
    %c0_5 = arith.constant 0 : index
    %5 = vector.load %arg1[%c0_3, %c0_4, %c0_5] : memref<3x32x8xbf16, #tpu.memory_space<vmem>>, vector<1x32x8xbf16>
    %6 = vector.shape_cast %5 : vector<1x32x8xbf16> to vector<32x8xbf16>
    %c0_6 = arith.constant 0 : index
    %c0_7 = arith.constant 0 : index
    %c0_8 = arith.constant 0 : index
    %7 = vector.load %arg2[%c0_6, %c0_7, %c0_8] : memref<3x8x16xbf16, #tpu.memory_space<vmem>>, vector<1x8x16xbf16>
    %8 = vector.shape_cast %7 : vector<1x8x16xbf16> to vector<8x16xbf16>
    %c0_9 = arith.constant 0 : index
    %c0_10 = arith.constant 0 : index
    %c0_11 = arith.constant 0 : index
    %9 = vector.load %arg0[%c0_9, %c0_10, %c0_11] : memref<3x8x4xf32, #tpu.memory_space<vmem>>, vector<1x8x4xf32>
    %10 = vector.shape_cast %9 : vector<1x8x4xf32> to vector<8x4xf32>
    %11 = arith.truncf %10 : vector<8x4xf32> to vector<8x4xbf16>
    %cst_12 = arith.constant dense<0.000000e+00> : vector<32x4xf32>
    %12 = tpu.matmul %6, %11, %cst_12 {dimension_numbers = #tpu.dot_dimension_numbers<[1], [0], [0], [1], [0, 0, 1, 1], [], []>} : vector<32x8xbf16>, vector<8x4xbf16>, vector<32x4xf32> -> vector<32x4xf32>
    %13 = vector.extract_strided_slice %12 {offsets = [0, 0], sizes = [16, 4], strides = [1, 1]} : vector<32x4xf32> to vector<16x4xf32>
    %c0_13 = arith.constant 0 : index
    %c0_14 = arith.constant 0 : index
    %14 = vector.load %arg9[%c0_13, %c0_14] : memref<16x112xf32, #tpu.memory_space<vmem>>, vector<16x4xf32>
    tpu.vector_store %arg9[%c0_13, %c0_14], %13 {strides = array<i32>} : memref<16x112xf32, #tpu.memory_space<vmem>>, vector<16x4xf32>,
    %15 = vector.extract_strided_slice %12 {offsets = [16, 0], sizes = [16, 4], strides = [1, 1]} : vector<32x4xf32> to vector<16x4xf32>
    %c0_15 = arith.constant 0 : index
    %c4 = arith.constant 4 : index
    %16 = vector.load %arg9[%c0_15, %c4] : memref<16x112xf32, #tpu.memory_space<vmem>>, vector<16x4xf32>
    tpu.vector_store %arg9[%c0_15, %c4], %15 {strides = array<i32>} : memref<16x112xf32, #tpu.memory_space<vmem>>, vector<16x4xf32>,
    %c0_16 = arith.constant 0 : index
    %c8_17 = arith.constant 8 : index
    %17 = vector.load %arg9[%c0_16, %c8_17] : memref<16x112xf32, #tpu.memory_space<vmem>>, vector<16x32xf32>
    tpu.vector_store %arg9[%c0_16, %c8_17], %1 {strides = array<i32>} : memref<16x112xf32, #tpu.memory_space<vmem>>, vector<16x32xf32>,
    %18 = vector.shape_cast %0 : vector<1x16xf32> to vector<1x16xf32>
    %19 = vector.broadcast %18 : vector<1x16xf32> to vector<16x16xf32>
    %c0_18 = arith.constant 0 : index
    %c40 = arith.constant 40 : index
    %20 = vector.load %arg9[%c0_18, %c40] : memref<16x112xf32, #tpu.memory_space<vmem>>, vector<16x16xf32>
    tpu.vector_store %arg9[%c0_18, %c40], %19 {strides = array<i32>} : memref<16x112xf32, #tpu.memory_space<vmem>>, vector<16x16xf32>,
    %c0_19 = arith.constant 0 : index
    %c0_20 = arith.constant 0 : index
    %21 = vector.load %arg9[%c0_19, %c0_20] : memref<16x112xf32, #tpu.memory_space<vmem>>, vector<16x56xf32>
    %c0_21 = arith.constant 0 : index
    %c0_22 = arith.constant 0 : index
    %22 = vector.load %arg3[%c0_21, %c0_22] : memref<816x32xbf16, #tpu.memory_space<vmem>>, vector<56x32xbf16>
    %23 = arith.truncf %21 : vector<16x56xf32> to vector<16x56xbf16>
    %cst_23 = arith.constant dense<0.000000e+00> : vector<16x32xf32>
    %24 = tpu.matmul %23, %22, %cst_23 {dimension_numbers = #tpu.dot_dimension_numbers<[1], [0], [0], [1], [0, 0, 1, 1], [], []>} : vector<16x56xbf16>, vector<56x32xbf16>, vector<16x32xf32> -> vector<16x32xf32>
    %c0_24 = arith.constant 0 : index
    %c0_25 = arith.constant 0 : index
    %25 = vector.load %arg4[%c0_24, %c0_25] : memref<9x32xf32, #tpu.memory_space<vmem>>, vector<1x32xf32>
    %26 = vector.broadcast %25 : vector<1x32xf32> to vector<16x32xf32>
    %27 = arith.addf %24, %26 : vector<16x32xf32>
    %28 = math.tanh %27 : vector<16x32xf32>
    %29 = arith.truncf %28 : vector<16x32xf32> to vector<16x32xbf16>
    %cst_26 = arith.constant dense<0.000000e+00> : vector<8x32xf32>
    %30 = tpu.matmul %8, %29, %cst_26 {dimension_numbers = #tpu.dot_dimension_numbers<[1], [0], [0], [1], [0, 0, 1, 1], [], []>} : vector<8x16xbf16>, vector<16x32xbf16>, vector<8x32xf32> -> vector<8x32xf32>
    %c0_27 = arith.constant 0 : index
    %c0_28 = arith.constant 0 : index
    %31 = vector.load %arg10[%c0_27, %c0_28] : memref<8x112xf32, #tpu.memory_space<vmem>>, vector<8x4xf32>
    tpu.vector_store %arg10[%c0_27, %c0_28], %10 {strides = array<i32>} : memref<8x112xf32, #tpu.memory_space<vmem>>, vector<8x4xf32>,
    %c0_29 = arith.constant 0 : index
    %c4_30 = arith.constant 4 : index
    %32 = vector.load %arg10[%c0_29, %c4_30] : memref<8x112xf32, #tpu.memory_space<vmem>>, vector<8x32xf32>
    tpu.vector_store %arg10[%c0_29, %c4_30], %3 {strides = array<i32>} : memref<8x112xf32, #tpu.memory_space<vmem>>, vector<8x32xf32>,
    %c0_31 = arith.constant 0 : index
    %c36 = arith.constant 36 : index
    %33 = vector.load %arg10[%c0_31, %c36] : memref<8x112xf32, #tpu.memory_space<vmem>>, vector<8x32xf32>
    tpu.vector_store %arg10[%c0_31, %c36], %30 {strides = array<i32>} : memref<8x112xf32, #tpu.memory_space<vmem>>, vector<8x32xf32>,
    %34 = vector.shape_cast %0 : vector<1x16xf32> to vector<1x16xf32>
    %35 = vector.broadcast %34 : vector<1x16xf32> to vector<8x16xf32>
    %c0_32 = arith.constant 0 : index
    %c68 = arith.constant 68 : index
    %36 = vector.load %arg10[%c0_32, %c68] : memref<8x112xf32, #tpu.memory_space<vmem>>, vector<8x16xf32>
    tpu.vector_store %arg10[%c0_32, %c68], %35 {strides = array<i32>} : memref<8x112xf32, #tpu.memory_space<vmem>>, vector<8x16xf32>,
    %c0_33 = arith.constant 0 : index
    %c0_34 = arith.constant 0 : index
    %37 = vector.load %arg10[%c0_33, %c0_34] : memref<8x112xf32, #tpu.memory_space<vmem>>, vector<8x84xf32>
    %c56 = arith.constant 56 : index
    %c0_35 = arith.constant 0 : index
    %38 = vector.load %arg3[%c56, %c0_35] : memref<816x32xbf16, #tpu.memory_space<vmem>>, vector<84x32xbf16>
    %39 = arith.truncf %37 : vector<8x84xf32> to vector<8x84xbf16>
    %cst_36 = arith.constant dense<0.000000e+00> : vector<8x32xf32>
    %40 = tpu.matmul %39, %38, %cst_36 {dimension_numbers = #tpu.dot_dimension_numbers<[1], [0], [0], [1], [0, 0, 1, 1], [], []>} : vector<8x84xbf16>, vector<84x32xbf16>, vector<8x32xf32> -> vector<8x32xf32>
    %c1 = arith.constant 1 : index
    %c0_37 = arith.constant 0 : index
    %41 = vector.load %arg4[%c1, %c0_37] : memref<9x32xf32, #tpu.memory_space<vmem>>, vector<1x32xf32>
    %42 = vector.broadcast %41 : vector<1x32xf32> to vector<8x32xf32>
    %43 = arith.addf %40, %42 : vector<8x32xf32>
    %44 = math.tanh %43 : vector<8x32xf32>
    %cst_38 = arith.constant dense<0.000000e+00> : vector<32xf32>
    %45 = vector.multi_reduction <add>, %44, %cst_38 [0] : vector<8x32xf32> to vector<32xf32>
    %46 = vector.shape_cast %45 : vector<32xf32> to vector<1x32xf32>
    %cst_39 = arith.constant 8.000000e+00 : f32
    %47 = vector.broadcast %cst_39 : f32 to vector<1x32xf32>
    %48 = arith.divf %46, %47 : vector<1x32xf32>
    %c0_40 = arith.constant 0 : index
    %c0_41 = arith.constant 0 : index
    %49 = vector.load %arg11[%c0_40, %c0_41] : memref<1x80xf32, #tpu.memory_space<vmem>>, vector<1x32xf32>
    tpu.vector_store %arg11[%c0_40, %c0_41], %48 {strides = array<i32>} : memref<1x80xf32, #tpu.memory_space<vmem>>, vector<1x32xf32>,
    %cst_42 = arith.constant dense<0.000000e+00> : vector<32xf32>
    %50 = vector.multi_reduction <add>, %28, %cst_42 [0] : vector<16x32xf32> to vector<32xf32>
    %51 = vector.shape_cast %50 : vector<32xf32> to vector<1x32xf32>
    %cst_43 = arith.constant 1.600000e+01 : f32
    %52 = vector.broadcast %cst_43 : f32 to vector<1x32xf32>
    %53 = arith.divf %51, %52 : vector<1x32xf32>
    %c0_44 = arith.constant 0 : index
    %c32 = arith.constant 32 : index
    %54 = vector.load %arg11[%c0_44, %c32] : memref<1x80xf32, #tpu.memory_space<vmem>>, vector<1x32xf32>
    tpu.vector_store %arg11[%c0_44, %c32], %53 {strides = array<i32>} : memref<1x80xf32, #tpu.memory_space<vmem>>, vector<1x32xf32>,
    %c0_45 = arith.constant 0 : index
    %c64 = arith.constant 64 : index
    %55 = vector.load %arg11[%c0_45, %c64] : memref<1x80xf32, #tpu.memory_space<vmem>>, vector<1x16xf32>
    tpu.vector_store %arg11[%c0_45, %c64], %0 {strides = array<i32>} : memref<1x80xf32, #tpu.memory_space<vmem>>, vector<1x16xf32>,
    %c0_46 = arith.constant 0 : index
    %c0_47 = arith.constant 0 : index
    %56 = vector.load %arg11[%c0_46, %c0_47] : memref<1x80xf32, #tpu.memory_space<vmem>>, vector<1x80xf32>
    %c144 = arith.constant 144 : index
    %c0_48 = arith.constant 0 : index
    %57 = vector.load %arg3[%c144, %c0_48] : memref<816x32xbf16, #tpu.memory_space<vmem>>, vector<80x32xbf16>
    %58 = arith.truncf %56 : vector<1x80xf32> to vector<1x80xbf16>
    %cst_49 = arith.constant dense<0.000000e+00> : vector<1x32xf32>
    %59 = tpu.matmul %58, %57, %cst_49 {dimension_numbers = #tpu.dot_dimension_numbers<[1], [0], [0], [1], [0, 0, 1, 1], [], []>} : vector<1x80xbf16>, vector<80x32xbf16>, vector<1x32xf32> -> vector<1x32xf32>
    %c2 = arith.constant 2 : index
    %c0_50 = arith.constant 0 : index
    %60 = vector.load %arg4[%c2, %c0_50] : memref<9x32xf32, #tpu.memory_space<vmem>>, vector<1x32xf32>
    %61 = arith.addf %59, %60 : vector<1x32xf32>
    %62 = math.tanh %61 : vector<1x32xf32>
    %63 = vector.extract_strided_slice %62 {offsets = [0, 0], sizes = [1, 16], strides = [1, 1]} : vector<1x32xf32> to vector<1x16xf32>
    %64 = arith.truncf %44 : vector<8x32xf32> to vector<8x32xbf16>
    %cst_51 = arith.constant dense<0.000000e+00> : vector<32x32xf32>
    %65 = tpu.matmul %6, %64, %cst_51 {dimension_numbers = #tpu.dot_dimension_numbers<[1], [0], [0], [1], [0, 0, 1, 1], [], []>} : vector<32x8xbf16>, vector<8x32xbf16>, vector<32x32xf32> -> vector<32x32xf32>
    %66 = vector.extract_strided_slice %65 {offsets = [0, 0], sizes = [16, 32], strides = [1, 1]} : vector<32x32xf32> to vector<16x32xf32>
    %c0_52 = arith.constant 0 : index
    %c0_53 = arith.constant 0 : index
    %67 = vector.load %arg9[%c0_52, %c0_53] : memref<16x112xf32, #tpu.memory_space<vmem>>, vector<16x32xf32>
    tpu.vector_store %arg9[%c0_52, %c0_53], %66 {strides = array<i32>} : memref<16x112xf32, #tpu.memory_space<vmem>>, vector<16x32xf32>,
    %68 = vector.extract_strided_slice %65 {offsets = [16, 0], sizes = [16, 32], strides = [1, 1]} : vector<32x32xf32> to vector<16x32xf32>
    %c0_54 = arith.constant 0 : index
    %c32_55 = arith.constant 32 : index
    %69 = vector.load %arg9[%c0_54, %c32_55] : memref<16x112xf32, #tpu.memory_space<vmem>>, vector<16x32xf32>
    tpu.vector_store %arg9[%c0_54, %c32_55], %68 {strides = array<i32>} : memref<16x112xf32, #tpu.memory_space<vmem>>, vector<16x32xf32>,
    %c0_56 = arith.constant 0 : index
    %c64_57 = arith.constant 64 : index
    %70 = vector.load %arg9[%c0_56, %c64_57] : memref<16x112xf32, #tpu.memory_space<vmem>>, vector<16x32xf32>
    tpu.vector_store %arg9[%c0_56, %c64_57], %2 {strides = array<i32>} : memref<16x112xf32, #tpu.memory_space<vmem>>, vector<16x32xf32>,
    %71 = vector.shape_cast %63 : vector<1x16xf32> to vector<1x16xf32>
    %72 = vector.broadcast %71 : vector<1x16xf32> to vector<16x16xf32>
    %c0_58 = arith.constant 0 : index
    %c96 = arith.constant 96 : index
    %73 = vector.load %arg9[%c0_58, %c96] : memref<16x112xf32, #tpu.memory_space<vmem>>, vector<16x16xf32>
    tpu.vector_store %arg9[%c0_58, %c96], %72 {strides = array<i32>} : memref<16x112xf32, #tpu.memory_space<vmem>>, vector<16x16xf32>,
    %c0_59 = arith.constant 0 : index
    %c0_60 = arith.constant 0 : index
    %74 = vector.load %arg9[%c0_59, %c0_60] : memref<16x112xf32, #tpu.memory_space<vmem>>, vector<16x112xf32>
    %c224 = arith.constant 224 : index
    %c0_61 = arith.constant 0 : index
    %75 = vector.load %arg3[%c224, %c0_61] : memref<816x32xbf16, #tpu.memory_space<vmem>>, vector<112x32xbf16>
    %76 = arith.truncf %74 : vector<16x112xf32> to vector<16x112xbf16>
    %cst_62 = arith.constant dense<0.000000e+00> : vector<16x32xf32>
    %77 = tpu.matmul %76, %75, %cst_62 {dimension_numbers = #tpu.dot_dimension_numbers<[1], [0], [0], [1], [0, 0, 1, 1], [], []>} : vector<16x112xbf16>, vector<112x32xbf16>, vector<16x32xf32> -> vector<16x32xf32>
    %c3 = arith.constant 3 : index
    %c0_63 = arith.constant 0 : index
    %78 = vector.load %arg4[%c3, %c0_63] : memref<9x32xf32, #tpu.memory_space<vmem>>, vector<1x32xf32>
    %79 = vector.broadcast %78 : vector<1x32xf32> to vector<16x32xf32>
    %80 = arith.addf %77, %79 : vector<16x32xf32>
    %81 = math.tanh %80 : vector<16x32xf32>
    %82 = arith.truncf %81 : vector<16x32xf32> to vector<16x32xbf16>
    %cst_64 = arith.constant dense<0.000000e+00> : vector<8x32xf32>
    %83 = tpu.matmul %8, %82, %cst_64 {dimension_numbers = #tpu.dot_dimension_numbers<[1], [0], [0], [1], [0, 0, 1, 1], [], []>} : vector<8x16xbf16>, vector<16x32xbf16>, vector<8x32xf32> -> vector<8x32xf32>
    %c0_65 = arith.constant 0 : index
    %c0_66 = arith.constant 0 : index
    %84 = vector.load %arg10[%c0_65, %c0_66] : memref<8x112xf32, #tpu.memory_space<vmem>>, vector<8x32xf32>
    tpu.vector_store %arg10[%c0_65, %c0_66], %44 {strides = array<i32>} : memref<8x112xf32, #tpu.memory_space<vmem>>, vector<8x32xf32>,
    %c0_67 = arith.constant 0 : index
    %c32_68 = arith.constant 32 : index
    %85 = vector.load %arg10[%c0_67, %c32_68] : memref<8x112xf32, #tpu.memory_space<vmem>>, vector<8x32xf32>
    tpu.vector_store %arg10[%c0_67, %c32_68], %4 {strides = array<i32>} : memref<8x112xf32, #tpu.memory_space<vmem>>, vector<8x32xf32>,
    %c0_69 = arith.constant 0 : index
    %c64_70 = arith.constant 64 : index
    %86 = vector.load %arg10[%c0_69, %c64_70] : memref<8x112xf32, #tpu.memory_space<vmem>>, vector<8x32xf32>
    tpu.vector_store %arg10[%c0_69, %c64_70], %83 {strides = array<i32>} : memref<8x112xf32, #tpu.memory_space<vmem>>, vector<8x32xf32>,
    %87 = vector.shape_cast %63 : vector<1x16xf32> to vector<1x16xf32>
    %88 = vector.broadcast %87 : vector<1x16xf32> to vector<8x16xf32>
    %c0_71 = arith.constant 0 : index
    %c96_72 = arith.constant 96 : index
    %89 = vector.load %arg10[%c0_71, %c96_72] : memref<8x112xf32, #tpu.memory_space<vmem>>, vector<8x16xf32>
    tpu.vector_store %arg10[%c0_71, %c96_72], %88 {strides = array<i32>} : memref<8x112xf32, #tpu.memory_space<vmem>>, vector<8x16xf32>,
    %c0_73 = arith.constant 0 : index
    %c0_74 = arith.constant 0 : index
    %90 = vector.load %arg10[%c0_73, %c0_74] : memref<8x112xf32, #tpu.memory_space<vmem>>, vector<8x112xf32>
    %c336 = arith.constant 336 : index
    %c0_75 = arith.constant 0 : index
    %91 = vector.load %arg3[%c336, %c0_75] : memref<816x32xbf16, #tpu.memory_space<vmem>>, vector<112x32xbf16>
    %92 = arith.truncf %90 : vector<8x112xf32> to vector<8x112xbf16>
    %cst_76 = arith.constant dense<0.000000e+00> : vector<8x32xf32>
    %93 = tpu.matmul %92, %91, %cst_76 {dimension_numbers = #tpu.dot_dimension_numbers<[1], [0], [0], [1], [0, 0, 1, 1], [], []>} : vector<8x112xbf16>, vector<112x32xbf16>, vector<8x32xf32> -> vector<8x32xf32>
    %c4_77 = arith.constant 4 : index
    %c0_78 = arith.constant 0 : index
    %94 = vector.load %arg4[%c4_77, %c0_78] : memref<9x32xf32, #tpu.memory_space<vmem>>, vector<1x32xf32>
    %95 = vector.broadcast %94 : vector<1x32xf32> to vector<8x32xf32>
    %96 = arith.addf %93, %95 : vector<8x32xf32>
    %97 = math.tanh %96 : vector<8x32xf32>
    %cst_79 = arith.constant dense<0.000000e+00> : vector<32xf32>
    %98 = vector.multi_reduction <add>, %97, %cst_79 [0] : vector<8x32xf32> to vector<32xf32>
    %99 = vector.shape_cast %98 : vector<32xf32> to vector<1x32xf32>
    %cst_80 = arith.constant 8.000000e+00 : f32
    %100 = vector.broadcast %cst_80 : f32 to vector<1x32xf32>
    %101 = arith.divf %99, %100 : vector<1x32xf32>
    %c0_81 = arith.constant 0 : index
    %c0_82 = arith.constant 0 : index
    %102 = vector.load %arg11[%c0_81, %c0_82] : memref<1x80xf32, #tpu.memory_space<vmem>>, vector<1x32xf32>
    tpu.vector_store %arg11[%c0_81, %c0_82], %101 {strides = array<i32>} : memref<1x80xf32, #tpu.memory_space<vmem>>, vector<1x32xf32>,
    %cst_83 = arith.constant dense<0.000000e+00> : vector<32xf32>
    %103 = vector.multi_reduction <add>, %81, %cst_83 [0] : vector<16x32xf32> to vector<32xf32>
    %104 = vector.shape_cast %103 : vector<32xf32> to vector<1x32xf32>
    %cst_84 = arith.constant 1.600000e+01 : f32
    %105 = vector.broadcast %cst_84 : f32 to vector<1x32xf32>
    %106 = arith.divf %104, %105 : vector<1x32xf32>
    %c0_85 = arith.constant 0 : index
    %c32_86 = arith.constant 32 : index
    %107 = vector.load %arg11[%c0_85, %c32_86] : memref<1x80xf32, #tpu.memory_space<vmem>>, vector<1x32xf32>
    tpu.vector_store %arg11[%c0_85, %c32_86], %106 {strides = array<i32>} : memref<1x80xf32, #tpu.memory_space<vmem>>, vector<1x32xf32>,
    %c0_87 = arith.constant 0 : index
    %c64_88 = arith.constant 64 : index
    %108 = vector.load %arg11[%c0_87, %c64_88] : memref<1x80xf32, #tpu.memory_space<vmem>>, vector<1x16xf32>
    tpu.vector_store %arg11[%c0_87, %c64_88], %63 {strides = array<i32>} : memref<1x80xf32, #tpu.memory_space<vmem>>, vector<1x16xf32>,
    %c0_89 = arith.constant 0 : index
    %c0_90 = arith.constant 0 : index
    %109 = vector.load %arg11[%c0_89, %c0_90] : memref<1x80xf32, #tpu.memory_space<vmem>>, vector<1x80xf32>
    %c448 = arith.constant 448 : index
    %c0_91 = arith.constant 0 : index
    %110 = vector.load %arg3[%c448, %c0_91] : memref<816x32xbf16, #tpu.memory_space<vmem>>, vector<80x32xbf16>
    %111 = arith.truncf %109 : vector<1x80xf32> to vector<1x80xbf16>
    %cst_92 = arith.constant dense<0.000000e+00> : vector<1x32xf32>
    %112 = tpu.matmul %111, %110, %cst_92 {dimension_numbers = #tpu.dot_dimension_numbers<[1], [0], [0], [1], [0, 0, 1, 1], [], []>} : vector<1x80xbf16>, vector<80x32xbf16>, vector<1x32xf32> -> vector<1x32xf32>
    %c5 = arith.constant 5 : index
    %c0_93 = arith.constant 0 : index
    %113 = vector.load %arg4[%c5, %c0_93] : memref<9x32xf32, #tpu.memory_space<vmem>>, vector<1x32xf32>
    %114 = arith.addf %112, %113 : vector<1x32xf32>
    %115 = math.tanh %114 : vector<1x32xf32>
    %116 = vector.extract_strided_slice %115 {offsets = [0, 0], sizes = [1, 16], strides = [1, 1]} : vector<1x32xf32> to vector<1x16xf32>
    %c1_94 = arith.constant 1 : index
    %c0_95 = arith.constant 0 : index
    %c0_96 = arith.constant 0 : index
    %117 = vector.load %arg1[%c1_94, %c0_95, %c0_96] : memref<3x32x8xbf16, #tpu.memory_space<vmem>>, vector<1x32x8xbf16>
    %118 = vector.shape_cast %117 : vector<1x32x8xbf16> to vector<32x8xbf16>
    %c1_97 = arith.constant 1 : index
    %c0_98 = arith.constant 0 : index
    %c0_99 = arith.constant 0 : index
    %119 = vector.load %arg2[%c1_97, %c0_98, %c0_99] : memref<3x8x16xbf16, #tpu.memory_space<vmem>>, vector<1x8x16xbf16>
    %120 = vector.shape_cast %119 : vector<1x8x16xbf16> to vector<8x16xbf16>
    %c1_100 = arith.constant 1 : index
    %c0_101 = arith.constant 0 : index
    %c0_102 = arith.constant 0 : index
    %121 = vector.load %arg0[%c1_100, %c0_101, %c0_102] : memref<3x8x4xf32, #tpu.memory_space<vmem>>, vector<1x8x4xf32>
    %122 = vector.shape_cast %121 : vector<1x8x4xf32> to vector<8x4xf32>
    %123 = arith.truncf %122 : vector<8x4xf32> to vector<8x4xbf16>
    %cst_103 = arith.constant dense<0.000000e+00> : vector<32x4xf32>
    %124 = tpu.matmul %118, %123, %cst_103 {dimension_numbers = #tpu.dot_dimension_numbers<[1], [0], [0], [1], [0, 0, 1, 1], [], []>} : vector<32x8xbf16>, vector<8x4xbf16>, vector<32x4xf32> -> vector<32x4xf32>
    %125 = vector.extract_strided_slice %124 {offsets = [0, 0], sizes = [16, 4], strides = [1, 1]} : vector<32x4xf32> to vector<16x4xf32>
    %c0_104 = arith.constant 0 : index
    %c0_105 = arith.constant 0 : index
    %126 = vector.load %arg9[%c0_104, %c0_105] : memref<16x112xf32, #tpu.memory_space<vmem>>, vector<16x4xf32>
    tpu.vector_store %arg9[%c0_104, %c0_105], %125 {strides = array<i32>} : memref<16x112xf32, #tpu.memory_space<vmem>>, vector<16x4xf32>,
    %127 = vector.extract_strided_slice %124 {offsets = [16, 0], sizes = [16, 4], strides = [1, 1]} : vector<32x4xf32> to vector<16x4xf32>
    %c0_106 = arith.constant 0 : index
    %c4_107 = arith.constant 4 : index
    %128 = vector.load %arg9[%c0_106, %c4_107] : memref<16x112xf32, #tpu.memory_space<vmem>>, vector<16x4xf32>
    tpu.vector_store %arg9[%c0_106, %c4_107], %127 {strides = array<i32>} : memref<16x112xf32, #tpu.memory_space<vmem>>, vector<16x4xf32>,
    %c0_108 = arith.constant 0 : index
    %c8_109 = arith.constant 8 : index
    %129 = vector.load %arg9[%c0_108, %c8_109] : memref<16x112xf32, #tpu.memory_space<vmem>>, vector<16x32xf32>
    tpu.vector_store %arg9[%c0_108, %c8_109], %28 {strides = array<i32>} : memref<16x112xf32, #tpu.memory_space<vmem>>, vector<16x32xf32>,
    %130 = vector.shape_cast %116 : vector<1x16xf32> to vector<1x16xf32>
    %131 = vector.broadcast %130 : vector<1x16xf32> to vector<16x16xf32>
    %c0_110 = arith.constant 0 : index
    %c40_111 = arith.constant 40 : index
    %132 = vector.load %arg9[%c0_110, %c40_111] : memref<16x112xf32, #tpu.memory_space<vmem>>, vector<16x16xf32>
    tpu.vector_store %arg9[%c0_110, %c40_111], %131 {strides = array<i32>} : memref<16x112xf32, #tpu.memory_space<vmem>>, vector<16x16xf32>,
    %c0_112 = arith.constant 0 : index
    %c0_113 = arith.constant 0 : index
    %133 = vector.load %arg9[%c0_112, %c0_113] : memref<16x112xf32, #tpu.memory_space<vmem>>, vector<16x56xf32>
    %c0_114 = arith.constant 0 : index
    %c0_115 = arith.constant 0 : index
    %134 = vector.load %arg3[%c0_114, %c0_115] : memref<816x32xbf16, #tpu.memory_space<vmem>>, vector<56x32xbf16>
    %135 = arith.truncf %133 : vector<16x56xf32> to vector<16x56xbf16>
    %cst_116 = arith.constant dense<0.000000e+00> : vector<16x32xf32>
    %136 = tpu.matmul %135, %134, %cst_116 {dimension_numbers = #tpu.dot_dimension_numbers<[1], [0], [0], [1], [0, 0, 1, 1], [], []>} : vector<16x56xbf16>, vector<56x32xbf16>, vector<16x32xf32> -> vector<16x32xf32>
    %c0_117 = arith.constant 0 : index
    %c0_118 = arith.constant 0 : index
    %137 = vector.load %arg4[%c0_117, %c0_118] : memref<9x32xf32, #tpu.memory_space<vmem>>, vector<1x32xf32>
    %138 = vector.broadcast %137 : vector<1x32xf32> to vector<16x32xf32>
    %139 = arith.addf %136, %138 : vector<16x32xf32>
    %140 = math.tanh %139 : vector<16x32xf32>
    %141 = arith.truncf %140 : vector<16x32xf32> to vector<16x32xbf16>
    %cst_119 = arith.constant dense<0.000000e+00> : vector<8x32xf32>
    %142 = tpu.matmul %120, %141, %cst_119 {dimension_numbers = #tpu.dot_dimension_numbers<[1], [0], [0], [1], [0, 0, 1, 1], [], []>} : vector<8x16xbf16>, vector<16x32xbf16>, vector<8x32xf32> -> vector<8x32xf32>
    %c0_120 = arith.constant 0 : index
    %c0_121 = arith.constant 0 : index
    %143 = vector.load %arg10[%c0_120, %c0_121] : memref<8x112xf32, #tpu.memory_space<vmem>>, vector<8x4xf32>
    tpu.vector_store %arg10[%c0_120, %c0_121], %122 {strides = array<i32>} : memref<8x112xf32, #tpu.memory_space<vmem>>, vector<8x4xf32>,
    %c0_122 = arith.constant 0 : index
    %c4_123 = arith.constant 4 : index
    %144 = vector.load %arg10[%c0_122, %c4_123] : memref<8x112xf32, #tpu.memory_space<vmem>>, vector<8x32xf32>
    tpu.vector_store %arg10[%c0_122, %c4_123], %44 {strides = array<i32>} : memref<8x112xf32, #tpu.memory_space<vmem>>, vector<8x32xf32>,
    %c0_124 = arith.constant 0 : index
    %c36_125 = arith.constant 36 : index
    %145 = vector.load %arg10[%c0_124, %c36_125] : memref<8x112xf32, #tpu.memory_space<vmem>>, vector<8x32xf32>
    tpu.vector_store %arg10[%c0_124, %c36_125], %142 {strides = array<i32>} : memref<8x112xf32, #tpu.memory_space<vmem>>, vector<8x32xf32>,
    %146 = vector.shape_cast %116 : vector<1x16xf32> to vector<1x16xf32>
    %147 = vector.broadcast %146 : vector<1x16xf32> to vector<8x16xf32>
    %c0_126 = arith.constant 0 : index
    %c68_127 = arith.constant 68 : index
    %148 = vector.load %arg10[%c0_126, %c68_127] : memref<8x112xf32, #tpu.memory_space<vmem>>, vector<8x16xf32>
    tpu.vector_store %arg10[%c0_126, %c68_127], %147 {strides = array<i32>} : memref<8x112xf32, #tpu.memory_space<vmem>>, vector<8x16xf32>,
    %c0_128 = arith.constant 0 : index
    %c0_129 = arith.constant 0 : index
    %149 = vector.load %arg10[%c0_128, %c0_129] : memref<8x112xf32, #tpu.memory_space<vmem>>, vector<8x84xf32>
    %c56_130 = arith.constant 56 : index
    %c0_131 = arith.constant 0 : index
    %150 = vector.load %arg3[%c56_130, %c0_131] : memref<816x32xbf16, #tpu.memory_space<vmem>>, vector<84x32xbf16>
    %151 = arith.truncf %149 : vector<8x84xf32> to vector<8x84xbf16>
    %cst_132 = arith.constant dense<0.000000e+00> : vector<8x32xf32>
    %152 = tpu.matmul %151, %150, %cst_132 {dimension_numbers = #tpu.dot_dimension_numbers<[1], [0], [0], [1], [0, 0, 1, 1], [], []>} : vector<8x84xbf16>, vector<84x32xbf16>, vector<8x32xf32> -> vector<8x32xf32>
    %c1_133 = arith.constant 1 : index
    %c0_134 = arith.constant 0 : index
    %153 = vector.load %arg4[%c1_133, %c0_134] : memref<9x32xf32, #tpu.memory_space<vmem>>, vector<1x32xf32>
    %154 = vector.broadcast %153 : vector<1x32xf32> to vector<8x32xf32>
    %155 = arith.addf %152, %154 : vector<8x32xf32>
    %156 = math.tanh %155 : vector<8x32xf32>
    %cst_135 = arith.constant dense<0.000000e+00> : vector<32xf32>
    %157 = vector.multi_reduction <add>, %156, %cst_135 [0] : vector<8x32xf32> to vector<32xf32>
    %158 = vector.shape_cast %157 : vector<32xf32> to vector<1x32xf32>
    %cst_136 = arith.constant 8.000000e+00 : f32
    %159 = vector.broadcast %cst_136 : f32 to vector<1x32xf32>
    %160 = arith.divf %158, %159 : vector<1x32xf32>
    %c0_137 = arith.constant 0 : index
    %c0_138 = arith.constant 0 : index
    %161 = vector.load %arg11[%c0_137, %c0_138] : memref<1x80xf32, #tpu.memory_space<vmem>>, vector<1x32xf32>
    tpu.vector_store %arg11[%c0_137, %c0_138], %160 {strides = array<i32>} : memref<1x80xf32, #tpu.memory_space<vmem>>, vector<1x32xf32>,
    %cst_139 = arith.constant dense<0.000000e+00> : vector<32xf32>
    %162 = vector.multi_reduction <add>, %140, %cst_139 [0] : vector<16x32xf32> to vector<32xf32>
    %163 = vector.shape_cast %162 : vector<32xf32> to vector<1x32xf32>
    %cst_140 = arith.constant 1.600000e+01 : f32
    %164 = vector.broadcast %cst_140 : f32 to vector<1x32xf32>
    %165 = arith.divf %163, %164 : vector<1x32xf32>
    %c0_141 = arith.constant 0 : index
    %c32_142 = arith.constant 32 : index
    %166 = vector.load %arg11[%c0_141, %c32_142] : memref<1x80xf32, #tpu.memory_space<vmem>>, vector<1x32xf32>
    tpu.vector_store %arg11[%c0_141, %c32_142], %165 {strides = array<i32>} : memref<1x80xf32, #tpu.memory_space<vmem>>, vector<1x32xf32>,
    %c0_143 = arith.constant 0 : index
    %c64_144 = arith.constant 64 : index
    %167 = vector.load %arg11[%c0_143, %c64_144] : memref<1x80xf32, #tpu.memory_space<vmem>>, vector<1x16xf32>
    tpu.vector_store %arg11[%c0_143, %c64_144], %116 {strides = array<i32>} : memref<1x80xf32, #tpu.memory_space<vmem>>, vector<1x16xf32>,
    %c0_145 = arith.constant 0 : index
    %c0_146 = arith.constant 0 : index
    %168 = vector.load %arg11[%c0_145, %c0_146] : memref<1x80xf32, #tpu.memory_space<vmem>>, vector<1x80xf32>
    %c144_147 = arith.constant 144 : index
    %c0_148 = arith.constant 0 : index
    %169 = vector.load %arg3[%c144_147, %c0_148] : memref<816x32xbf16, #tpu.memory_space<vmem>>, vector<80x32xbf16>
    %170 = arith.truncf %168 : vector<1x80xf32> to vector<1x80xbf16>
    %cst_149 = arith.constant dense<0.000000e+00> : vector<1x32xf32>
    %171 = tpu.matmul %170, %169, %cst_149 {dimension_numbers = #tpu.dot_dimension_numbers<[1], [0], [0], [1], [0, 0, 1, 1], [], []>} : vector<1x80xbf16>, vector<80x32xbf16>, vector<1x32xf32> -> vector<1x32xf32>
    %c2_150 = arith.constant 2 : index
    %c0_151 = arith.constant 0 : index
    %172 = vector.load %arg4[%c2_150, %c0_151] : memref<9x32xf32, #tpu.memory_space<vmem>>, vector<1x32xf32>
    %173 = arith.addf %171, %172 : vector<1x32xf32>
    %174 = math.tanh %173 : vector<1x32xf32>
    %175 = vector.extract_strided_slice %174 {offsets = [0, 0], sizes = [1, 16], strides = [1, 1]} : vector<1x32xf32> to vector<1x16xf32>
    %176 = arith.truncf %156 : vector<8x32xf32> to vector<8x32xbf16>
    %cst_152 = arith.constant dense<0.000000e+00> : vector<32x32xf32>
    %177 = tpu.matmul %118, %176, %cst_152 {dimension_numbers = #tpu.dot_dimension_numbers<[1], [0], [0], [1], [0, 0, 1, 1], [], []>} : vector<32x8xbf16>, vector<8x32xbf16>, vector<32x32xf32> -> vector<32x32xf32>
    %178 = vector.extract_strided_slice %177 {offsets = [0, 0], sizes = [16, 32], strides = [1, 1]} : vector<32x32xf32> to vector<16x32xf32>
    %c0_153 = arith.constant 0 : index
    %c0_154 = arith.constant 0 : index
    %179 = vector.load %arg9[%c0_153, %c0_154] : memref<16x112xf32, #tpu.memory_space<vmem>>, vector<16x32xf32>
    tpu.vector_store %arg9[%c0_153, %c0_154], %178 {strides = array<i32>} : memref<16x112xf32, #tpu.memory_space<vmem>>, vector<16x32xf32>,
    %180 = vector.extract_strided_slice %177 {offsets = [16, 0], sizes = [16, 32], strides = [1, 1]} : vector<32x32xf32> to vector<16x32xf32>
    %c0_155 = arith.constant 0 : index
    %c32_156 = arith.constant 32 : index
    %181 = vector.load %arg9[%c0_155, %c32_156] : memref<16x112xf32, #tpu.memory_space<vmem>>, vector<16x32xf32>
    tpu.vector_store %arg9[%c0_155, %c32_156], %180 {strides = array<i32>} : memref<16x112xf32, #tpu.memory_space<vmem>>, vector<16x32xf32>,
    %c0_157 = arith.constant 0 : index
    %c64_158 = arith.constant 64 : index
    %182 = vector.load %arg9[%c0_157, %c64_158] : memref<16x112xf32, #tpu.memory_space<vmem>>, vector<16x32xf32>
    tpu.vector_store %arg9[%c0_157, %c64_158], %81 {strides = array<i32>} : memref<16x112xf32, #tpu.memory_space<vmem>>, vector<16x32xf32>,
    %183 = vector.shape_cast %175 : vector<1x16xf32> to vector<1x16xf32>
    %184 = vector.broadcast %183 : vector<1x16xf32> to vector<16x16xf32>
    %c0_159 = arith.constant 0 : index
    %c96_160 = arith.constant 96 : index
    %185 = vector.load %arg9[%c0_159, %c96_160] : memref<16x112xf32, #tpu.memory_space<vmem>>, vector<16x16xf32>
    tpu.vector_store %arg9[%c0_159, %c96_160], %184 {strides = array<i32>} : memref<16x112xf32, #tpu.memory_space<vmem>>, vector<16x16xf32>,
    %c0_161 = arith.constant 0 : index
    %c0_162 = arith.constant 0 : index
    %186 = vector.load %arg9[%c0_161, %c0_162] : memref<16x112xf32, #tpu.memory_space<vmem>>, vector<16x112xf32>
    %c224_163 = arith.constant 224 : index
    %c0_164 = arith.constant 0 : index
    %187 = vector.load %arg3[%c224_163, %c0_164] : memref<816x32xbf16, #tpu.memory_space<vmem>>, vector<112x32xbf16>
    %188 = arith.truncf %186 : vector<16x112xf32> to vector<16x112xbf16>
    %cst_165 = arith.constant dense<0.000000e+00> : vector<16x32xf32>
    %189 = tpu.matmul %188, %187, %cst_165 {dimension_numbers = #tpu.dot_dimension_numbers<[1], [0], [0], [1], [0, 0, 1, 1], [], []>} : vector<16x112xbf16>, vector<112x32xbf16>, vector<16x32xf32> -> vector<16x32xf32>
    %c3_166 = arith.constant 3 : index
    %c0_167 = arith.constant 0 : index
    %190 = vector.load %arg4[%c3_166, %c0_167] : memref<9x32xf32, #tpu.memory_space<vmem>>, vector<1x32xf32>
    %191 = vector.broadcast %190 : vector<1x32xf32> to vector<16x32xf32>
    %192 = arith.addf %189, %191 : vector<16x32xf32>
    %193 = math.tanh %192 : vector<16x32xf32>
    %194 = arith.truncf %193 : vector<16x32xf32> to vector<16x32xbf16>
    %cst_168 = arith.constant dense<0.000000e+00> : vector<8x32xf32>
    %195 = tpu.matmul %120, %194, %cst_168 {dimension_numbers = #tpu.dot_dimension_numbers<[1], [0], [0], [1], [0, 0, 1, 1], [], []>} : vector<8x16xbf16>, vector<16x32xbf16>, vector<8x32xf32> -> vector<8x32xf32>
    %c0_169 = arith.constant 0 : index
    %c0_170 = arith.constant 0 : index
    %196 = vector.load %arg10[%c0_169, %c0_170] : memref<8x112xf32, #tpu.memory_space<vmem>>, vector<8x32xf32>
    tpu.vector_store %arg10[%c0_169, %c0_170], %156 {strides = array<i32>} : memref<8x112xf32, #tpu.memory_space<vmem>>, vector<8x32xf32>,
    %c0_171 = arith.constant 0 : index
    %c32_172 = arith.constant 32 : index
    %197 = vector.load %arg10[%c0_171, %c32_172] : memref<8x112xf32, #tpu.memory_space<vmem>>, vector<8x32xf32>
    tpu.vector_store %arg10[%c0_171, %c32_172], %97 {strides = array<i32>} : memref<8x112xf32, #tpu.memory_space<vmem>>, vector<8x32xf32>,
    %c0_173 = arith.constant 0 : index
    %c64_174 = arith.constant 64 : index
    %198 = vector.load %arg10[%c0_173, %c64_174] : memref<8x112xf32, #tpu.memory_space<vmem>>, vector<8x32xf32>
    tpu.vector_store %arg10[%c0_173, %c64_174], %195 {strides = array<i32>} : memref<8x112xf32, #tpu.memory_space<vmem>>, vector<8x32xf32>,
    %199 = vector.shape_cast %175 : vector<1x16xf32> to vector<1x16xf32>
    %200 = vector.broadcast %199 : vector<1x16xf32> to vector<8x16xf32>
    %c0_175 = arith.constant 0 : index
    %c96_176 = arith.constant 96 : index
    %201 = vector.load %arg10[%c0_175, %c96_176] : memref<8x112xf32, #tpu.memory_space<vmem>>, vector<8x16xf32>
    tpu.vector_store %arg10[%c0_175, %c96_176], %200 {strides = array<i32>} : memref<8x112xf32, #tpu.memory_space<vmem>>, vector<8x16xf32>,
    %c0_177 = arith.constant 0 : index
    %c0_178 = arith.constant 0 : index
    %202 = vector.load %arg10[%c0_177, %c0_178] : memref<8x112xf32, #tpu.memory_space<vmem>>, vector<8x112xf32>
    %c336_179 = arith.constant 336 : index
    %c0_180 = arith.constant 0 : index
    %203 = vector.load %arg3[%c336_179, %c0_180] : memref<816x32xbf16, #tpu.memory_space<vmem>>, vector<112x32xbf16>
    %204 = arith.truncf %202 : vector<8x112xf32> to vector<8x112xbf16>
    %cst_181 = arith.constant dense<0.000000e+00> : vector<8x32xf32>
    %205 = tpu.matmul %204, %203, %cst_181 {dimension_numbers = #tpu.dot_dimension_numbers<[1], [0], [0], [1], [0, 0, 1, 1], [], []>} : vector<8x112xbf16>, vector<112x32xbf16>, vector<8x32xf32> -> vector<8x32xf32>
    %c4_182 = arith.constant 4 : index
    %c0_183 = arith.constant 0 : index
    %206 = vector.load %arg4[%c4_182, %c0_183] : memref<9x32xf32, #tpu.memory_space<vmem>>, vector<1x32xf32>
    %207 = vector.broadcast %206 : vector<1x32xf32> to vector<8x32xf32>
    %208 = arith.addf %205, %207 : vector<8x32xf32>
    %209 = math.tanh %208 : vector<8x32xf32>
    %cst_184 = arith.constant dense<0.000000e+00> : vector<32xf32>
    %210 = vector.multi_reduction <add>, %209, %cst_184 [0] : vector<8x32xf32> to vector<32xf32>
    %211 = vector.shape_cast %210 : vector<32xf32> to vector<1x32xf32>
    %cst_185 = arith.constant 8.000000e+00 : f32
    %212 = vector.broadcast %cst_185 : f32 to vector<1x32xf32>
    %213 = arith.divf %211, %212 : vector<1x32xf32>
    %c0_186 = arith.constant 0 : index
    %c0_187 = arith.constant 0 : index
    %214 = vector.load %arg11[%c0_186, %c0_187] : memref<1x80xf32, #tpu.memory_space<vmem>>, vector<1x32xf32>
    tpu.vector_store %arg11[%c0_186, %c0_187], %213 {strides = array<i32>} : memref<1x80xf32, #tpu.memory_space<vmem>>, vector<1x32xf32>,
    %cst_188 = arith.constant dense<0.000000e+00> : vector<32xf32>
    %215 = vector.multi_reduction <add>, %193, %cst_188 [0] : vector<16x32xf32> to vector<32xf32>
    %216 = vector.shape_cast %215 : vector<32xf32> to vector<1x32xf32>
    %cst_189 = arith.constant 1.600000e+01 : f32
    %217 = vector.broadcast %cst_189 : f32 to vector<1x32xf32>
    %218 = arith.divf %216, %217 : vector<1x32xf32>
    %c0_190 = arith.constant 0 : index
    %c32_191 = arith.constant 32 : index
    %219 = vector.load %arg11[%c0_190, %c32_191] : memref<1x80xf32, #tpu.memory_space<vmem>>, vector<1x32xf32>
    tpu.vector_store %arg11[%c0_190, %c32_191], %218 {strides = array<i32>} : memref<1x80xf32, #tpu.memory_space<vmem>>, vector<1x32xf32>,
    %c0_192 = arith.constant 0 : index
    %c64_193 = arith.constant 64 : index
    %220 = vector.load %arg11[%c0_192, %c64_193] : memref<1x80xf32, #tpu.memory_space<vmem>>, vector<1x16xf32>
    tpu.vector_store %arg11[%c0_192, %c64_193], %175 {strides = array<i32>} : memref<1x80xf32, #tpu.memory_space<vmem>>, vector<1x16xf32>,
    %c0_194 = arith.constant 0 : index
    %c0_195 = arith.constant 0 : index
    %221 = vector.load %arg11[%c0_194, %c0_195] : memref<1x80xf32, #tpu.memory_space<vmem>>, vector<1x80xf32>
    %c448_196 = arith.constant 448 : index
    %c0_197 = arith.constant 0 : index
    %222 = vector.load %arg3[%c448_196, %c0_197] : memref<816x32xbf16, #tpu.memory_space<vmem>>, vector<80x32xbf16>
    %223 = arith.truncf %221 : vector<1x80xf32> to vector<1x80xbf16>
    %cst_198 = arith.constant dense<0.000000e+00> : vector<1x32xf32>
    %224 = tpu.matmul %223, %222, %cst_198 {dimension_numbers = #tpu.dot_dimension_numbers<[1], [0], [0], [1], [0, 0, 1, 1], [], []>} : vector<1x80xbf16>, vector<80x32xbf16>, vector<1x32xf32> -> vector<1x32xf32>
    %c5_199 = arith.constant 5 : index
    %c0_200 = arith.constant 0 : index
    %225 = vector.load %arg4[%c5_199, %c0_200] : memref<9x32xf32, #tpu.memory_space<vmem>>, vector<1x32xf32>
    %226 = arith.addf %224, %225 : vector<1x32xf32>
    %227 = math.tanh %226 : vector<1x32xf32>
    %228 = vector.extract_strided_slice %227 {offsets = [0, 0], sizes = [1, 16], strides = [1, 1]} : vector<1x32xf32> to vector<1x16xf32>
    %c2_201 = arith.constant 2 : index
    %c0_202 = arith.constant 0 : index
    %c0_203 = arith.constant 0 : index
    %229 = vector.load %arg1[%c2_201, %c0_202, %c0_203] : memref<3x32x8xbf16, #tpu.memory_space<vmem>>, vector<1x32x8xbf16>
    %230 = vector.shape_cast %229 : vector<1x32x8xbf16> to vector<32x8xbf16>
    %c2_204 = arith.constant 2 : index
    %c0_205 = arith.constant 0 : index
    %c0_206 = arith.constant 0 : index
    %231 = vector.load %arg2[%c2_204, %c0_205, %c0_206] : memref<3x8x16xbf16, #tpu.memory_space<vmem>>, vector<1x8x16xbf16>
    %232 = vector.shape_cast %231 : vector<1x8x16xbf16> to vector<8x16xbf16>
    %c2_207 = arith.constant 2 : index
    %c0_208 = arith.constant 0 : index
    %c0_209 = arith.constant 0 : index
    %233 = vector.load %arg0[%c2_207, %c0_208, %c0_209] : memref<3x8x4xf32, #tpu.memory_space<vmem>>, vector<1x8x4xf32>
    %234 = vector.shape_cast %233 : vector<1x8x4xf32> to vector<8x4xf32>
    %235 = arith.truncf %234 : vector<8x4xf32> to vector<8x4xbf16>
    %cst_210 = arith.constant dense<0.000000e+00> : vector<32x4xf32>
    %236 = tpu.matmul %230, %235, %cst_210 {dimension_numbers = #tpu.dot_dimension_numbers<[1], [0], [0], [1], [0, 0, 1, 1], [], []>} : vector<32x8xbf16>, vector<8x4xbf16>, vector<32x4xf32> -> vector<32x4xf32>
    %237 = vector.extract_strided_slice %236 {offsets = [0, 0], sizes = [16, 4], strides = [1, 1]} : vector<32x4xf32> to vector<16x4xf32>
    %c0_211 = arith.constant 0 : index
    %c0_212 = arith.constant 0 : index
    %238 = vector.load %arg9[%c0_211, %c0_212] : memref<16x112xf32, #tpu.memory_space<vmem>>, vector<16x4xf32>
    tpu.vector_store %arg9[%c0_211, %c0_212], %237 {strides = array<i32>} : memref<16x112xf32, #tpu.memory_space<vmem>>, vector<16x4xf32>,
    %239 = vector.extract_strided_slice %236 {offsets = [16, 0], sizes = [16, 4], strides = [1, 1]} : vector<32x4xf32> to vector<16x4xf32>
    %c0_213 = arith.constant 0 : index
    %c4_214 = arith.constant 4 : index
    %240 = vector.load %arg9[%c0_213, %c4_214] : memref<16x112xf32, #tpu.memory_space<vmem>>, vector<16x4xf32>
    tpu.vector_store %arg9[%c0_213, %c4_214], %239 {strides = array<i32>} : memref<16x112xf32, #tpu.memory_space<vmem>>, vector<16x4xf32>,
    %c0_215 = arith.constant 0 : index
    %c8_216 = arith.constant 8 : index
    %241 = vector.load %arg9[%c0_215, %c8_216] : memref<16x112xf32, #tpu.memory_space<vmem>>, vector<16x32xf32>
    tpu.vector_store %arg9[%c0_215, %c8_216], %140 {strides = array<i32>} : memref<16x112xf32, #tpu.memory_space<vmem>>, vector<16x32xf32>,
    %242 = vector.shape_cast %228 : vector<1x16xf32> to vector<1x16xf32>
    %243 = vector.broadcast %242 : vector<1x16xf32> to vector<16x16xf32>
    %c0_217 = arith.constant 0 : index
    %c40_218 = arith.constant 40 : index
    %244 = vector.load %arg9[%c0_217, %c40_218] : memref<16x112xf32, #tpu.memory_space<vmem>>, vector<16x16xf32>
    tpu.vector_store %arg9[%c0_217, %c40_218], %243 {strides = array<i32>} : memref<16x112xf32, #tpu.memory_space<vmem>>, vector<16x16xf32>,
    %c0_219 = arith.constant 0 : index
    %c0_220 = arith.constant 0 : index
    %245 = vector.load %arg9[%c0_219, %c0_220] : memref<16x112xf32, #tpu.memory_space<vmem>>, vector<16x56xf32>
    %c0_221 = arith.constant 0 : index
    %c0_222 = arith.constant 0 : index
    %246 = vector.load %arg3[%c0_221, %c0_222] : memref<816x32xbf16, #tpu.memory_space<vmem>>, vector<56x32xbf16>
    %247 = arith.truncf %245 : vector<16x56xf32> to vector<16x56xbf16>
    %cst_223 = arith.constant dense<0.000000e+00> : vector<16x32xf32>
    %248 = tpu.matmul %247, %246, %cst_223 {dimension_numbers = #tpu.dot_dimension_numbers<[1], [0], [0], [1], [0, 0, 1, 1], [], []>} : vector<16x56xbf16>, vector<56x32xbf16>, vector<16x32xf32> -> vector<16x32xf32>
    %c0_224 = arith.constant 0 : index
    %c0_225 = arith.constant 0 : index
    %249 = vector.load %arg4[%c0_224, %c0_225] : memref<9x32xf32, #tpu.memory_space<vmem>>, vector<1x32xf32>
    %250 = vector.broadcast %249 : vector<1x32xf32> to vector<16x32xf32>
    %251 = arith.addf %248, %250 : vector<16x32xf32>
    %252 = math.tanh %251 : vector<16x32xf32>
    %253 = arith.truncf %252 : vector<16x32xf32> to vector<16x32xbf16>
    %cst_226 = arith.constant dense<0.000000e+00> : vector<8x32xf32>
    %254 = tpu.matmul %232, %253, %cst_226 {dimension_numbers = #tpu.dot_dimension_numbers<[1], [0], [0], [1], [0, 0, 1, 1], [], []>} : vector<8x16xbf16>, vector<16x32xbf16>, vector<8x32xf32> -> vector<8x32xf32>
    %c0_227 = arith.constant 0 : index
    %c0_228 = arith.constant 0 : index
    %255 = vector.load %arg10[%c0_227, %c0_228] : memref<8x112xf32, #tpu.memory_space<vmem>>, vector<8x4xf32>
    tpu.vector_store %arg10[%c0_227, %c0_228], %234 {strides = array<i32>} : memref<8x112xf32, #tpu.memory_space<vmem>>, vector<8x4xf32>,
    %c0_229 = arith.constant 0 : index
    %c4_230 = arith.constant 4 : index
    %256 = vector.load %arg10[%c0_229, %c4_230] : memref<8x112xf32, #tpu.memory_space<vmem>>, vector<8x32xf32>
    tpu.vector_store %arg10[%c0_229, %c4_230], %156 {strides = array<i32>} : memref<8x112xf32, #tpu.memory_space<vmem>>, vector<8x32xf32>,
    %c0_231 = arith.constant 0 : index
    %c36_232 = arith.constant 36 : index
    %257 = vector.load %arg10[%c0_231, %c36_232] : memref<8x112xf32, #tpu.memory_space<vmem>>, vector<8x32xf32>
    tpu.vector_store %arg10[%c0_231, %c36_232], %254 {strides = array<i32>} : memref<8x112xf32, #tpu.memory_space<vmem>>, vector<8x32xf32>,
    %258 = vector.shape_cast %228 : vector<1x16xf32> to vector<1x16xf32>
    %259 = vector.broadcast %258 : vector<1x16xf32> to vector<8x16xf32>
    %c0_233 = arith.constant 0 : index
    %c68_234 = arith.constant 68 : index
    %260 = vector.load %arg10[%c0_233, %c68_234] : memref<8x112xf32, #tpu.memory_space<vmem>>, vector<8x16xf32>
    tpu.vector_store %arg10[%c0_233, %c68_234], %259 {strides = array<i32>} : memref<8x112xf32, #tpu.memory_space<vmem>>, vector<8x16xf32>,
    %c0_235 = arith.constant 0 : index
    %c0_236 = arith.constant 0 : index
    %261 = vector.load %arg10[%c0_235, %c0_236] : memref<8x112xf32, #tpu.memory_space<vmem>>, vector<8x84xf32>
    %c56_237 = arith.constant 56 : index
    %c0_238 = arith.constant 0 : index
    %262 = vector.load %arg3[%c56_237, %c0_238] : memref<816x32xbf16, #tpu.memory_space<vmem>>, vector<84x32xbf16>
    %263 = arith.truncf %261 : vector<8x84xf32> to vector<8x84xbf16>
    %cst_239 = arith.constant dense<0.000000e+00> : vector<8x32xf32>
    %264 = tpu.matmul %263, %262, %cst_239 {dimension_numbers = #tpu.dot_dimension_numbers<[1], [0], [0], [1], [0, 0, 1, 1], [], []>} : vector<8x84xbf16>, vector<84x32xbf16>, vector<8x32xf32> -> vector<8x32xf32>
    %c1_240 = arith.constant 1 : index
    %c0_241 = arith.constant 0 : index
    %265 = vector.load %arg4[%c1_240, %c0_241] : memref<9x32xf32, #tpu.memory_space<vmem>>, vector<1x32xf32>
    %266 = vector.broadcast %265 : vector<1x32xf32> to vector<8x32xf32>
    %267 = arith.addf %264, %266 : vector<8x32xf32>
    %268 = math.tanh %267 : vector<8x32xf32>
    %cst_242 = arith.constant dense<0.000000e+00> : vector<32xf32>
    %269 = vector.multi_reduction <add>, %268, %cst_242 [0] : vector<8x32xf32> to vector<32xf32>
    %270 = vector.shape_cast %269 : vector<32xf32> to vector<1x32xf32>
    %cst_243 = arith.constant 8.000000e+00 : f32
    %271 = vector.broadcast %cst_243 : f32 to vector<1x32xf32>
    %272 = arith.divf %270, %271 : vector<1x32xf32>
    %c0_244 = arith.constant 0 : index
    %c0_245 = arith.constant 0 : index
    %273 = vector.load %arg11[%c0_244, %c0_245] : memref<1x80xf32, #tpu.memory_space<vmem>>, vector<1x32xf32>
    tpu.vector_store %arg11[%c0_244, %c0_245], %272 {strides = array<i32>} : memref<1x80xf32, #tpu.memory_space<vmem>>, vector<1x32xf32>,
    %cst_246 = arith.constant dense<0.000000e+00> : vector<32xf32>
    %274 = vector.multi_reduction <add>, %252, %cst_246 [0] : vector<16x32xf32> to vector<32xf32>
    %275 = vector.shape_cast %274 : vector<32xf32> to vector<1x32xf32>
    %cst_247 = arith.constant 1.600000e+01 : f32
    %276 = vector.broadcast %cst_247 : f32 to vector<1x32xf32>
    %277 = arith.divf %275, %276 : vector<1x32xf32>
    %c0_248 = arith.constant 0 : index
    %c32_249 = arith.constant 32 : index
    %278 = vector.load %arg11[%c0_248, %c32_249] : memref<1x80xf32, #tpu.memory_space<vmem>>, vector<1x32xf32>
    tpu.vector_store %arg11[%c0_248, %c32_249], %277 {strides = array<i32>} : memref<1x80xf32, #tpu.memory_space<vmem>>, vector<1x32xf32>,
    %c0_250 = arith.constant 0 : index
    %c64_251 = arith.constant 64 : index
    %279 = vector.load %arg11[%c0_250, %c64_251] : memref<1x80xf32, #tpu.memory_space<vmem>>, vector<1x16xf32>
    tpu.vector_store %arg11[%c0_250, %c64_251], %228 {strides = array<i32>} : memref<1x80xf32, #tpu.memory_space<vmem>>, vector<1x16xf32>,
    %c0_252 = arith.constant 0 : index
    %c0_253 = arith.constant 0 : index
    %280 = vector.load %arg11[%c0_252, %c0_253] : memref<1x80xf32, #tpu.memory_space<vmem>>, vector<1x80xf32>
    %c144_254 = arith.constant 144 : index
    %c0_255 = arith.constant 0 : index
    %281 = vector.load %arg3[%c144_254, %c0_255] : memref<816x32xbf16, #tpu.memory_space<vmem>>, vector<80x32xbf16>
    %282 = arith.truncf %280 : vector<1x80xf32> to vector<1x80xbf16>
    %cst_256 = arith.constant dense<0.000000e+00> : vector<1x32xf32>
    %283 = tpu.matmul %282, %281, %cst_256 {dimension_numbers = #tpu.dot_dimension_numbers<[1], [0], [0], [1], [0, 0, 1, 1], [], []>} : vector<1x80xbf16>, vector<80x32xbf16>, vector<1x32xf32> -> vector<1x32xf32>
    %c2_257 = arith.constant 2 : index
    %c0_258 = arith.constant 0 : index
    %284 = vector.load %arg4[%c2_257, %c0_258] : memref<9x32xf32, #tpu.memory_space<vmem>>, vector<1x32xf32>
    %285 = arith.addf %283, %284 : vector<1x32xf32>
    %286 = math.tanh %285 : vector<1x32xf32>
    %287 = vector.extract_strided_slice %286 {offsets = [0, 0], sizes = [1, 16], strides = [1, 1]} : vector<1x32xf32> to vector<1x16xf32>
    %288 = arith.truncf %268 : vector<8x32xf32> to vector<8x32xbf16>
    %cst_259 = arith.constant dense<0.000000e+00> : vector<32x32xf32>
    %289 = tpu.matmul %230, %288, %cst_259 {dimension_numbers = #tpu.dot_dimension_numbers<[1], [0], [0], [1], [0, 0, 1, 1], [], []>} : vector<32x8xbf16>, vector<8x32xbf16>, vector<32x32xf32> -> vector<32x32xf32>
    %290 = vector.extract_strided_slice %289 {offsets = [0, 0], sizes = [16, 32], strides = [1, 1]} : vector<32x32xf32> to vector<16x32xf32>
    %c0_260 = arith.constant 0 : index
    %c0_261 = arith.constant 0 : index
    %291 = vector.load %arg9[%c0_260, %c0_261] : memref<16x112xf32, #tpu.memory_space<vmem>>, vector<16x32xf32>
    tpu.vector_store %arg9[%c0_260, %c0_261], %290 {strides = array<i32>} : memref<16x112xf32, #tpu.memory_space<vmem>>, vector<16x32xf32>,
    %292 = vector.extract_strided_slice %289 {offsets = [16, 0], sizes = [16, 32], strides = [1, 1]} : vector<32x32xf32> to vector<16x32xf32>
    %c0_262 = arith.constant 0 : index
    %c32_263 = arith.constant 32 : index
    %293 = vector.load %arg9[%c0_262, %c32_263] : memref<16x112xf32, #tpu.memory_space<vmem>>, vector<16x32xf32>
    tpu.vector_store %arg9[%c0_262, %c32_263], %292 {strides = array<i32>} : memref<16x112xf32, #tpu.memory_space<vmem>>, vector<16x32xf32>,
    %c0_264 = arith.constant 0 : index
    %c64_265 = arith.constant 64 : index
    %294 = vector.load %arg9[%c0_264, %c64_265] : memref<16x112xf32, #tpu.memory_space<vmem>>, vector<16x32xf32>
    tpu.vector_store %arg9[%c0_264, %c64_265], %193 {strides = array<i32>} : memref<16x112xf32, #tpu.memory_space<vmem>>, vector<16x32xf32>,
    %295 = vector.shape_cast %287 : vector<1x16xf32> to vector<1x16xf32>
    %296 = vector.broadcast %295 : vector<1x16xf32> to vector<16x16xf32>
    %c0_266 = arith.constant 0 : index
    %c96_267 = arith.constant 96 : index
    %297 = vector.load %arg9[%c0_266, %c96_267] : memref<16x112xf32, #tpu.memory_space<vmem>>, vector<16x16xf32>
    tpu.vector_store %arg9[%c0_266, %c96_267], %296 {strides = array<i32>} : memref<16x112xf32, #tpu.memory_space<vmem>>, vector<16x16xf32>,
    %c0_268 = arith.constant 0 : index
    %c0_269 = arith.constant 0 : index
    %298 = vector.load %arg9[%c0_268, %c0_269] : memref<16x112xf32, #tpu.memory_space<vmem>>, vector<16x112xf32>
    %c224_270 = arith.constant 224 : index
    %c0_271 = arith.constant 0 : index
    %299 = vector.load %arg3[%c224_270, %c0_271] : memref<816x32xbf16, #tpu.memory_space<vmem>>, vector<112x32xbf16>
    %300 = arith.truncf %298 : vector<16x112xf32> to vector<16x112xbf16>
    %cst_272 = arith.constant dense<0.000000e+00> : vector<16x32xf32>
    %301 = tpu.matmul %300, %299, %cst_272 {dimension_numbers = #tpu.dot_dimension_numbers<[1], [0], [0], [1], [0, 0, 1, 1], [], []>} : vector<16x112xbf16>, vector<112x32xbf16>, vector<16x32xf32> -> vector<16x32xf32>
    %c3_273 = arith.constant 3 : index
    %c0_274 = arith.constant 0 : index
    %302 = vector.load %arg4[%c3_273, %c0_274] : memref<9x32xf32, #tpu.memory_space<vmem>>, vector<1x32xf32>
    %303 = vector.broadcast %302 : vector<1x32xf32> to vector<16x32xf32>
    %304 = arith.addf %301, %303 : vector<16x32xf32>
    %305 = math.tanh %304 : vector<16x32xf32>
    %306 = arith.truncf %305 : vector<16x32xf32> to vector<16x32xbf16>
    %cst_275 = arith.constant dense<0.000000e+00> : vector<8x32xf32>
    %307 = tpu.matmul %232, %306, %cst_275 {dimension_numbers = #tpu.dot_dimension_numbers<[1], [0], [0], [1], [0, 0, 1, 1], [], []>} : vector<8x16xbf16>, vector<16x32xbf16>, vector<8x32xf32> -> vector<8x32xf32>
    %c0_276 = arith.constant 0 : index
    %c0_277 = arith.constant 0 : index
    %308 = vector.load %arg10[%c0_276, %c0_277] : memref<8x112xf32, #tpu.memory_space<vmem>>, vector<8x32xf32>
    tpu.vector_store %arg10[%c0_276, %c0_277], %268 {strides = array<i32>} : memref<8x112xf32, #tpu.memory_space<vmem>>, vector<8x32xf32>,
    %c0_278 = arith.constant 0 : index
    %c32_279 = arith.constant 32 : index
    %309 = vector.load %arg10[%c0_278, %c32_279] : memref<8x112xf32, #tpu.memory_space<vmem>>, vector<8x32xf32>
    tpu.vector_store %arg10[%c0_278, %c32_279], %209 {strides = array<i32>} : memref<8x112xf32, #tpu.memory_space<vmem>>, vector<8x32xf32>,
    %c0_280 = arith.constant 0 : index
    %c64_281 = arith.constant 64 : index
    %310 = vector.load %arg10[%c0_280, %c64_281] : memref<8x112xf32, #tpu.memory_space<vmem>>, vector<8x32xf32>
    tpu.vector_store %arg10[%c0_280, %c64_281], %307 {strides = array<i32>} : memref<8x112xf32, #tpu.memory_space<vmem>>, vector<8x32xf32>,
    %311 = vector.shape_cast %287 : vector<1x16xf32> to vector<1x16xf32>
    %312 = vector.broadcast %311 : vector<1x16xf32> to vector<8x16xf32>
    %c0_282 = arith.constant 0 : index
    %c96_283 = arith.constant 96 : index
    %313 = vector.load %arg10[%c0_282, %c96_283] : memref<8x112xf32, #tpu.memory_space<vmem>>, vector<8x16xf32>
    tpu.vector_store %arg10[%c0_282, %c96_283], %312 {strides = array<i32>} : memref<8x112xf32, #tpu.memory_space<vmem>>, vector<8x16xf32>,
    %c0_284 = arith.constant 0 : index
    %c0_285 = arith.constant 0 : index
    %314 = vector.load %arg10[%c0_284, %c0_285] : memref<8x112xf32, #tpu.memory_space<vmem>>, vector<8x112xf32>
    %c336_286 = arith.constant 336 : index
    %c0_287 = arith.constant 0 : index
    %315 = vector.load %arg3[%c336_286, %c0_287] : memref<816x32xbf16, #tpu.memory_space<vmem>>, vector<112x32xbf16>
    %316 = arith.truncf %314 : vector<8x112xf32> to vector<8x112xbf16>
    %cst_288 = arith.constant dense<0.000000e+00> : vector<8x32xf32>
    %317 = tpu.matmul %316, %315, %cst_288 {dimension_numbers = #tpu.dot_dimension_numbers<[1], [0], [0], [1], [0, 0, 1, 1], [], []>} : vector<8x112xbf16>, vector<112x32xbf16>, vector<8x32xf32> -> vector<8x32xf32>
    %c4_289 = arith.constant 4 : index
    %c0_290 = arith.constant 0 : index
    %318 = vector.load %arg4[%c4_289, %c0_290] : memref<9x32xf32, #tpu.memory_space<vmem>>, vector<1x32xf32>
    %319 = vector.broadcast %318 : vector<1x32xf32> to vector<8x32xf32>
    %320 = arith.addf %317, %319 : vector<8x32xf32>
    %321 = math.tanh %320 : vector<8x32xf32>
    %cst_291 = arith.constant dense<0.000000e+00> : vector<32xf32>
    %322 = vector.multi_reduction <add>, %321, %cst_291 [0] : vector<8x32xf32> to vector<32xf32>
    %323 = vector.shape_cast %322 : vector<32xf32> to vector<1x32xf32>
    %cst_292 = arith.constant 8.000000e+00 : f32
    %324 = vector.broadcast %cst_292 : f32 to vector<1x32xf32>
    %325 = arith.divf %323, %324 : vector<1x32xf32>
    %c0_293 = arith.constant 0 : index
    %c0_294 = arith.constant 0 : index
    %326 = vector.load %arg11[%c0_293, %c0_294] : memref<1x80xf32, #tpu.memory_space<vmem>>, vector<1x32xf32>
    tpu.vector_store %arg11[%c0_293, %c0_294], %325 {strides = array<i32>} : memref<1x80xf32, #tpu.memory_space<vmem>>, vector<1x32xf32>,
    %cst_295 = arith.constant dense<0.000000e+00> : vector<32xf32>
    %327 = vector.multi_reduction <add>, %305, %cst_295 [0] : vector<16x32xf32> to vector<32xf32>
    %328 = vector.shape_cast %327 : vector<32xf32> to vector<1x32xf32>
    %cst_296 = arith.constant 1.600000e+01 : f32
    %329 = vector.broadcast %cst_296 : f32 to vector<1x32xf32>
    %330 = arith.divf %328, %329 : vector<1x32xf32>
    %c0_297 = arith.constant 0 : index
    %c32_298 = arith.constant 32 : index
    %331 = vector.load %arg11[%c0_297, %c32_298] : memref<1x80xf32, #tpu.memory_space<vmem>>, vector<1x32xf32>
    tpu.vector_store %arg11[%c0_297, %c32_298], %330 {strides = array<i32>} : memref<1x80xf32, #tpu.memory_space<vmem>>, vector<1x32xf32>,
    %c0_299 = arith.constant 0 : index
    %c64_300 = arith.constant 64 : index
    %332 = vector.load %arg11[%c0_299, %c64_300] : memref<1x80xf32, #tpu.memory_space<vmem>>, vector<1x16xf32>
    tpu.vector_store %arg11[%c0_299, %c64_300], %287 {strides = array<i32>} : memref<1x80xf32, #tpu.memory_space<vmem>>, vector<1x16xf32>,
    %c0_301 = arith.constant 0 : index
    %c0_302 = arith.constant 0 : index
    %333 = vector.load %arg11[%c0_301, %c0_302] : memref<1x80xf32, #tpu.memory_space<vmem>>, vector<1x80xf32>
    %c448_303 = arith.constant 448 : index
    %c0_304 = arith.constant 0 : index
    %334 = vector.load %arg3[%c448_303, %c0_304] : memref<816x32xbf16, #tpu.memory_space<vmem>>, vector<80x32xbf16>
    %335 = arith.truncf %333 : vector<1x80xf32> to vector<1x80xbf16>
    %cst_305 = arith.constant dense<0.000000e+00> : vector<1x32xf32>
    %336 = tpu.matmul %335, %334, %cst_305 {dimension_numbers = #tpu.dot_dimension_numbers<[1], [0], [0], [1], [0, 0, 1, 1], [], []>} : vector<1x80xbf16>, vector<80x32xbf16>, vector<1x32xf32> -> vector<1x32xf32>
    %c5_306 = arith.constant 5 : index
    %c0_307 = arith.constant 0 : index
    %337 = vector.load %arg4[%c5_306, %c0_307] : memref<9x32xf32, #tpu.memory_space<vmem>>, vector<1x32xf32>
    %338 = arith.addf %336, %337 : vector<1x32xf32>
    %339 = math.tanh %338 : vector<1x32xf32>
    %340 = vector.extract_strided_slice %339 {offsets = [0, 0], sizes = [1, 16], strides = [1, 1]} : vector<1x32xf32> to vector<1x16xf32>
    %341 = vector.extract_strided_slice %321 {offsets = [0, 0], sizes = [1, 32], strides = [1, 1]} : vector<8x32xf32> to vector<1x32xf32>
    %c0_308 = arith.constant 0 : index
    %c0_309 = arith.constant 0 : index
    %342 = vector.load %arg12[%c0_308, %c0_309] : memref<1x256xf32, #tpu.memory_space<vmem>>, vector<1x32xf32>
    tpu.vector_store %arg12[%c0_308, %c0_309], %341 {strides = array<i32>} : memref<1x256xf32, #tpu.memory_space<vmem>>, vector<1x32xf32>,
    %343 = vector.extract_strided_slice %321 {offsets = [1, 0], sizes = [1, 32], strides = [1, 1]} : vector<8x32xf32> to vector<1x32xf32>
    %c0_310 = arith.constant 0 : index
    %c32_311 = arith.constant 32 : index
    %344 = vector.load %arg12[%c0_310, %c32_311] : memref<1x256xf32, #tpu.memory_space<vmem>>, vector<1x32xf32>
    tpu.vector_store %arg12[%c0_310, %c32_311], %343 {strides = array<i32>} : memref<1x256xf32, #tpu.memory_space<vmem>>, vector<1x32xf32>,
    %345 = vector.extract_strided_slice %321 {offsets = [2, 0], sizes = [1, 32], strides = [1, 1]} : vector<8x32xf32> to vector<1x32xf32>
    %c0_312 = arith.constant 0 : index
    %c64_313 = arith.constant 64 : index
    %346 = vector.load %arg12[%c0_312, %c64_313] : memref<1x256xf32, #tpu.memory_space<vmem>>, vector<1x32xf32>
    tpu.vector_store %arg12[%c0_312, %c64_313], %345 {strides = array<i32>} : memref<1x256xf32, #tpu.memory_space<vmem>>, vector<1x32xf32>,
    %347 = vector.extract_strided_slice %321 {offsets = [3, 0], sizes = [1, 32], strides = [1, 1]} : vector<8x32xf32> to vector<1x32xf32>
    %c0_314 = arith.constant 0 : index
    %c96_315 = arith.constant 96 : index
    %348 = vector.load %arg12[%c0_314, %c96_315] : memref<1x256xf32, #tpu.memory_space<vmem>>, vector<1x32xf32>
    tpu.vector_store %arg12[%c0_314, %c96_315], %347 {strides = array<i32>} : memref<1x256xf32, #tpu.memory_space<vmem>>, vector<1x32xf32>,
    %349 = vector.extract_strided_slice %321 {offsets = [4, 0], sizes = [1, 32], strides = [1, 1]} : vector<8x32xf32> to vector<1x32xf32>
    %c0_316 = arith.constant 0 : index
    %c128 = arith.constant 128 : index
    %350 = vector.load %arg12[%c0_316, %c128] : memref<1x256xf32, #tpu.memory_space<vmem>>, vector<1x32xf32>
    tpu.vector_store %arg12[%c0_316, %c128], %349 {strides = array<i32>} : memref<1x256xf32, #tpu.memory_space<vmem>>, vector<1x32xf32>,
    %351 = vector.extract_strided_slice %321 {offsets = [5, 0], sizes = [1, 32], strides = [1, 1]} : vector<8x32xf32> to vector<1x32xf32>
    %c0_317 = arith.constant 0 : index
    %c160 = arith.constant 160 : index
    %352 = vector.load %arg12[%c0_317, %c160] : memref<1x256xf32, #tpu.memory_space<vmem>>, vector<1x32xf32>
    tpu.vector_store %arg12[%c0_317, %c160], %351 {strides = array<i32>} : memref<1x256xf32, #tpu.memory_space<vmem>>, vector<1x32xf32>,
    %353 = vector.extract_strided_slice %321 {offsets = [6, 0], sizes = [1, 32], strides = [1, 1]} : vector<8x32xf32> to vector<1x32xf32>
    %c0_318 = arith.constant 0 : index
    %c192 = arith.constant 192 : index
    %354 = vector.load %arg12[%c0_318, %c192] : memref<1x256xf32, #tpu.memory_space<vmem>>, vector<1x32xf32>
    tpu.vector_store %arg12[%c0_318, %c192], %353 {strides = array<i32>} : memref<1x256xf32, #tpu.memory_space<vmem>>, vector<1x32xf32>,
    %355 = vector.extract_strided_slice %321 {offsets = [7, 0], sizes = [1, 32], strides = [1, 1]} : vector<8x32xf32> to vector<1x32xf32>
    %c0_319 = arith.constant 0 : index
    %c224_320 = arith.constant 224 : index
    %356 = vector.load %arg12[%c0_319, %c224_320] : memref<1x256xf32, #tpu.memory_space<vmem>>, vector<1x32xf32>
    tpu.vector_store %arg12[%c0_319, %c224_320], %355 {strides = array<i32>} : memref<1x256xf32, #tpu.memory_space<vmem>>, vector<1x32xf32>,
    %c7 = arith.constant 7 : index
    %c0_321 = arith.constant 0 : index
    %357 = vector.load %arg4[%c7, %c0_321] : memref<9x32xf32, #tpu.memory_space<vmem>>, vector<1x32xf32>
    %c528 = arith.constant 528 : index
    %c0_322 = arith.constant 0 : index
    %358 = vector.load %arg3[%c528, %c0_322] : memref<816x32xbf16, #tpu.memory_space<vmem>>, vector<32x32xbf16>
    %359 = arith.truncf %357 : vector<1x32xf32> to vector<1x32xbf16>
    %cst_323 = arith.constant dense<0.000000e+00> : vector<1x32xf32>
    %360 = tpu.matmul %359, %358, %cst_323 {dimension_numbers = #tpu.dot_dimension_numbers<[1], [0], [0], [1], [0, 0, 1, 1], [], []>} : vector<1x32xbf16>, vector<32x32xbf16>, vector<1x32xf32> -> vector<1x32xf32>
    %c0_324 = arith.constant 0 : index
    %c0_325 = arith.constant 0 : index
    %361 = vector.load %arg12[%c0_324, %c0_325] : memref<1x256xf32, #tpu.memory_space<vmem>>, vector<1x256xf32>
    %c560 = arith.constant 560 : index
    %c0_326 = arith.constant 0 : index
    %362 = vector.load %arg3[%c560, %c0_326] : memref<816x32xbf16, #tpu.memory_space<vmem>>, vector<256x32xbf16>
    %363 = arith.truncf %361 : vector<1x256xf32> to vector<1x256xbf16>
    %cst_327 = arith.constant dense<0.000000e+00> : vector<1x32xf32>
    %364 = tpu.matmul %363, %362, %cst_327 {dimension_numbers = #tpu.dot_dimension_numbers<[1], [0], [0], [1], [0, 0, 1, 1], [], []>} : vector<1x256xbf16>, vector<256x32xbf16>, vector<1x32xf32> -> vector<1x32xf32>
    %365 = arith.addf %360, %364 : vector<1x32xf32>
    %c6 = arith.constant 6 : index
    %c0_328 = arith.constant 0 : index
    %366 = vector.load %arg4[%c6, %c0_328] : memref<9x32xf32, #tpu.memory_space<vmem>>, vector<1x32xf32>
    %367 = arith.addf %365, %366 : vector<1x32xf32>
    %cst_329 = arith.constant 0.000000e+00 : f32
    %368 = vector.broadcast %cst_329 : f32 to vector<1x32xf32>
    %369 = arith.maximumf %367, %368 : vector<1x32xf32>
    %c0_330 = arith.constant 0 : index
    %c0_331 = arith.constant 0 : index
    %370 = vector.load %arg5[%c0_330, %c0_331] : memref<32x288xbf16, #tpu.memory_space<vmem>>, vector<32x288xbf16>
    %371 = arith.truncf %369 : vector<1x32xf32> to vector<1x32xbf16>
    %cst_332 = arith.constant dense<0.000000e+00> : vector<1x288xf32>
    %372 = tpu.matmul %371, %370, %cst_332 {dimension_numbers = #tpu.dot_dimension_numbers<[1], [0], [0], [1], [0, 0, 1, 1], [], []>} : vector<1x32xbf16>, vector<32x288xbf16>, vector<1x288xf32> -> vector<1x288xf32>
    %c0_333 = arith.constant 0 : index
    %c0_334 = arith.constant 0 : index
    %373 = vector.load %arg6[%c0_333, %c0_334] : memref<1x288xf32, #tpu.memory_space<vmem>>, vector<1x288xf32>
    %374 = arith.addf %372, %373 : vector<1x288xf32>
    %c0_335 = arith.constant 0 : index
    %c0_336 = arith.constant 0 : index
    %375 = vector.load %arg7[%c0_335, %c0_336] : memref<1x288xf32, #tpu.memory_space<vmem>>, vector<1x288xf32>
    tpu.vector_store %arg7[%c0_335, %c0_336], %374 {strides = array<i32>} : memref<1x288xf32, #tpu.memory_space<vmem>>, vector<1x288xf32>,
    %c0_337 = arith.constant 0 : index
    %c0_338 = arith.constant 0 : index
    %376 = vector.load %arg8[%c0_337, %c0_338] : memref<1x16xf32, #tpu.memory_space<vmem>>, vector<1x16xf32>
    tpu.vector_store %arg8[%c0_337, %c0_338], %340 {strides = array<i32>} : memref<1x16xf32, #tpu.memory_space<vmem>>, vector<1x16xf32>,
    return
  }
}

</mosaic_0001>

<bundles_post_ra>
// kernel: tpu_custom_call.1
= control target key start
LH: loop header
LB: loop body
LE: loop exit
PB: predicated region body
PF: predicated region fallthrough
CT: control target
= control target key end

     0   :  { %14 = vsyncpa [#allocation7], 0  ;;  %vm56_vm0 = vcmask 1043456   ;;  %vm5531_vm1 = vcmask 31744   ;;  %vm49_vm2 = vcmask 64512   ;;  %s5515_s0 = inlined_call_operand.vmem [shape: f32[3,8,4], index: 0, kind: input, shape index: {}]   ;;  %s5516_s1 = inlined_call_operand.vmem [shape: bf16[3,32,8], index: 1, kind: input, shape index: {}]   ;;  %s5517_s2 = inlined_call_operand.vmem [shape: bf16[3,8,16], index: 2, kind: input, shape index: {}]   ;;  %s5518_s3 = inlined_call_operand.vmem [shape: bf16[816,32], index: 3, kind: input, shape index: {}]   ;;  %s5519_s4 = inlined_call_operand.vmem [shape: f32[9,32], index: 4, kind: input, shape index: {}]   ;;  %s5520_s5 = inlined_call_operand.vmem [shape: bf16[32,288], index: 5, kind: input, shape index: {}]   ;;  %s5521_s6 = inlined_call_operand.vmem [shape: f32[1,288], index: 6, kind: input, shape index: {}]   ;;  %s5522_s7 = inlined_call_operand.hbm [shape: f32[1,288], index: 7, kind: output, shape index: {0}]   ;;  %s5523_s8 = inlined_call_operand.hbm [shape: f32[1,16], index: 8, kind: output, shape index: {1}]  }
   0x1   :  { %v37_v0 = vld [vmem:[%s5515_s0] sm:$0xff]  ;;  %v4442_v3 = vld [vmem:[%s5516_s1 + $0x8] sm:$0xff]  }
   0x2   :  { %v4436_v1 = vld [vmem:[%s5516_s1] sm:$0xff]   ;;  %v38_v2 = vpack.c.bf16 %v37_v0, %v37_v0  ;;  %268 = vst.msk [vmem:[#allocation3] sm:$0xff] %vm5531_vm1, %v37_v0 }
   0x3   :  { %3759 = vmatprep.mubr.msk.bf16.mxu0 %vm49_vm2, %v4436_v1 }
   0x4   :  { %4121 = vmatprep.subr.msk.bf16.mxu0 %vm56_vm0, %v38_v2  ;;  %v58_v4 = vsel %vm56_vm0, %v38_v2, 0 }
   0x5   :  { %3758 = vmatpush3.bf16.msra.mxu0 %v58_v4 }
   0x8   :  { %3760 = vmatmul.mubr.msk.bf16.vlgmr.msra.gmra.mrb[0].mxu0 %vm49_vm2, %v4442_v3 }
   0x9   :  { %15 = vsyncpa [#allocation9], 0  ;;  %v126_v5 = vlaneseq  ;;  %v4459_v8 = vld [vmem:[%s5519_s4 + $0x8] sm:$0x1]  ;;  %s4371_s13 = smov 40   ;;  %v4143_v10 = vld [vmem:[%s5518_s3] sm:$0xff]  }
   0xa   :  { %v4372_v11 = vmov 0.0   ;;  %v4144_v12 = vld [vmem:[%s5518_s3 + $0x8] sm:$0xff]   ;;  %v4145_v13 = vld [vmem:[%s5518_s3 + $0x10] sm:$0xff]   ;;  %v4146_v14 = vld [vmem:[%s5518_s3 + $0x18] ss:$0 sps:$4 sm:$0xff]   ;;  %vm4373_vm3 = vmmov 0  }
   0xb   :  { %v4451_v6 = vshrl.u32 %v126_v5, 7  ;;  %3763 = vmatprep.subr.bf16.mxu1 %v4372_v11  ;;  %3775 = vmatprep.subr.bf16.mxu0 %v4372_v11  ;;  %v178_v15 = vsel %vm56_vm0, %v4146_v14, 0  ;;  %s4374_s22 = smov 4   ;;  %vm5533_vm4 = vcmask 64544   ;;  %vm5532_vm5 = vcmask 326720   ;;  %s4375_s27 = smov 68  }
   0xc   :  { %3764 = vmatpush3.bf16.msra.mxu1 %v4143_v10  ;;  %3771 = vmatprep.mubr.msk.bf16.mxu1 %vm4373_vm3, %v4372_v11  ;;  %vm5529_vm6 = vcmask 458048   ;;  %vm5528_vm7 = vcmask 457728   ;;  %v4508_v26 = vld [vmem:[%s5519_s4] ss:$0 sm:$0xff]  ;;  %vm224_vm8 = vcmask 130048   ;;  %vm5530_vm9 = vcmask 293920  }
   0xd   :  { %v4454_v7 = vsub.s32 0, %v4451_v6  ;;  %3765 = vmatprep.subr.bf16.mxu1 %v4372_v11  ;;  %3777 = vmatprep.mubr.msk.bf16.mxu0 %vm4373_vm3, %v4372_v11  ;;  %v4521_v36 = vld [vmem:[%s5517_s2] sm:$0xf]  ;;  %270 = vst.msk [vmem:[#allocation3] sm:$0xff] %vm5530_vm9, %v4372_v11  ;;  %v4148_v38 = vld [vmem:[%s5518_s3 + $0x24] sm:$0xff]   ;;  %v4149_v39 = vld [vmem:[%s5518_s3 + $0x2c] sm:$0xff]  }
   0xe   :  { %v4147_v37 = vld [vmem:[%s5518_s3 + $0x1c] sm:$0xff]   ;;  %vm382_vm10 = vcmask 261120   ;;  %v4150_v45 = vld [vmem:[%s5518_s3 + $0x34] sm:$0xff]   ;;  %v4152_v49 = vld [vmem:[%s5518_s3 + $0x44] ss:$0 sps:$4 sm:$0x33]  }
   0xf   :  { %v4463_v9 = vrot.slane %v4459_v8, %v4454_v7  ;;  %v4151_v47 = vld [vmem:[%s5518_s3 + $0x3c] sm:$0xff]   ;;  %vm5527_vm11 = vcmask 1041408   ;;  %s4376_s19 = smov 64   ;;  %s4377_s20 = smov 36   ;;  %vm5526_vm12 = vcmask 556320   ;;  %vm5525_vm13 = vcmask 687648  }
  0x10   :  { %3766 = vmatpush3.bf16.msra.mxu1 %v4144_v12  ;;  %v339_v50 = vsel %vm5527_vm11, %v4152_v49, 0  ;;  %s4378_s21 = smov 32   ;;  %vm5524_vm14 = vcmask 687104   ;;  %v4153_v62 = vld [vmem:[%s5518_s3 + $0x48] sm:$0xff]   ;;  %v4154_v63 = vld [vmem:[%s5518_s3 + $0x50] sm:$0xff]   ;;  %v4155_v0 = vld [vmem:[%s5518_s3 + $0x58] sm:$0xff]  }
  0x11   :  { %131 = vrot.lane.b32.xlu1 %v4463_v9, %s4371_s13  ;;  %3767 = vmatprep.subr.bf16.mxu1 %v4372_v11  ;;  %v4157_v2 = vld [vmem:[%s5518_s3 + $0x68] sm:$0xff]   ;;  %v4592_v4 = vld [vmem:[%s5519_s4 + $0x1] ss:$0 sm:$0xff]  ;;  %vm392_vm15 = vcmask 253952   ;;  %vm568_vm11 = vcmask 523520   ;;  %s4379_s15 = smov 96  }
  0x12   :  { %vm5534_vm9 = vcmask 916480   ;;  %s4380_s18 = smov 8  }
  0x14   :  { %3768 = vmatpush3.bf16.msra.mxu1 %v4145_v13 }
  0x15   :  { %3769 = vmatprep.subr.bf16.mxu1 %v4372_v11 }
  0x18   :  { %3770 = vmatpush3.bf16.msra.mxu1 %v178_v15 }
  0x19   :  { %3797 = vmatprep.subr.bf16.mxu1 %v4372_v11 }
  0x83   :  { %v132_v21 = vpop.permute.xlu1 %131 }
  0xdb   :  { %v3761_v16 = vpop.f32.mrb[0].mxu0 }
  0xdc   :  { %114 = vrot.lane.b32.xlu0 %v3761_v16, %s4374_s22  ;;  %v94_v17 = vpop.f32.mrb[1].mxu0 }
  0xdd   :  { %110 = vst.msk [vmem:[#allocation2] sm:$0xff] %vm5531_vm1, %v94_v17  ;;  %v3762_v18 = vpop.f32.mrb[2].mxu0 }
  0xde   :  { %v97_v19 = vpop.f32.mrb[3].mxu0 }
  0xdf   :  { %111 = vst.msk [vmem:[#allocation2 + $0x8] sm:$0xff] %vm5531_vm1, %v97_v19 }
  0xe0   :  { %116 = vrot.lane.b32.xlu0 %v3762_v18, %s4374_s22 }
  0xe4   :  { %277 = vrot.lane.b32.xlu0 %v4463_v9, %s4375_s27 }
  0xe8   :  { %412 = vrot.lane.b32.xlu0 %v4459_v8, %s4376_s19 }
 0x14e   :  { %v115_v20 = vpop.permute.xlu0 %114 }
 0x14f   :  { %121 = vst.msk [vmem:[#allocation2] sm:$0xff] %vm5533_vm4, %v115_v20 }
 0x150   :  { %124 = vst.msk [vmem:[#allocation2] sm:$0xff] %vm5532_vm5, %v4372_v11 }
 0x151   :  { %135 = vst.msk [vmem:[#allocation2] sm:$0xff] %vm5529_vm6, %v132_v21 }
 0x152   :  { %v117_v22 = vpop.permute.xlu0 %116 }
 0x153   :  { %122 = vst.msk [vmem:[#allocation2 + $0x8] sm:$0xff] %vm5533_vm4, %v117_v22 }
 0x154   :  { %125 = vst.msk [vmem:[#allocation2 + $0x8] sm:$0xff] %vm5532_vm5, %v4372_v11 }
 0x155   :  { %136 = vst.msk [vmem:[#allocation2 + $0x8] sm:$0xff] %vm5529_vm6, %v132_v21  ;;  %vm5535_vm6 = vcmask 917248  }
 0x156   :  { %v278_v58 = vpop.permute.xlu0 %277 }
 0x158   :  { %v137_v23 = vld [vmem:[#allocation2] sm:$0xff] }
 0x15c   :  { %v138_v24 = vld [vmem:[#allocation2 + $0x8] sm:$0xff] }
 0x15d   :  { %v146_v25 = vpack.c.bf16 %v138_v24, %v137_v23 }
 0x15f   :  { %3772 = vmatmul.mubr.msk.bf16.vlgmr.msra.gmra.mrb[0].mxu1 %vm5528_vm7, %v146_v25  ;;  %v413_v25 = vpop.permute.xlu0 %412  ;;  %vm571_vm7 = vcmask 785920  }
 0x160   :  { %3807 = vmatprep.mubr.msk.bf16.mxu1 %vm4373_vm3, %v4372_v11  ;;  %3798 = vmatpush3.bf16.msra.mxu1 %v4153_v62 }
 0x161   :  { %3799 = vmatprep.subr.bf16.mxu1 %v4372_v11 }
 0x164   :  { %3800 = vmatpush3.bf16.msra.mxu1 %v4154_v63 }
 0x165   :  { %3801 = vmatprep.subr.bf16.mxu1 %v4372_v11 }
 0x168   :  { %3802 = vmatpush3.bf16.msra.mxu1 %v4155_v0 }
 0x169   :  { %3803 = vmatprep.subr.bf16.mxu1 %v4372_v11 }
 0x232   :  { %v214_v27 = vpop.f32.mrb[0].mxu1 }
 0x233   :  { %v215_v28 = vadd.f32 %v4508_v26, %v214_v27  ;;  %v3773_v29 = vpop.f32.mrb[1].mxu1 }
 0x234   :  { %v217_v30 = vpop.f32.mrb[2].mxu1  ;;  %v4158_v29 = vld [vmem:[%s5518_s3 + $0x70] sm:$0xff]  }
 0x235   :  { %v218_v31 = vadd.f32 %v4508_v26, %v217_v30  ;;  %v3774_v32 = vpop.f32.mrb[3].mxu1  ;;  %4275 = vtanh.f32 %v215_v28  ;;  %v4159_v30 = vld [vmem:[%s5518_s3 + $0x78] sm:$0xff]  }
 0x236   :  { %v4161_v32 = vld [vmem:[%s5518_s3 + $0x88] sm:$0xff]  }
 0x237   :  { %4277 = vtanh.f32 %v218_v31  ;;  %v4160_v31 = vld [vmem:[%s5518_s3 + $0x80] sm:$0xff]  }
 0x23f   :  { %v4512_v33 = vpop.eup %4275 }
 0x240   :  { %v394_v41 = vsel %vm382_vm10, %v4512_v33, 0.0 }
 0x241   :  { %v4514_v34 = vpop.eup %4277 }
 0x242   :  { %v223_v35 = vpack.c.bf16 %v4514_v34, %v4512_v33  ;;  %v395_v40 = vsel %vm382_vm10, %v4514_v34, 0.0 }
 0x243   :  { %v396_v42 = vadd.f32 %v395_v40, %v394_v41  ;;  %v429_v41 = vld [vmem:[%s5519_s4 + $0x2] sm:$0x1] }
 0x244   :  { %3776 = vmatpush3.bf16.msra.mxu0 %v223_v35  ;;  %v4162_v35 = vld [vmem:[%s5518_s3 + $0x90] sm:$0xff]  }
 0x245   :  { %3781 = vmatprep.subr.bf16.mxu0 %v4372_v11  ;;  %v397_v43 = vrot.slane %v396_v42, 4 }
 0x247   :  { %3778 = vmatmul.mubr.msk.bf16.vlgmr.msra.gmra.mrb[4].mxu0 %vm224_vm8, %v4521_v36  ;;  %v398_v44 = vadd.f32 %v397_v43, %v396_v42 }
 0x248   :  { %3793 = vmatprep.mubr.msk.bf16.mxu0 %vm4373_vm3, %v4372_v11  ;;  %3782 = vmatpush3.bf16.msra.mxu0 %v4147_v37 }
 0x249   :  { %3783 = vmatprep.subr.bf16.mxu0 %v4372_v11  ;;  %v399_v46 = vrot.slane %v398_v44, 2 }
 0x24b   :  { %v400_v48 = vadd.f32 %v399_v46, %v398_v44 }
 0x24c   :  { %3784 = vmatpush3.bf16.msra.mxu0 %v4148_v38 }
 0x24d   :  { %3785 = vmatprep.subr.bf16.mxu0 %v4372_v11  ;;  %v401_v51 = vrot.slane %v400_v48, 1 }
 0x24f   :  { %v402_v52 = vadd.f32 %v401_v51, %v400_v48  ;;  %v4164_v48 = vld [vmem:[%s5518_s3 + $0xa0] sm:$0xff]  }
 0x250   :  { %3786 = vmatpush3.bf16.msra.mxu0 %v4149_v39 }
 0x251   :  { %3787 = vmatprep.subr.bf16.mxu0 %v4372_v11  ;;  %v404_v57 = vmul.f32 0.0625, %v402_v52 }
 0x254   :  { %3788 = vmatpush3.bf16.msra.mxu0 %v4150_v45 }
 0x255   :  { %3789 = vmatprep.subr.bf16.mxu0 %v4372_v11 }
 0x258   :  { %3790 = vmatpush3.bf16.msra.mxu0 %v4151_v47  ;;  %v4163_v47 = vld [vmem:[%s5518_s3 + $0x98] sm:$0xff]  }
 0x259   :  { %3791 = vmatprep.subr.bf16.mxu0 %v4372_v11 }
 0x25c   :  { %3792 = vmatpush3.bf16.msra.mxu0 %v339_v50 }
 0x31a   :  { %v262_v53 = vpop.f32.mrb[4].mxu0 }
 0x31b   :  { %272 = vrot.lane.b32.xlu1 %v262_v53, %s4377_s20  ;;  %v3779_v54 = vpop.f32.mrb[5].mxu0 }
 0x31c   :  { %v265_v55 = vpop.f32.mrb[6].mxu0 }
 0x31d   :  { %v3780_v56 = vpop.f32.mrb[7].mxu0 }
 0x31f   :  { %406 = vrot.lane.b32.xlu1 %v404_v57, %s4378_s21  ;;  %v4676_v57 = vld [vmem:[%s5519_s4 + $0x3] ss:$0 sm:$0xff] }
 0x38d   :  { %v273_v59 = vpop.permute.xlu1 %272 }
 0x38e   :  { %276 = vst.msk [vmem:[#allocation3] sm:$0xff] %vm5526_vm12, %v273_v59  ;;  %vm460_vm12 = vcmask 654336  }
 0x38f   :  { %281 = vst.msk [vmem:[#allocation3] sm:$0xff] %vm5525_vm13, %v278_v58  ;;  %vm415_vm13 = vcmask 647680  }
 0x391   :  { %v407_v27 = vpop.permute.xlu1 %406 }
 0x396   :  { %v282_v60 = vld [vmem:[#allocation3] sm:$0xff] }
 0x397   :  { %v294_v61 = vpack.c.bf16 %v282_v60, %v282_v60 }
 0x399   :  { %3794 = vmatmul.mubr.msk.bf16.vlgmr.msra.gmra.mrb[8].mxu0 %vm5524_vm14, %v294_v61  ;;  %vm409_vm14 = vcmask 516352  }
 0x39a   :  { %3813 = vmatprep.mubr.msk.bf16.mxu0 %vm49_vm2, %v4436_v1  ;;  %v4156_v1 = vld [vmem:[%s5518_s3 + $0x60] sm:$0xff]  }
 0x39b   :  { %3804 = vmatpush3.bf16.msra.mxu1 %v4156_v1 }
 0x39c   :  { %3805 = vmatprep.subr.bf16.mxu1 %v4372_v11 }
 0x39f   :  { %3806 = vmatpush3.bf16.msra.mxu1 %v4157_v2 }
 0x3a0   :  { %3817 = vmatprep.subr.bf16.mxu1 %v4372_v11 }
 0x46c   :  { %v375_v8 = vpop.f32.mrb[8].mxu0 }
 0x46d   :  { %v376_v9 = vadd.f32 %v4592_v4, %v375_v8  ;;  %v3795_v10 = vpop.f32.mrb[9].mxu0 }
 0x46e   :  { %v378_v12 = vpop.f32.mrb[10].mxu0 }
 0x46f   :  { %4279 = vtanh.f32 %v376_v9  ;;  %v3796_v13 = vpop.f32.mrb[11].mxu0 }
 0x479   :  { %v4595_v14 = vpop.eup %4279 }
 0x47a   :  { %737 = vst.msk [vmem:[#allocation3] sm:$0xff] %vm382_vm10, %v4595_v14  ;;  %v505_v15 = vpack.c.bf16 %v4595_v14, %v4595_v14  ;;  %v383_v16 = vsel %vm382_vm10, %v4595_v14, 0.0 }
 0x47b   :  { %v384_v17 = vrot.slane %v383_v16, 4  ;;  %738 = vst.msk [vmem:[#allocation3] sm:$0xff] %vm568_vm11, %v4372_v11 }
 0x47c   :  { %4122 = vmatprep.subr.msk.bf16.mxu0 %vm56_vm0, %v505_v15  ;;  %v507_v18 = vsel %vm56_vm0, %v505_v15, 0 }
 0x47d   :  { %3812 = vmatpush3.bf16.msra.mxu0 %v507_v18  ;;  %v385_v19 = vadd.f32 %v384_v17, %v383_v16 }
 0x47e   :  { %3835 = vmatprep.subr.bf16.mxu0 %v4372_v11 }
 0x47f   :  { %v386_v20 = vrot.slane %v385_v19, 2 }
 0x480   :  { %3814 = vmatmul.mubr.msk.bf16.vlgmr.msra.gmra.mrb[12].mxu0 %vm49_vm2, %v4442_v3 }
 0x481   :  { %v387_v21 = vadd.f32 %v386_v20, %v385_v19  ;;  %3837 = vmatprep.mubr.msk.bf16.mxu0 %vm4373_vm3, %v4372_v11  ;;  %v4165_v20 = vld [vmem:[%s5518_s3 + $0xa8] sm:$0xff]  }
 0x483   :  { %v388_v22 = vrot.slane %v387_v21, 1 }
 0x485   :  { %v389_v23 = vadd.f32 %v388_v22, %v387_v21  ;;  %v4167_v21 = vld [vmem:[%s5518_s3 + $0xb8] sm:$0xff]   ;;  %v4169_v22 = vld [vmem:[%s5518_s3 + $0xc8] sm:$0xff]  }
 0x487   :  { %v391_v24 = vmul.f32 0.125, %v389_v23  ;;  %v4170_v23 = vld [vmem:[%s5518_s3 + $0xd0] sm:$0xff]  }
 0x489   :  { %393 = vst.msk [vmem:[#allocation4] sm:$0x1] %vm392_vm15, %v391_v24  ;;  %v4171_v24 = vld [vmem:[%s5518_s3 + $0xd8] sm:$0xff]  }
 0x48a   :  { %410 = vst.msk [vmem:[#allocation4] sm:$0x1] %vm409_vm14, %v407_v27 }
 0x48b   :  { %416 = vst.msk [vmem:[#allocation4] sm:$0x1] %vm415_vm13, %v413_v25  ;;  %v3441_v25 = vld [vmem:[%s5515_s0 + $0x8] sm:$0xff] }
 0x492   :  { %v417_v28 = vld [vmem:[#allocation4] sm:$0x1] }
 0x493   :  { %v428_v3 = vpack.c.bf16 %v417_v28, %v417_v28  ;;  %v977_v28 = vpack.c.bf16 %v3441_v25, %v3441_v25 }
 0x495   :  { %3808 = vmatmul.mubr.msk.bf16.vlgmr.msra.gmra.mrb[4].mxu1 %vm460_vm12, %v428_v3 }
 0x496   :  { %3831 = vmatprep.mubr.msk.bf16.mxu1 %vm4373_vm3, %v4372_v11  ;;  %3818 = vmatpush3.bf16.msra.mxu1 %v4158_v29 }
 0x497   :  { %3819 = vmatprep.subr.bf16.mxu1 %v4372_v11 }
 0x49a   :  { %3820 = vmatpush3.bf16.msra.mxu1 %v4159_v30 }
 0x49b   :  { %3821 = vmatprep.subr.bf16.mxu1 %v4372_v11 }
 0x49e   :  { %3822 = vmatpush3.bf16.msra.mxu1 %v4160_v31 }
 0x49f   :  { %3823 = vmatprep.subr.bf16.mxu1 %v4372_v11 }
 0x4a2   :  { %3824 = vmatpush3.bf16.msra.mxu1 %v4161_v32 }
 0x4a3   :  { %3825 = vmatprep.subr.bf16.mxu1 %v4372_v11 }
 0x4a6   :  { %3826 = vmatpush3.bf16.msra.mxu1 %v4162_v35  ;;  %v4738_v35 = vld [vmem:[%s5516_s1 + $0x10] sm:$0xff]  }
 0x4a7   :  { %3827 = vmatprep.subr.bf16.mxu1 %v4372_v11 }
 0x4aa   :  { %3828 = vmatpush3.bf16.msra.mxu1 %v4163_v47 }
 0x4ab   :  { %3829 = vmatprep.subr.bf16.mxu1 %v4372_v11 }
 0x4ae   :  { %3830 = vmatpush3.bf16.msra.mxu1 %v4164_v48 }
 0x4af   :  { %3859 = vmatprep.subr.bf16.mxu1 %v4372_v11 }
 0x553   :  { %v3815_v37 = vpop.f32.mrb[12].mxu0 }
 0x554   :  { %v543_v38 = vpop.f32.mrb[13].mxu0  ;;  %562 = vrot.lane.b32.xlu1 %v3815_v37, %s4378_s21 }
 0x555   :  { %558 = vst.msk [vmem:[#allocation2] sm:$0xff] %vm382_vm10, %v543_v38  ;;  %v3816_v39 = vpop.f32.mrb[14].mxu0  ;;  %v995_v38 = vsel %vm56_vm0, %v977_v28, 0 }
 0x556   :  { %v546_v40 = vpop.f32.mrb[15].mxu0  ;;  %564 = vrot.lane.b32.xlu0 %v3816_v39, %s4378_s21  ;;  %v4749_v39 = vld [vmem:[%s5516_s1 + $0x18] sm:$0xff]  }
 0x557   :  { %559 = vst.msk [vmem:[#allocation2 + $0x8] sm:$0xff] %vm382_vm10, %v546_v40  ;;  %v4174_v40 = vld [vmem:[%s5518_s3 + $0xe0] sm:$0xff]  }
 0x568   :  { %v498_v42 = vpop.f32.mrb[4].mxu1 }
 0x569   :  { %v499_v43 = vadd.f32 %v498_v42, %v429_v41  ;;  %v3809_v44 = vpop.f32.mrb[5].mxu1  ;;  %v4175_v41 = vld [vmem:[%s5518_s3 + $0xe8] sm:$0xff]   ;;  %v4176_v42 = vld [vmem:[%s5518_s3 + $0xf0] sm:$0xff]  }
 0x56a   :  { %v501_v45 = vpop.f32.mrb[6].mxu1  ;;  %v4178_v44 = vld [vmem:[%s5518_s3 + $0x100] sm:$0xff]  }
 0x56b   :  { %4281 = vtanh.f32 %v499_v43  ;;  %v3810_v46 = vpop.f32.mrb[7].mxu1  ;;  %v4177_v43 = vld [vmem:[%s5518_s3 + $0xf8] sm:$0xff]   ;;  %v4778_v45 = vld [vmem:[%s5519_s4 + $0x4] ss:$0 sm:$0xff] }
 0x575   :  { %v4653_v49 = vpop.eup %4281 }
 0x576   :  { %v577_v50 = vrot.slane %v4653_v49, %v4454_v7 }
 0x578   :  { %579 = vrot.lane.b32.xlu1 %v577_v50, %s4379_s15 }
 0x5c6   :  { %v563_v51 = vpop.permute.xlu1 %562 }
 0x5c7   :  { %569 = vst.msk [vmem:[#allocation2] sm:$0xff] %vm568_vm11, %v563_v51 }
 0x5c8   :  { %572 = vst.msk [vmem:[#allocation2] sm:$0xff] %vm571_vm7, %v4372_v11  ;;  %v565_v52 = vpop.permute.xlu0 %564 }
 0x5c9   :  { %570 = vst.msk [vmem:[#allocation2 + $0x8] sm:$0xff] %vm568_vm11, %v565_v52 }
 0x5ca   :  { %573 = vst.msk [vmem:[#allocation2 + $0x8] sm:$0xff] %vm571_vm7, %v4372_v11 }
 0x5ea   :  { %v4664_v53 = vpop.permute.xlu1 %579 }
 0x5eb   :  { %583 = vst.msk [vmem:[#allocation2] sm:$0xff] %vm5535_vm6, %v4664_v53  ;;  %584 = vst.msk [vmem:[#allocation2 + $0x8] sm:$0xff] %vm5535_vm6, %v4664_v53 }
 0x5f2   :  { %v585_v54 = vld [vmem:[#allocation2] sm:$0xff]  ;;  %v586_v55 = vld [vmem:[#allocation2 + $0x8] sm:$0xff] }
 0x5f3   :  { %v601_v56 = vpack.c.bf16 %v586_v55, %v585_v54 }
 0x5f5   :  { %3832 = vmatmul.mubr.msk.bf16.vlgmr.msra.gmra.mrb[8].mxu1 %vm5534_vm9, %v601_v56 }
 0x5f6   :  { %3869 = vmatprep.mubr.msk.bf16.mxu1 %vm4373_vm3, %v4372_v11  ;;  %3860 = vmatpush3.bf16.msra.mxu1 %v4174_v40 }
 0x5f7   :  { %3861 = vmatprep.subr.bf16.mxu1 %v4372_v11 }
 0x5fa   :  { %3862 = vmatpush3.bf16.msra.mxu1 %v4175_v41 }
 0x5fb   :  { %3863 = vmatprep.subr.bf16.mxu1 %v4372_v11 }
 0x5fe   :  { %3864 = vmatpush3.bf16.msra.mxu1 %v4176_v42 }
 0x5ff   :  { %3865 = vmatprep.subr.bf16.mxu1 %v4372_v11 }
 0x602   :  { %3866 = vmatpush3.bf16.msra.mxu1 %v4177_v43 }
 0x603   :  { %3867 = vmatprep.subr.bf16.mxu1 %v4372_v11 }
 0x606   :  { %3868 = vmatpush3.bf16.msra.mxu1 %v4178_v44 }
 0x607   :  { %3879 = vmatprep.subr.bf16.mxu1 %v4372_v11 }
 0x6c8   :  { %v687_v58 = vpop.f32.mrb[8].mxu1 }
 0x6c9   :  { %v688_v59 = vadd.f32 %v4676_v57, %v687_v58  ;;  %v3833_v60 = vpop.f32.mrb[9].mxu1 }
 0x6ca   :  { %v690_v61 = vpop.f32.mrb[10].mxu1 }
 0x6cb   :  { %4283 = vtanh.f32 %v688_v59  ;;  %v691_v62 = vadd.f32 %v4676_v57, %v690_v61  ;;  %v3834_v63 = vpop.f32.mrb[11].mxu1 }
 0x6cd   :  { %4285 = vtanh.f32 %v691_v62 }
 0x6d5   :  { %v4680_v0 = vpop.eup %4283 }
 0x6d6   :  { %v861_v8 = vsel %vm382_vm10, %v4680_v0, 0.0 }
 0x6d7   :  { %v4682_v1 = vpop.eup %4285 }
 0x6d8   :  { %v696_v2 = vpack.c.bf16 %v4682_v1, %v4680_v0  ;;  %v862_v9 = vsel %vm382_vm10, %v4682_v1, 0.0 }
 0x6d9   :  { %v863_v10 = vadd.f32 %v862_v9, %v861_v8 }
 0x6da   :  { %3836 = vmatpush3.bf16.msra.mxu0 %v696_v2 }
 0x6db   :  { %v864_v12 = vrot.slane %v863_v10, 4  ;;  %3841 = vmatprep.subr.bf16.mxu0 %v4372_v11 }
 0x6dd   :  { %3838 = vmatmul.mubr.msk.bf16.vlgmr.msra.gmra.mrb[16].mxu0 %vm224_vm8, %v4521_v36  ;;  %v865_v13 = vadd.f32 %v864_v12, %v863_v10  ;;  %v4166_v36 = vld [vmem:[%s5518_s3 + $0xb0] sm:$0xff]  }
 0x6de   :  { %3855 = vmatprep.mubr.msk.bf16.mxu0 %vm4373_vm3, %v4372_v11  ;;  %3842 = vmatpush3.bf16.msra.mxu0 %v4165_v20 }
 0x6df   :  { %v866_v15 = vrot.slane %v865_v13, 2  ;;  %3843 = vmatprep.subr.bf16.mxu0 %v4372_v11 }
 0x6e1   :  { %v867_v16 = vadd.f32 %v866_v15, %v865_v13 }
 0x6e2   :  { %3844 = vmatpush3.bf16.msra.mxu0 %v4166_v36 }
 0x6e3   :  { %v868_v17 = vrot.slane %v867_v16, 1  ;;  %3845 = vmatprep.subr.bf16.mxu0 %v4372_v11 }
 0x6e5   :  { %v869_v18 = vadd.f32 %v868_v17, %v867_v16  ;;  %v4179_v17 = vld [vmem:[%s5518_s3] sm:$0xff]  }
 0x6e6   :  { %3846 = vmatpush3.bf16.msra.mxu0 %v4167_v21 }
 0x6e7   :  { %v870_v19 = vmul.f32 0.0625, %v869_v18  ;;  %3847 = vmatprep.subr.bf16.mxu0 %v4372_v11  ;;  %v4180_v18 = vld [vmem:[%s5518_s3 + $0x8] sm:$0xff]  }
 0x6e9   :  { %872 = vrot.lane.b32.xlu1 %v870_v19, %s4378_s21  ;;  %v893_v19 = vld [vmem:[%s5519_s4 + $0x5] sm:$0x1] }
 0x6ed   :  { %1060 = vrot.lane.b32.xlu1 %v4512_v33, %s4380_s18  ;;  %v4168_v33 = vld [vmem:[%s5518_s3 + $0xc0] sm:$0xff]  }
 0x6ee   :  { %3848 = vmatpush3.bf16.msra.mxu0 %v4168_v33 }
 0x6ef   :  { %3849 = vmatprep.subr.bf16.mxu0 %v4372_v11 }
 0x6f2   :  { %3850 = vmatpush3.bf16.msra.mxu0 %v4169_v22 }
 0x6f3   :  { %3851 = vmatprep.subr.bf16.mxu0 %v4372_v11 }
 0x6f6   :  { %3852 = vmatpush3.bf16.msra.mxu0 %v4170_v23  ;;  %v4181_v23 = vld [vmem:[%s5518_s3 + $0x10] sm:$0xff]  }
 0x6f7   :  { %3853 = vmatprep.subr.bf16.mxu0 %v4372_v11 }
 0x6fa   :  { %3854 = vmatpush3.bf16.msra.mxu0 %v4171_v24  ;;  %v4182_v24 = vld [vmem:[%s5518_s3 + $0x18] ss:$0 sps:$4 sm:$0xff]  }
 0x6fb   :  { %4123 = vmatprep.subr.msk.bf16.mxu0 %vm56_vm0, %v977_v28 }
 0x75b   :  { %v873_v8 = vpop.permute.xlu1 %872 }
 0x7b0   :  { %v731_v27 = vpop.f32.mrb[16].mxu0 }
 0x7b1   :  { %740 = vrot.lane.b32.xlu0 %v731_v27, %s4376_s19  ;;  %v3839_v3 = vpop.f32.mrb[17].mxu0 }
 0x7b2   :  { %v734_v29 = vpop.f32.mrb[18].mxu0 }
 0x7b3   :  { %v3840_v30 = vpop.f32.mrb[19].mxu0 }
 0x7b5   :  { %877 = vrot.lane.b32.xlu0 %v4653_v49, %s4376_s19 }
 0x823   :  { %v741_v31 = vpop.permute.xlu0 %740 }
 0x824   :  { %743 = vst.msk [vmem:[#allocation3] sm:$0xff] %vm571_vm7, %v741_v31 }
 0x825   :  { %744 = vst.msk [vmem:[#allocation3] sm:$0xff] %vm5535_vm6, %v4664_v53 }
 0x827   :  { %v878_v9 = vpop.permute.xlu0 %877 }
 0x82c   :  { %v745_v32 = vld [vmem:[#allocation3] sm:$0xff] }
 0x82d   :  { %v760_v37 = vpack.c.bf16 %v745_v32, %v745_v32  ;;  %1207 = vst.msk [vmem:[#allocation3] sm:$0xff] %vm5531_vm1, %v3441_v25  ;;  %v1118_v25 = vsel %vm56_vm0, %v4182_v24, 0 }
 0x82f   :  { %3856 = vmatmul.mubr.msk.bf16.vlgmr.msra.gmra.mrb[20].mxu0 %vm5534_vm9, %v760_v37 }
 0x830   :  { %3874 = vmatpush3.bf16.msra.mxu0 %v995_v38  ;;  %3875 = vmatprep.mubr.msk.bf16.mxu0 %vm49_vm2, %v4738_v35 }
 0x831   :  { %3891 = vmatprep.subr.bf16.mxu0 %v4372_v11 }
 0x837   :  { %3876 = vmatmul.mubr.msk.bf16.vlgmr.msra.gmra.mrb[24].mxu0 %vm49_vm2, %v4749_v39 }
 0x838   :  { %3893 = vmatprep.mubr.msk.bf16.mxu0 %vm4373_vm3, %v4372_v11 }
 0x902   :  { %v845_v46 = vpop.f32.mrb[20].mxu0 }
 0x903   :  { %v846_v47 = vadd.f32 %v4778_v45, %v845_v46  ;;  %v3857_v48 = vpop.f32.mrb[21].mxu0 }
 0x904   :  { %v848_v49 = vpop.f32.mrb[22].mxu0  ;;  %v4184_v48 = vld [vmem:[%s5518_s3 + $0x24] sm:$0xff]  }
 0x905   :  { %4287 = vtanh.f32 %v846_v47  ;;  %v3858_v50 = vpop.f32.mrb[23].mxu0  ;;  %v4844_v47 = vld [vmem:[%s5517_s2 + $0x4] sm:$0xf]  ;;  %v4185_v49 = vld [vmem:[%s5518_s3 + $0x2c] sm:$0xff]  }
 0x90a   :  { %v3877_v51 = vpop.f32.mrb[24].mxu0 }
 0x90b   :  { %1050 = vrot.lane.b32.xlu1 %v3877_v51, %s4374_s22  ;;  %v1031_v52 = vpop.f32.mrb[25].mxu0 }
 0x90c   :  { %1046 = vst.msk [vmem:[#allocation2] sm:$0xff] %vm5531_vm1, %v1031_v52  ;;  %v3878_v53 = vpop.f32.mrb[26].mxu0 }
 0x90d   :  { %1052 = vrot.lane.b32.xlu0 %v3878_v53, %s4374_s22  ;;  %v1034_v54 = vpop.f32.mrb[27].mxu0 }
 0x90e   :  { %1047 = vst.msk [vmem:[#allocation2 + $0x8] sm:$0xff] %vm5531_vm1, %v1034_v54  ;;  %vm5536_vm1 = vcmask 293920  }
 0x90f   :  { %v4785_v55 = vpop.eup %4287 }
 0x910   :  { %v852_v56 = vsel %vm382_vm10, %v4785_v55, 0.0 }
 0x911   :  { %v853_v58 = vrot.slane %v852_v56, 4  ;;  %1062 = vrot.lane.b32.xlu0 %v4514_v34, %s4380_s18  ;;  %v1061_v34 = vpop.permute.xlu1 %1060 }
 0x913   :  { %v854_v59 = vadd.f32 %v853_v58, %v852_v56  ;;  %v4186_v56 = vld [vmem:[%s5518_s3 + $0x34] sm:$0xff]  }
 0x915   :  { %v855_v60 = vrot.slane %v854_v59, 2  ;;  %1209 = vrot.lane.b32.xlu0 %v4595_v14, %s4374_s22 }
 0x917   :  { %v856_v61 = vadd.f32 %v855_v60, %v854_v59  ;;  %v4187_v59 = vld [vmem:[%s5518_s3 + $0x3c] sm:$0xff]  }
 0x919   :  { %v857_v62 = vrot.slane %v856_v61, 1 }
 0x91b   :  { %v858_v63 = vadd.f32 %v857_v62, %v856_v61  ;;  %v4188_v61 = vld [vmem:[%s5518_s3 + $0x44] ss:$0 sps:$4 sm:$0x33]  }
 0x91d   :  { %v859_v2 = vmul.f32 0.125, %v858_v63 }
 0x91f   :  { %860 = vst.msk [vmem:[#allocation4] sm:$0x1] %vm392_vm15, %v859_v2 }
 0x920   :  { %875 = vst.msk [vmem:[#allocation4] sm:$0x1] %vm409_vm14, %v873_v8 }
 0x921   :  { %880 = vst.msk [vmem:[#allocation4] sm:$0x1] %vm415_vm13, %v878_v9 }
 0x928   :  { %v881_v10 = vld [vmem:[#allocation4] sm:$0x1] }
 0x929   :  { %v892_v12 = vpack.c.bf16 %v881_v10, %v881_v10 }
 0x92b   :  { %3870 = vmatmul.mubr.msk.bf16.vlgmr.msra.gmra.mrb[12].mxu1 %vm460_vm12, %v892_v12 }
 0x92c   :  { %3887 = vmatprep.mubr.msk.bf16.mxu1 %vm4373_vm3, %v4372_v11  ;;  %3880 = vmatpush3.bf16.msra.mxu1 %v4179_v17  ;;  %v4189_v17 = vld [vmem:[%s5518_s3 + $0x48] sm:$0xff]  }
 0x92d   :  { %3881 = vmatprep.subr.bf16.mxu1 %v4372_v11 }
 0x930   :  { %3882 = vmatpush3.bf16.msra.mxu1 %v4180_v18  ;;  %v4191_v18 = vld [vmem:[%s5518_s3 + $0x58] sm:$0xff]  }
 0x931   :  { %3883 = vmatprep.subr.bf16.mxu1 %v4372_v11 }
 0x934   :  { %3884 = vmatpush3.bf16.msra.mxu1 %v4181_v23 }
 0x935   :  { %3885 = vmatprep.subr.bf16.mxu1 %v4372_v11 }
 0x938   :  { %3886 = vmatpush3.bf16.msra.mxu1 %v1118_v25 }
 0x939   :  { %3913 = vmatprep.subr.bf16.mxu1 %v4372_v11 }
 0x97d   :  { %v1051_v14 = vpop.permute.xlu1 %1050 }
 0x97e   :  { %1056 = vst.msk [vmem:[#allocation2] sm:$0xff] %vm5533_vm4, %v1051_v14 }
 0x97f   :  { %1066 = vst.msk [vmem:[#allocation2] sm:$0xff] %vm5532_vm5, %v1061_v34  ;;  %v1053_v13 = vpop.permute.xlu0 %1052 }
 0x980   :  { %1057 = vst.msk [vmem:[#allocation2 + $0x8] sm:$0xff] %vm5533_vm4, %v1053_v13  ;;  %vm5539_vm4 = vcmask 457728  }
 0x983   :  { %v1063_v15 = vpop.permute.xlu0 %1062 }
 0x984   :  { %1067 = vst.msk [vmem:[#allocation2 + $0x8] sm:$0xff] %vm5532_vm5, %v1063_v15 }
 0x987   :  { %v1210_v16 = vpop.permute.xlu0 %1209 }
 0x988   :  { %1212 = vst.msk [vmem:[#allocation3] sm:$0xff] %vm5536_vm1, %v1210_v16  ;;  %vm5537_vm1 = vcmask 458048  }
 0x989   :  { %vm5538_vm5 = vmmov %vm5537_vm1 }
 0x9fe   :  { %v961_v20 = vpop.f32.mrb[12].mxu1 }
 0x9ff   :  { %v962_v36 = vadd.f32 %v961_v20, %v893_v19  ;;  %v3871_v21 = vpop.f32.mrb[13].mxu1  ;;  %v4193_v19 = vld [vmem:[%s5518_s3 + $0x68] sm:$0xff]  }
 0xa00   :  { %v964_v33 = vpop.f32.mrb[14].mxu1 }
 0xa01   :  { %4289 = vtanh.f32 %v962_v36  ;;  %v3872_v22 = vpop.f32.mrb[15].mxu1 }
 0xa0b   :  { %v4290_v27 = vpop.eup %4289 }
 0xa0c   :  { %v1071_v28 = vrot.slane %v4290_v27, %v4454_v7 }
 0xa0e   :  { %1218 = vrot.lane.b32.xlu0 %v1071_v28, %s4375_s27  ;;  %1073 = vrot.lane.b32.xlu1 %v1071_v28, %s4371_s13 }
 0xa12   :  { %1345 = vrot.lane.b32.xlu0 %v4290_v27, %s4376_s19 }
 0xa80   :  { %v1074_v3 = vpop.permute.xlu1 %1073  ;;  %v1219_v13 = vpop.permute.xlu0 %1218 }
 0xa81   :  { %1076 = vst.msk [vmem:[#allocation2] sm:$0xff] %vm5537_vm1, %v1074_v3  ;;  %vm5542_vm1 = vcmask 687648  }
 0xa82   :  { %1077 = vst.msk [vmem:[#allocation2 + $0x8] sm:$0xff] %vm5538_vm5, %v1074_v3  ;;  %vm5541_vm5 = vcmask 556320  }
 0xa88   :  { %v1078_v29 = vld [vmem:[#allocation2] sm:$0xff] }
 0xa89   :  { %v1079_v30 = vld [vmem:[#allocation2 + $0x8] sm:$0xff] }
 0xa8a   :  { %v1087_v31 = vpack.c.bf16 %v1079_v30, %v1078_v29 }
 0xa8c   :  { %3888 = vmatmul.mubr.msk.bf16.vlgmr.msra.gmra.mrb[16].mxu1 %vm5539_vm4, %v1087_v31  ;;  %vm5540_vm4 = vcmask 1041408  }
 0xa8d   :  { %3923 = vmatprep.mubr.msk.bf16.mxu1 %vm4373_vm3, %v4372_v11  ;;  %v1277_v63 = vsel %vm5540_vm4, %v4188_v61, 0  ;;  %vm5543_vm4 = vcmask 687104   ;;  %3914 = vmatpush3.bf16.msra.mxu1 %v4189_v17 }
 0xa8e   :  { %3915 = vmatprep.subr.bf16.mxu1 %v4372_v11 }
 0xb5f   :  { %v1154_v32 = vpop.f32.mrb[16].mxu1 }
 0xb60   :  { %v1155_v37 = vadd.f32 %v4508_v26, %v1154_v32  ;;  %v3889_v38 = vpop.f32.mrb[17].mxu1 }
 0xb61   :  { %v1157_v40 = vpop.f32.mrb[18].mxu1  ;;  %v1346_v38 = vpop.permute.xlu0 %1345 }
 0xb62   :  { %v1158_v41 = vadd.f32 %v4508_v26, %v1157_v40  ;;  %v3890_v42 = vpop.f32.mrb[19].mxu1  ;;  %4291 = vtanh.f32 %v1155_v37  ;;  %v4183_v26 = vld [vmem:[%s5518_s3 + $0x1c] sm:$0xff]  }
 0xb64   :  { %4293 = vtanh.f32 %v1158_v41 }
 0xb6c   :  { %v4835_v43 = vpop.eup %4291 }
 0xb6d   :  { %v1329_v51 = vsel %vm382_vm10, %v4835_v43, 0.0 }
 0xb6e   :  { %v4837_v44 = vpop.eup %4293 }
 0xb6f   :  { %v1163_v46 = vpack.c.bf16 %v4837_v44, %v4835_v43  ;;  %v1330_v50 = vsel %vm382_vm10, %v4837_v44, 0.0 }
 0xb70   :  { %v1331_v52 = vadd.f32 %v1330_v50, %v1329_v51  ;;  %v4196_v50 = vld [vmem:[%s5518_s3 + $0x80] sm:$0xff]   ;;  %v4197_v51 = vld [vmem:[%s5518_s3 + $0x88] sm:$0xff]  }
 0xb71   :  { %3892 = vmatpush3.bf16.msra.mxu0 %v1163_v46  ;;  %v4195_v46 = vld [vmem:[%s5518_s3 + $0x78] sm:$0xff]  }
 0xb72   :  { %3897 = vmatprep.subr.bf16.mxu0 %v4372_v11  ;;  %v1332_v53 = vrot.slane %v1331_v52, 4 }
 0xb74   :  { %3894 = vmatmul.mubr.msk.bf16.vlgmr.msra.gmra.mrb[28].mxu0 %vm224_vm8, %v4844_v47  ;;  %v1333_v54 = vadd.f32 %v1332_v53, %v1331_v52  ;;  %v4198_v52 = vld [vmem:[%s5518_s3 + $0x90] sm:$0xff]  }
 0xb75   :  { %3909 = vmatprep.mubr.msk.bf16.mxu0 %vm4373_vm3, %v4372_v11  ;;  %3898 = vmatpush3.bf16.msra.mxu0 %v4183_v26 }
 0xb76   :  { %3899 = vmatprep.subr.bf16.mxu0 %v4372_v11  ;;  %v1334_v58 = vrot.slane %v1333_v54, 2 }
 0xb78   :  { %v1335_v60 = vadd.f32 %v1334_v58, %v1333_v54 }
 0xb79   :  { %3900 = vmatpush3.bf16.msra.mxu0 %v4184_v48 }
 0xb7a   :  { %3901 = vmatprep.subr.bf16.mxu0 %v4372_v11  ;;  %v1336_v62 = vrot.slane %v1335_v60, 1 }
 0xb7c   :  { %v1337_v2 = vadd.f32 %v1336_v62, %v1335_v60  ;;  %v4200_v60 = vld [vmem:[%s5518_s3 + $0xa0] sm:$0xff]  }
 0xb7d   :  { %3902 = vmatpush3.bf16.msra.mxu0 %v4185_v49 }
 0xb7e   :  { %3903 = vmatprep.subr.bf16.mxu0 %v4372_v11  ;;  %v1338_v34 = vmul.f32 0.0625, %v1337_v2 }
 0xb81   :  { %3904 = vmatpush3.bf16.msra.mxu0 %v4186_v56 }
 0xb82   :  { %3905 = vmatprep.subr.bf16.mxu0 %v4372_v11 }
 0xb85   :  { %3906 = vmatpush3.bf16.msra.mxu0 %v4187_v59  ;;  %v4199_v59 = vld [vmem:[%s5518_s3 + $0x98] sm:$0xff]  }
 0xb86   :  { %3907 = vmatprep.subr.bf16.mxu0 %v4372_v11 }
 0xb89   :  { %3908 = vmatpush3.bf16.msra.mxu0 %v1277_v63 }
 0xc47   :  { %v1201_v8 = vpop.f32.mrb[28].mxu0 }
 0xc48   :  { %1214 = vrot.lane.b32.xlu1 %v1201_v8, %s4377_s20  ;;  %v3895_v9 = vpop.f32.mrb[29].mxu0 }
 0xc49   :  { %v1204_v10 = vpop.f32.mrb[30].mxu0 }
 0xc4a   :  { %v3896_v12 = vpop.f32.mrb[31].mxu0 }
 0xc4c   :  { %1340 = vrot.lane.b32.xlu1 %v1338_v34, %s4378_s21 }
 0xc50   :  { %1503 = vrot.lane.b32.xlu1 %v4680_v0, %s4376_s19  ;;  %v4190_v0 = vld [vmem:[%s5518_s3 + $0x50] sm:$0xff]  }
 0xc51   :  { %3916 = vmatpush3.bf16.msra.mxu1 %v4190_v0 }
 0xc52   :  { %3917 = vmatprep.subr.bf16.mxu1 %v4372_v11 }
 0xc55   :  { %3918 = vmatpush3.bf16.msra.mxu1 %v4191_v18 }
 0xc56   :  { %3919 = vmatprep.subr.bf16.mxu1 %v4372_v11 }
 0xcba   :  { %v1215_v14 = vpop.permute.xlu1 %1214 }
 0xcbb   :  { %1217 = vst.msk [vmem:[#allocation3] sm:$0xff] %vm5541_vm5, %v1215_v14  ;;  %vm5544_vm5 = vcmask 31744  }
 0xcbc   :  { %1221 = vst.msk [vmem:[#allocation3] sm:$0xff] %vm5542_vm1, %v1219_v13  ;;  %vm5545_vm1 = vmmov %vm5544_vm5 }
 0xcbe   :  { %v1341_v37 = vpop.permute.xlu1 %1340 }
 0xcc2   :  { %v1504_v63 = vpop.permute.xlu1 %1503 }
 0xcc3   :  { %v1222_v15 = vld [vmem:[#allocation3] sm:$0xff] }
 0xcc4   :  { %v1234_v16 = vpack.c.bf16 %v1222_v15, %v1222_v15 }
 0xcc6   :  { %3910 = vmatmul.mubr.msk.bf16.vlgmr.msra.gmra.mrb[32].mxu0 %vm5543_vm4, %v1234_v16  ;;  %vm5546_vm4 = vmmov %vm5545_vm1 }
 0xcc7   :  { %3929 = vmatprep.mubr.msk.bf16.mxu0 %vm49_vm2, %v4738_v35  ;;  %v4192_v35 = vld [vmem:[%s5518_s3 + $0x60] sm:$0xff]  }
 0xcc8   :  { %3920 = vmatpush3.bf16.msra.mxu1 %v4192_v35 }
 0xcc9   :  { %3921 = vmatprep.subr.bf16.mxu1 %v4372_v11 }
 0xccc   :  { %3922 = vmatpush3.bf16.msra.mxu1 %v4193_v19 }
 0xccd   :  { %3933 = vmatprep.subr.bf16.mxu1 %v4372_v11 }
 0xd99   :  { %v1313_v20 = vpop.f32.mrb[32].mxu0 }
 0xd9a   :  { %v1314_v36 = vadd.f32 %v4592_v4, %v1313_v20  ;;  %v3911_v21 = vpop.f32.mrb[33].mxu0 }
 0xd9b   :  { %v1316_v33 = vpop.f32.mrb[34].mxu0 }
 0xd9c   :  { %4295 = vtanh.f32 %v1314_v36  ;;  %v3912_v22 = vpop.f32.mrb[35].mxu0 }
 0xda6   :  { %v4909_v23 = vpop.eup %4295 }
 0xda7   :  { %v1320_v24 = vsel %vm382_vm10, %v4909_v23, 0.0  ;;  %1672 = vst.msk [vmem:[#allocation3] sm:$0xff] %vm382_vm10, %v4909_v23  ;;  %v1436_v25 = vpack.c.bf16 %v4909_v23, %v4909_v23 }
 0xda8   :  { %v1321_v27 = vrot.slane %v1320_v24, 4 }
 0xda9   :  { %4124 = vmatprep.subr.msk.bf16.mxu0 %vm56_vm0, %v1436_v25  ;;  %v1438_v4 = vsel %vm56_vm0, %v1436_v25, 0 }
 0xdaa   :  { %v1322_v28 = vadd.f32 %v1321_v27, %v1320_v24  ;;  %3928 = vmatpush3.bf16.msra.mxu0 %v1438_v4 }
 0xdab   :  { %3951 = vmatprep.subr.bf16.mxu0 %v4372_v11 }
 0xdac   :  { %v1323_v3 = vrot.slane %v1322_v28, 2 }
 0xdad   :  { %3930 = vmatmul.mubr.msk.bf16.vlgmr.msra.gmra.mrb[36].mxu0 %vm49_vm2, %v4749_v39  ;;  %v4194_v39 = vld [vmem:[%s5518_s3 + $0x70] sm:$0xff]  }
 0xdae   :  { %v1324_v29 = vadd.f32 %v1323_v3, %v1322_v28  ;;  %3953 = vmatprep.mubr.msk.bf16.mxu0 %vm4373_vm3, %v4372_v11 }
 0xdb0   :  { %v1325_v30 = vrot.slane %v1324_v29, 1 }
 0xdb2   :  { %v1326_v31 = vadd.f32 %v1325_v30, %v1324_v29  ;;  %v4201_v29 = vld [vmem:[%s5518_s3 + $0xa8] sm:$0xff]   ;;  %v4203_v30 = vld [vmem:[%s5518_s3 + $0xb8] sm:$0xff]  }
 0xdb4   :  { %v1327_v32 = vmul.f32 0.125, %v1326_v31  ;;  %v4205_v31 = vld [vmem:[%s5518_s3 + $0xc8] sm:$0xff]  }
 0xdb6   :  { %1328 = vst.msk [vmem:[#allocation4] sm:$0x1] %vm392_vm15, %v1327_v32  ;;  %v4206_v32 = vld [vmem:[%s5518_s3 + $0xd0] sm:$0xff]  }
 0xdb7   :  { %1343 = vst.msk [vmem:[#allocation4] sm:$0x1] %vm409_vm14, %v1341_v37  ;;  %v4207_v37 = vld [vmem:[%s5518_s3 + $0xd8] sm:$0xff]  }
 0xdb8   :  { %1348 = vst.msk [vmem:[#allocation4] sm:$0x1] %vm415_vm13, %v1346_v38  ;;  %v3499_v38 = vld [vmem:[%s5515_s0 + $0x10] sm:$0xff] }
 0xdbf   :  { %v1349_v40 = vld [vmem:[#allocation4] sm:$0x1] }
 0xdc0   :  { %v1360_v41 = vpack.c.bf16 %v1349_v40, %v1349_v40 }
 0xdc2   :  { %3924 = vmatmul.mubr.msk.bf16.vlgmr.msra.gmra.mrb[20].mxu1 %vm460_vm12, %v1360_v41  ;;  %v1916_v41 = vpack.c.bf16 %v3499_v38, %v3499_v38 }
 0xdc3   :  { %3947 = vmatprep.mubr.msk.bf16.mxu1 %vm4373_vm3, %v4372_v11  ;;  %3934 = vmatpush3.bf16.msra.mxu1 %v4194_v39 }
 0xdc4   :  { %3935 = vmatprep.subr.bf16.mxu1 %v4372_v11 }
 0xdc7   :  { %3936 = vmatpush3.bf16.msra.mxu1 %v4195_v46 }
 0xdc8   :  { %3937 = vmatprep.subr.bf16.mxu1 %v4372_v11 }
 0xdcb   :  { %3938 = vmatpush3.bf16.msra.mxu1 %v4196_v50 }
 0xdcc   :  { %3939 = vmatprep.subr.bf16.mxu1 %v4372_v11 }
 0xdcf   :  { %3940 = vmatpush3.bf16.msra.mxu1 %v4197_v51  ;;  %v1934_v51 = vsel %vm56_vm0, %v1916_v41, 0 }
 0xdd0   :  { %3941 = vmatprep.subr.bf16.mxu1 %v4372_v11 }
 0xdd3   :  { %3942 = vmatpush3.bf16.msra.mxu1 %v4198_v52  ;;  %v5059_v52 = vld [vmem:[%s5516_s1 + $0x28] sm:$0xff]  }
 0xdd4   :  { %3943 = vmatprep.subr.bf16.mxu1 %v4372_v11 }
 0xdd7   :  { %3944 = vmatpush3.bf16.msra.mxu1 %v4199_v59 }
 0xdd8   :  { %3945 = vmatprep.subr.bf16.mxu1 %v4372_v11 }
 0xddb   :  { %3946 = vmatpush3.bf16.msra.mxu1 %v4200_v60 }
 0xddc   :  { %3975 = vmatprep.subr.bf16.mxu1 %v4372_v11 }
 0xe80   :  { %v3931_v42 = vpop.f32.mrb[36].mxu0 }
 0xe81   :  { %1493 = vrot.lane.b32.xlu1 %v3931_v42, %s4378_s21  ;;  %v1474_v26 = vpop.f32.mrb[37].mxu0 }
 0xe82   :  { %1489 = vst.msk [vmem:[#allocation2] sm:$0xff] %vm382_vm10, %v1474_v26  ;;  %v3932_v48 = vpop.f32.mrb[38].mxu0 }
 0xe83   :  { %1495 = vrot.lane.b32.xlu0 %v3932_v48, %s4378_s21  ;;  %v1477_v49 = vpop.f32.mrb[39].mxu0 }
 0xe84   :  { %1490 = vst.msk [vmem:[#allocation2 + $0x8] sm:$0xff] %vm382_vm10, %v1477_v49  ;;  %v5048_v49 = vld [vmem:[%s5516_s1 + $0x20] sm:$0xff]  }
 0xe87   :  { %1505 = vrot.lane.b32.xlu0 %v4682_v1, %s4376_s19  ;;  %v1361_v1 = vld [vmem:[%s5519_s4 + $0x2] sm:$0x1] }
 0xe8b   :  { %1674 = vrot.lane.b32.xlu0 %v4785_v55, %s4378_s21 }
 0xe95   :  { %v1429_v53 = vpop.f32.mrb[20].mxu1 }
 0xe96   :  { %v1430_v54 = vadd.f32 %v1429_v53, %v1361_v1  ;;  %v3925_v56 = vpop.f32.mrb[21].mxu1  ;;  %v4210_v1 = vld [vmem:[%s5518_s3 + $0xe0] sm:$0xff]   ;;  %v4211_v53 = vld [vmem:[%s5518_s3 + $0xe8] sm:$0xff]  }
 0xe97   :  { %v1432_v58 = vpop.f32.mrb[22].mxu1  ;;  %v4213_v56 = vld [vmem:[%s5518_s3 + $0xf8] sm:$0xff]  }
 0xe98   :  { %4297 = vtanh.f32 %v1430_v54  ;;  %v3926_v55 = vpop.f32.mrb[23].mxu1  ;;  %v4212_v54 = vld [vmem:[%s5518_s3 + $0xf0] sm:$0xff]   ;;  %v4214_v58 = vld [vmem:[%s5518_s3 + $0x100] sm:$0xff]  }
 0xea2   :  { %v4969_v61 = vpop.eup %4297 }
 0xea3   :  { %v1514_v62 = vrot.slane %v4969_v61, %v4454_v7 }
 0xea5   :  { %1516 = vrot.lane.b32.xlu1 %v1514_v62, %s4379_s15 }
 0xef3   :  { %v1494_v2 = vpop.permute.xlu1 %1493 }
 0xef4   :  { %1499 = vst.msk [vmem:[#allocation2] sm:$0xff] %vm568_vm11, %v1494_v2 }
 0xef5   :  { %1509 = vst.msk [vmem:[#allocation2] sm:$0xff] %vm571_vm7, %v1504_v63  ;;  %v1496_v8 = vpop.permute.xlu0 %1495 }
 0xef6   :  { %1500 = vst.msk [vmem:[#allocation2 + $0x8] sm:$0xff] %vm568_vm11, %v1496_v8 }
 0xef9   :  { %v1506_v9 = vpop.permute.xlu0 %1505 }
 0xefa   :  { %1510 = vst.msk [vmem:[#allocation2 + $0x8] sm:$0xff] %vm571_vm7, %v1506_v9 }
 0xefd   :  { %v1675_v10 = vpop.permute.xlu0 %1674 }
 0xefe   :  { %1677 = vst.msk [vmem:[#allocation3] sm:$0xff] %vm568_vm11, %v1675_v10 }
 0xf17   :  { %v4979_v12 = vpop.permute.xlu1 %1516 }
 0xf18   :  { %1519 = vst.msk [vmem:[#allocation2] sm:$0xff] %vm5535_vm6, %v4979_v12  ;;  %1520 = vst.msk [vmem:[#allocation2 + $0x8] sm:$0xff] %vm5535_vm6, %v4979_v12 }
 0xf1f   :  { %v1521_v34 = vld [vmem:[#allocation2] sm:$0xff]  ;;  %v1522_v14 = vld [vmem:[#allocation2 + $0x8] sm:$0xff] }
 0xf20   :  { %v1537_v13 = vpack.c.bf16 %v1522_v14, %v1521_v34 }
 0xf22   :  { %3948 = vmatmul.mubr.msk.bf16.vlgmr.msra.gmra.mrb[24].mxu1 %vm5534_vm9, %v1537_v13 }
 0xf23   :  { %3985 = vmatprep.mubr.msk.bf16.mxu1 %vm4373_vm3, %v4372_v11  ;;  %3976 = vmatpush3.bf16.msra.mxu1 %v4210_v1 }
 0xf24   :  { %3977 = vmatprep.subr.bf16.mxu1 %v4372_v11 }
 0xf27   :  { %3978 = vmatpush3.bf16.msra.mxu1 %v4211_v53 }
 0xf28   :  { %3979 = vmatprep.subr.bf16.mxu1 %v4372_v11 }
 0xf2b   :  { %3980 = vmatpush3.bf16.msra.mxu1 %v4212_v54 }
 0xf2c   :  { %3981 = vmatprep.subr.bf16.mxu1 %v4372_v11 }
 0xf2f   :  { %3982 = vmatpush3.bf16.msra.mxu1 %v4213_v56 }
 0xf30   :  { %3983 = vmatprep.subr.bf16.mxu1 %v4372_v11 }
 0xf33   :  { %3984 = vmatpush3.bf16.msra.mxu1 %v4214_v58 }
 0xf34   :  { %3995 = vmatprep.subr.bf16.mxu1 %v4372_v11 }
 0xff5   :  { %v1622_v15 = vpop.f32.mrb[24].mxu1 }
 0xff6   :  { %v1623_v16 = vadd.f32 %v4676_v57, %v1622_v15  ;;  %v3949_v17 = vpop.f32.mrb[25].mxu1 }
 0xff7   :  { %v1625_v0 = vpop.f32.mrb[26].mxu1 }
 0xff8   :  { %4299 = vtanh.f32 %v1623_v16  ;;  %v1626_v18 = vadd.f32 %v4676_v57, %v1625_v0  ;;  %v3950_v35 = vpop.f32.mrb[27].mxu1 }
 0xffa   :  { %4301 = vtanh.f32 %v1626_v18 }
0x1002   :  { %v4990_v19 = vpop.eup %4299 }
0x1003   :  { %v1800_v21 = vsel %vm382_vm10, %v4990_v19, 0.0 }
0x1004   :  { %v4992_v20 = vpop.eup %4301 }
0x1005   :  { %v1631_v36 = vpack.c.bf16 %v4992_v20, %v4990_v19  ;;  %v1801_v33 = vsel %vm382_vm10, %v4992_v20, 0.0 }
0x1006   :  { %v1802_v22 = vadd.f32 %v1801_v33, %v1800_v21 }
0x1007   :  { %3952 = vmatpush3.bf16.msra.mxu0 %v1631_v36 }
0x1008   :  { %v1803_v24 = vrot.slane %v1802_v22, 4  ;;  %3957 = vmatprep.subr.bf16.mxu0 %v4372_v11 }
0x100a   :  { %3954 = vmatmul.mubr.msk.bf16.vlgmr.msra.gmra.mrb[40].mxu0 %vm224_vm8, %v4844_v47  ;;  %v1804_v57 = vadd.f32 %v1803_v24, %v1802_v22  ;;  %v4202_v47 = vld [vmem:[%s5518_s3 + $0xb0] sm:$0xff]   ;;  %v4215_v24 = vld [vmem:[%s5518_s3] sm:$0xff]  }
0x100b   :  { %3971 = vmatprep.mubr.msk.bf16.mxu0 %vm4373_vm3, %v4372_v11  ;;  %3958 = vmatpush3.bf16.msra.mxu0 %v4201_v29 }
0x100c   :  { %v1805_v25 = vrot.slane %v1804_v57, 2  ;;  %3959 = vmatprep.subr.bf16.mxu0 %v4372_v11 }
0x100e   :  { %v1806_v27 = vadd.f32 %v1805_v25, %v1804_v57  ;;  %v4216_v57 = vld [vmem:[%s5518_s3 + $0x8] sm:$0xff]   ;;  %v1832_v25 = vld [vmem:[%s5519_s4 + $0x5] sm:$0x1] }
0x100f   :  { %3960 = vmatpush3.bf16.msra.mxu0 %v4202_v47  ;;  %v4217_v47 = vld [vmem:[%s5518_s3 + $0x10] sm:$0xff]  }
0x1010   :  { %v1807_v4 = vrot.slane %v1806_v27, 1  ;;  %3961 = vmatprep.subr.bf16.mxu0 %v4372_v11 }
0x1012   :  { %v1808_v28 = vadd.f32 %v1807_v4, %v1806_v27 }
0x1013   :  { %3962 = vmatpush3.bf16.msra.mxu0 %v4203_v30  ;;  %v4218_v30 = vld [vmem:[%s5518_s3 + $0x18] ss:$0 sps:$4 sm:$0xff]  }
0x1014   :  { %v1809_v3 = vmul.f32 0.0625, %v1808_v28  ;;  %3963 = vmatprep.subr.bf16.mxu0 %v4372_v11 }
0x1016   :  { %1811 = vrot.lane.b32.xlu0 %v1809_v3, %s4378_s21 }
0x101a   :  { %1999 = vrot.lane.b32.xlu0 %v4835_v43, %s4380_s18  ;;  %v4204_v43 = vld [vmem:[%s5518_s3 + $0xc0] sm:$0xff]  }
0x101b   :  { %3964 = vmatpush3.bf16.msra.mxu0 %v4204_v43  ;;  %v2057_v43 = vsel %vm56_vm0, %v4218_v30, 0 }
0x101c   :  { %3965 = vmatprep.subr.bf16.mxu0 %v4372_v11 }
0x101f   :  { %3966 = vmatpush3.bf16.msra.mxu0 %v4205_v31 }
0x1020   :  { %3967 = vmatprep.subr.bf16.mxu0 %v4372_v11 }
0x1023   :  { %3968 = vmatpush3.bf16.msra.mxu0 %v4206_v32 }
0x1024   :  { %3969 = vmatprep.subr.bf16.mxu0 %v4372_v11 }
0x1027   :  { %3970 = vmatpush3.bf16.msra.mxu0 %v4207_v37 }
0x1028   :  { %4125 = vmatprep.subr.msk.bf16.mxu0 %vm56_vm0, %v1916_v41 }
0x1088   :  { %v1812_v0 = vpop.permute.xlu0 %1811 }
0x10dd   :  { %v1666_v40 = vpop.f32.mrb[40].mxu0 }
0x10de   :  { %1679 = vrot.lane.b32.xlu1 %v1666_v40, %s4376_s19  ;;  %v3955_v39 = vpop.f32.mrb[41].mxu0 }
0x10df   :  { %v1669_v42 = vpop.f32.mrb[42].mxu0  ;;  %v3504_v39 = vld [vmem:[%s5519_s4] ss:$0 sm:$0xff] }
0x10e0   :  { %v3956_v46 = vpop.f32.mrb[43].mxu0 }
0x10e2   :  { %1816 = vrot.lane.b32.xlu1 %v4969_v61, %s4376_s19 }
0x1150   :  { %v1680_v26 = vpop.permute.xlu1 %1679 }
0x1151   :  { %1682 = vst.msk [vmem:[#allocation3] sm:$0xff] %vm571_vm7, %v1680_v26 }
0x1152   :  { %1683 = vst.msk [vmem:[#allocation3] sm:$0xff] %vm5535_vm6, %v4979_v12  ;;  %vm5551_vm6 = vcmask 293920  }
0x1154   :  { %v1817_v18 = vpop.permute.xlu1 %1816 }
0x1159   :  { %v1684_v48 = vld [vmem:[#allocation3] sm:$0xff] }
0x115a   :  { %v1699_v50 = vpack.c.bf16 %v1684_v48, %v1684_v48  ;;  %2146 = vst.msk [vmem:[#allocation3] sm:$0xff] %vm5544_vm5, %v3499_v38  ;;  %vm5547_vm5 = vcmask 64544  }
0x115c   :  { %3972 = vmatmul.mubr.msk.bf16.vlgmr.msra.gmra.mrb[44].mxu0 %vm5534_vm9, %v1699_v50 }
0x115d   :  { %3990 = vmatpush3.bf16.msra.mxu0 %v1934_v51  ;;  %3991 = vmatprep.mubr.msk.bf16.mxu0 %vm49_vm2, %v5048_v49 }
0x115e   :  { %4007 = vmatprep.subr.bf16.mxu0 %v4372_v11 }
0x1164   :  { %3992 = vmatmul.mubr.msk.bf16.vlgmr.msra.gmra.mrb[48].mxu0 %vm49_vm2, %v5059_v52 }
0x1165   :  { %4009 = vmatprep.mubr.msk.bf16.mxu0 %vm4373_vm3, %v4372_v11 }
0x122f   :  { %v1784_v55 = vpop.f32.mrb[44].mxu0 }
0x1230   :  { %v1785_v59 = vadd.f32 %v4778_v45, %v1784_v55  ;;  %v3973_v60 = vpop.f32.mrb[45].mxu0 }
0x1231   :  { %v1787_v61 = vpop.f32.mrb[46].mxu0  ;;  %v4219_v60 = vld [vmem:[%s5518_s3 + $0x1c] sm:$0xff]  }
0x1232   :  { %4303 = vtanh.f32 %v1785_v59  ;;  %v3974_v62 = vpop.f32.mrb[47].mxu0  ;;  %v5146_v59 = vld [vmem:[%s5517_s2 + $0x8] sm:$0xf] }
0x1233   :  { %v4220_v61 = vld [vmem:[%s5518_s3 + $0x24] sm:$0xff]   ;;  %v4221_v62 = vld [vmem:[%s5518_s3 + $0x2c] sm:$0xff]  }
0x1237   :  { %v3993_v63 = vpop.f32.mrb[48].mxu0 }
0x1238   :  { %1989 = vrot.lane.b32.xlu0 %v3993_v63, %s4374_s22  ;;  %v1970_v2 = vpop.f32.mrb[49].mxu0 }
0x1239   :  { %1985 = vst.msk [vmem:[#allocation2] sm:$0xff] %vm5545_vm1, %v1970_v2  ;;  %v3994_v8 = vpop.f32.mrb[50].mxu0  ;;  %vm5548_vm1 = vcmask 326720  }
0x123a   :  { %1991 = vrot.lane.b32.xlu1 %v3994_v8, %s4374_s22  ;;  %v1973_v9 = vpop.f32.mrb[51].mxu0  ;;  %vm5550_vm9 = vmmov %vm5548_vm1  ;;  %v4222_v8 = vld [vmem:[%s5518_s3 + $0x34] sm:$0xff]  }
0x123b   :  { %1986 = vst.msk [vmem:[#allocation2 + $0x8] sm:$0xff] %vm5546_vm4, %v1973_v9  ;;  %vm5549_vm4 = vmmov %vm5547_vm5 }
0x123c   :  { %v5090_v10 = vpop.eup %4303 }
0x123d   :  { %v1791_v45 = vsel %vm382_vm10, %v5090_v10, 0.0 }
0x123e   :  { %v1792_v12 = vrot.slane %v1791_v45, 4  ;;  %2001 = vrot.lane.b32.xlu1 %v4837_v44, %s4380_s18  ;;  %v2000_v44 = vpop.permute.xlu0 %1999 }
0x1240   :  { %v1793_v34 = vadd.f32 %v1792_v12, %v1791_v45  ;;  %v4223_v45 = vld [vmem:[%s5518_s3 + $0x3c] sm:$0xff]  }
0x1242   :  { %v1794_v14 = vrot.slane %v1793_v34, 2  ;;  %2148 = vrot.lane.b32.xlu1 %v4909_v23, %s4374_s22 }
0x1244   :  { %v1795_v13 = vadd.f32 %v1794_v14, %v1793_v34  ;;  %v4224_v34 = vld [vmem:[%s5518_s3 + $0x44] ss:$0 sps:$4 sm:$0x33]  }
0x1246   :  { %v1796_v15 = vrot.slane %v1795_v13, 1 }
0x1248   :  { %v1797_v16 = vadd.f32 %v1796_v15, %v1795_v13 }
0x124a   :  { %v1798_v17 = vmul.f32 0.125, %v1797_v16 }
0x124c   :  { %1799 = vst.msk [vmem:[#allocation4] sm:$0x1] %vm392_vm15, %v1798_v17 }
0x124d   :  { %1814 = vst.msk [vmem:[#allocation4] sm:$0x1] %vm409_vm14, %v1812_v0 }
0x124e   :  { %1819 = vst.msk [vmem:[#allocation4] sm:$0x1] %vm415_vm13, %v1817_v18 }
0x1255   :  { %v1820_v35 = vld [vmem:[#allocation4] sm:$0x1] }
0x1256   :  { %v1831_v36 = vpack.c.bf16 %v1820_v35, %v1820_v35 }
0x1258   :  { %3986 = vmatmul.mubr.msk.bf16.vlgmr.msra.gmra.mrb[28].mxu1 %vm460_vm12, %v1831_v36 }
0x1259   :  { %4003 = vmatprep.mubr.msk.bf16.mxu1 %vm4373_vm3, %v4372_v11  ;;  %3996 = vmatpush3.bf16.msra.mxu1 %v4215_v24  ;;  %v4229_v24 = vld [vmem:[%s5518_s3 + $0x68] sm:$0xff]  }
0x125a   :  { %3997 = vmatprep.subr.bf16.mxu1 %v4372_v11 }
0x125d   :  { %3998 = vmatpush3.bf16.msra.mxu1 %v4216_v57  ;;  %v3511_v57 = vld [vmem:[%s5519_s4 + $0x1] ss:$0 sm:$0xff] }
0x125e   :  { %3999 = vmatprep.subr.bf16.mxu1 %v4372_v11 }
0x1261   :  { %4000 = vmatpush3.bf16.msra.mxu1 %v4217_v47 }
0x1262   :  { %4001 = vmatprep.subr.bf16.mxu1 %v4372_v11 }
0x1265   :  { %4002 = vmatpush3.bf16.msra.mxu1 %v2057_v43 }
0x1266   :  { %4029 = vmatprep.subr.bf16.mxu1 %v4372_v11 }
0x12aa   :  { %v1990_v23 = vpop.permute.xlu0 %1989 }
0x12ab   :  { %1995 = vst.msk [vmem:[#allocation2] sm:$0xff] %vm5547_vm5, %v1990_v23  ;;  %vm5554_vm5 = vcmask 457728  }
0x12ac   :  { %2005 = vst.msk [vmem:[#allocation2] sm:$0xff] %vm5548_vm1, %v2000_v44  ;;  %v1992_v21 = vpop.permute.xlu1 %1991  ;;  %vm5555_vm1 = vcmask 1041408  }
0x12ad   :  { %1996 = vst.msk [vmem:[#allocation2 + $0x8] sm:$0xff] %vm5549_vm4, %v1992_v21  ;;  %v2216_v13 = vsel %vm5555_vm1, %v4224_v34, 0  ;;  %vm5556_vm4 = vcmask 556320   ;;  %vm2886_vm1 = vcmp.lt.s32.totalorder %v126_v5, 96 }
0x12b0   :  { %v2002_v33 = vpop.permute.xlu1 %2001 }
0x12b1   :  { %2006 = vst.msk [vmem:[#allocation2 + $0x8] sm:$0xff] %vm5550_vm9, %v2002_v33  ;;  %v4225_v33 = vld [vmem:[%s5518_s3 + $0x48] sm:$0xff]  }
0x12b4   :  { %v2149_v22 = vpop.permute.xlu1 %2148 }
0x12b5   :  { %2151 = vst.msk [vmem:[#allocation3] sm:$0xff] %vm5551_vm6, %v2149_v22  ;;  %vm5552_vm6 = vcmask 458048   ;;  %v4227_v22 = vld [vmem:[%s5518_s3 + $0x58] sm:$0xff]  }
0x12b6   :  { %vm5553_vm9 = vmmov %vm5552_vm6 }
0x132b   :  { %v1900_v27 = vpop.f32.mrb[28].mxu1 }
0x132c   :  { %v1901_v4 = vadd.f32 %v1900_v27, %v1832_v25  ;;  %v3987_v28 = vpop.f32.mrb[29].mxu1 }
0x132d   :  { %v1903_v3 = vpop.f32.mrb[30].mxu1 }
0x132e   :  { %4305 = vtanh.f32 %v1901_v4  ;;  %v3988_v29 = vpop.f32.mrb[31].mxu1 }
0x1338   :  { %v4306_v31 = vpop.eup %4305 }
0x1339   :  { %v2010_v32 = vrot.slane %v4306_v31, %v4454_v7 }
0x133b   :  { %2157 = vrot.lane.b32.xlu1 %v2010_v32, %s4375_s27  ;;  %2012 = vrot.lane.b32.xlu0 %v2010_v32, %s4371_s13 }
0x133f   :  { %2284 = vrot.lane.b32.xlu1 %v4306_v31, %s4376_s19 }
0x13ad   :  { %v2013_v37 = vpop.permute.xlu0 %2012  ;;  %v2158_v44 = vpop.permute.xlu1 %2157 }
0x13ae   :  { %2015 = vst.msk [vmem:[#allocation2] sm:$0xff] %vm5552_vm6, %v2013_v37  ;;  %vm5557_vm6 = vcmask 687648  }
0x13af   :  { %2016 = vst.msk [vmem:[#allocation2 + $0x8] sm:$0xff] %vm5553_vm9, %v2013_v37  ;;  %vm5558_vm9 = vcmask 687104  }
0x13b5   :  { %v2017_v38 = vld [vmem:[#allocation2] sm:$0xff] }
0x13b6   :  { %v2018_v40 = vld [vmem:[#allocation2 + $0x8] sm:$0xff] }
0x13b7   :  { %v2026_v41 = vpack.c.bf16 %v2018_v40, %v2017_v38 }
0x13b9   :  { %4004 = vmatmul.mubr.msk.bf16.vlgmr.msra.gmra.mrb[32].mxu1 %vm5554_vm5, %v2026_v41  ;;  %vm5561_vm5 = vcmask 916480  }
0x13ba   :  { %4039 = vmatprep.mubr.msk.bf16.mxu1 %vm4373_vm3, %v4372_v11  ;;  %4030 = vmatpush3.bf16.msra.mxu1 %v4225_v33 }
0x13bb   :  { %4031 = vmatprep.subr.bf16.mxu1 %v4372_v11 }
0x148c   :  { %v2093_v42 = vpop.f32.mrb[32].mxu1 }
0x148d   :  { %v2094_v46 = vadd.f32 %v3504_v39, %v2093_v42  ;;  %v4005_v26 = vpop.f32.mrb[33].mxu1 }
0x148e   :  { %v2096_v48 = vpop.f32.mrb[34].mxu1 }
0x148f   :  { %4307 = vtanh.f32 %v2094_v46  ;;  %v2097_v50 = vadd.f32 %v3504_v39, %v2096_v48  ;;  %v4006_v51 = vpop.f32.mrb[35].mxu1  ;;  %v2285_v46 = vpop.permute.xlu1 %2284 }
0x1490   :  { %v4231_v51 = vld [vmem:[%s5518_s3 + $0x78] sm:$0xff]  }
0x1491   :  { %4309 = vtanh.f32 %v2097_v50 }
0x1499   :  { %v4308_v1 = vpop.eup %4307 }
0x149a   :  { %v2268_v56 = vsel %vm382_vm10, %v4308_v1, 0.0 }
0x149b   :  { %v4310_v53 = vpop.eup %4309 }
0x149c   :  { %v2102_v54 = vpack.c.bf16 %v4310_v53, %v4308_v1  ;;  %v2269_v58 = vsel %vm382_vm10, %v4310_v53, 0.0 }
0x149d   :  { %v2270_v55 = vadd.f32 %v2269_v58, %v2268_v56  ;;  %v4232_v56 = vld [vmem:[%s5518_s3 + $0x80] sm:$0xff]   ;;  %v4233_v58 = vld [vmem:[%s5518_s3 + $0x88] sm:$0xff]  }
0x149e   :  { %4008 = vmatpush3.bf16.msra.mxu0 %v2102_v54 }
0x149f   :  { %4013 = vmatprep.subr.bf16.mxu0 %v4372_v11  ;;  %v2271_v63 = vrot.slane %v2270_v55, 4 }
0x14a1   :  { %4010 = vmatmul.mubr.msk.bf16.vlgmr.msra.gmra.mrb[52].mxu0 %vm224_vm8, %v5146_v59  ;;  %v2272_v2 = vadd.f32 %v2271_v63, %v2270_v55  ;;  %v4234_v55 = vld [vmem:[%s5518_s3 + $0x90] sm:$0xff]  }
0x14a2   :  { %4025 = vmatprep.mubr.msk.bf16.mxu0 %vm4373_vm3, %v4372_v11  ;;  %4014 = vmatpush3.bf16.msra.mxu0 %v4219_v60 }
0x14a3   :  { %4015 = vmatprep.subr.bf16.mxu0 %v4372_v11  ;;  %v2273_v9 = vrot.slane %v2272_v2, 2 }
0x14a5   :  { %v2274_v12 = vadd.f32 %v2273_v9, %v2272_v2  ;;  %v4235_v2 = vld [vmem:[%s5518_s3 + $0x98] sm:$0xff]  }
0x14a6   :  { %4016 = vmatpush3.bf16.msra.mxu0 %v4220_v61 }
0x14a7   :  { %4017 = vmatprep.subr.bf16.mxu0 %v4372_v11  ;;  %v2275_v14 = vrot.slane %v2274_v12, 1 }
0x14a9   :  { %v2276_v15 = vadd.f32 %v2275_v14, %v2274_v12 }
0x14aa   :  { %4018 = vmatpush3.bf16.msra.mxu0 %v4221_v62 }
0x14ab   :  { %4019 = vmatprep.subr.bf16.mxu0 %v4372_v11  ;;  %v2277_v35 = vmul.f32 0.0625, %v2276_v15 }
0x14ae   :  { %4020 = vmatpush3.bf16.msra.mxu0 %v4222_v8  ;;  %v4236_v8 = vld [vmem:[%s5518_s3 + $0xa0] sm:$0xff]  }
0x14af   :  { %4021 = vmatprep.subr.bf16.mxu0 %v4372_v11 }
0x14b2   :  { %4022 = vmatpush3.bf16.msra.mxu0 %v4223_v45 }
0x14b3   :  { %4023 = vmatprep.subr.bf16.mxu0 %v4372_v11 }
0x14b6   :  { %4024 = vmatpush3.bf16.msra.mxu0 %v2216_v13 }
0x1574   :  { %v2140_v16 = vpop.f32.mrb[52].mxu0 }
0x1575   :  { %2153 = vrot.lane.b32.xlu0 %v2140_v16, %s4377_s20  ;;  %v4011_v17 = vpop.f32.mrb[53].mxu0 }
0x1576   :  { %v2143_v0 = vpop.f32.mrb[54].mxu0 }
0x1577   :  { %v4012_v18 = vpop.f32.mrb[55].mxu0 }
0x1579   :  { %2279 = vrot.lane.b32.xlu0 %v2277_v35, %s4378_s21  ;;  %v3527_v35 = vld [vmem:[%s5519_s4 + $0x3] ss:$0 sm:$0xff] }
0x157d   :  { %2442 = vrot.lane.b32.xlu0 %v4990_v19, %s4376_s19  ;;  %v4226_v19 = vld [vmem:[%s5518_s3 + $0x50] sm:$0xff]  }
0x157e   :  { %4032 = vmatpush3.bf16.msra.mxu1 %v4226_v19 }
0x157f   :  { %4033 = vmatprep.subr.bf16.mxu1 %v4372_v11 }
0x1582   :  { %4034 = vmatpush3.bf16.msra.mxu1 %v4227_v22 }
0x1583   :  { %4035 = vmatprep.subr.bf16.mxu1 %v4372_v11 }
0x15e7   :  { %v2154_v36 = vpop.permute.xlu0 %2153 }
0x15e8   :  { %2156 = vst.msk [vmem:[#allocation3] sm:$0xff] %vm5556_vm4, %v2154_v36 }
0x15e9   :  { %2160 = vst.msk [vmem:[#allocation3] sm:$0xff] %vm5557_vm6, %v2158_v44  ;;  %vm2893_vm6 = vcmp.ge.s32.totalorder %v126_v5, 96 }
0x15eb   :  { %v2280_v42 = vpop.permute.xlu0 %2279 }
0x15ef   :  { %v2443_v12 = vpop.permute.xlu0 %2442 }
0x15f0   :  { %v2161_v23 = vld [vmem:[#allocation3] sm:$0xff] }
0x15f1   :  { %v2173_v21 = vpack.c.bf16 %v2161_v23, %v2161_v23 }
0x15f3   :  { %4026 = vmatmul.mubr.msk.bf16.vlgmr.msra.gmra.mrb[56].mxu0 %vm5558_vm9, %v2173_v21  ;;  %vm2894_vm9 = vcmp.lt.s32.totalorder %v126_v5, 128 }
0x15f4   :  { %4045 = vmatprep.mubr.msk.bf16.mxu0 %vm49_vm2, %v5048_v49  ;;  %v4228_v49 = vld [vmem:[%s5518_s3 + $0x60] sm:$0xff]  }
0x15f5   :  { %4036 = vmatpush3.bf16.msra.mxu1 %v4228_v49 }
0x15f6   :  { %4037 = vmatprep.subr.bf16.mxu1 %v4372_v11 }
0x15f9   :  { %4038 = vmatpush3.bf16.msra.mxu1 %v4229_v24 }
0x15fa   :  { %4049 = vmatprep.subr.bf16.mxu1 %v4372_v11 }
0x16c6   :  { %v2252_v25 = vpop.f32.mrb[56].mxu0 }
0x16c7   :  { %v2253_v27 = vadd.f32 %v3511_v57, %v2252_v25  ;;  %v4027_v4 = vpop.f32.mrb[57].mxu0 }
0x16c8   :  { %v2255_v28 = vpop.f32.mrb[58].mxu0 }
0x16c9   :  { %4311 = vtanh.f32 %v2253_v27  ;;  %v4028_v3 = vpop.f32.mrb[59].mxu0 }
0x16d3   :  { %v4312_v29 = vpop.eup %4311 }
0x16d4   :  { %v2259_v47 = vsel %vm382_vm10, %v4312_v29, 0.0  ;;  %2611 = vst.msk [vmem:[#allocation3] sm:$0xff] %vm382_vm10, %v4312_v29  ;;  %v2375_v30 = vpack.c.bf16 %v4312_v29, %v4312_v29 }
0x16d5   :  { %v2260_v43 = vrot.slane %v2259_v47, 4 }
0x16d6   :  { %4126 = vmatprep.subr.msk.bf16.mxu0 %vm56_vm0, %v2375_v30  ;;  %v2377_v31 = vsel %vm56_vm0, %v2375_v30, 0  ;;  %vm5559_vm0 = vcmask 917248  }
0x16d7   :  { %v2261_v32 = vadd.f32 %v2260_v43, %v2259_v47  ;;  %4044 = vmatpush3.bf16.msra.mxu0 %v2377_v31  ;;  %v4237_v31 = vld [vmem:[%s5518_s3 + $0xa8] sm:$0xff]  }
0x16d8   :  { %4067 = vmatprep.subr.bf16.mxu0 %v4372_v11 }
0x16d9   :  { %v2262_v37 = vrot.slane %v2261_v32, 2 }
0x16da   :  { %4046 = vmatmul.mubr.msk.bf16.vlgmr.msra.gmra.mrb[60].mxu0 %vm49_vm2, %v5059_v52  ;;  %v4230_v52 = vld [vmem:[%s5518_s3 + $0x70] sm:$0xff]   ;;  %vm5560_vm2 = vmmov %vm5559_vm0 }
0x16db   :  { %v2263_v38 = vadd.f32 %v2262_v37, %v2261_v32  ;;  %4069 = vmatprep.mubr.msk.bf16.mxu0 %vm4373_vm3, %v4372_v11  ;;  %v4239_v32 = vld [vmem:[%s5518_s3 + $0xb8] sm:$0xff]   ;;  %v4240_v37 = vld [vmem:[%s5518_s3 + $0xc0] sm:$0xff]  }
0x16dd   :  { %v2264_v40 = vrot.slane %v2263_v38, 1 }
0x16df   :  { %v2265_v41 = vadd.f32 %v2264_v40, %v2263_v38  ;;  %v4241_v38 = vld [vmem:[%s5518_s3 + $0xc8] sm:$0xff]   ;;  %v4242_v40 = vld [vmem:[%s5518_s3 + $0xd0] sm:$0xff]  }
0x16e1   :  { %v2266_v39 = vmul.f32 0.125, %v2265_v41  ;;  %v4243_v41 = vld [vmem:[%s5518_s3 + $0xd8] sm:$0xff]  }
0x16e3   :  { %2267 = vst.msk [vmem:[#allocation4] sm:$0x1] %vm392_vm15, %v2266_v39 }
0x16e4   :  { %2282 = vst.msk [vmem:[#allocation4] sm:$0x1] %vm409_vm14, %v2280_v42 }
0x16e5   :  { %2287 = vst.msk [vmem:[#allocation4] sm:$0x1] %vm415_vm13, %v2285_v46 }
0x16ec   :  { %v2288_v26 = vld [vmem:[#allocation4] sm:$0x1] }
0x16ed   :  { %v2299_v48 = vpack.c.bf16 %v2288_v26, %v2288_v26 }
0x16ef   :  { %4040 = vmatmul.mubr.msk.bf16.vlgmr.msra.gmra.mrb[36].mxu1 %vm460_vm12, %v2299_v48 }
0x16f0   :  { %4063 = vmatprep.mubr.msk.bf16.mxu1 %vm4373_vm3, %v4372_v11  ;;  %4050 = vmatpush3.bf16.msra.mxu1 %v4230_v52 }
0x16f1   :  { %4051 = vmatprep.subr.bf16.mxu1 %v4372_v11 }
0x16f4   :  { %4052 = vmatpush3.bf16.msra.mxu1 %v4231_v51  ;;  %v4244_v51 = vld [vmem:[%s5518_s3 + $0xe0] sm:$0xff]  }
0x16f5   :  { %4053 = vmatprep.subr.bf16.mxu1 %v4372_v11 }
0x16f8   :  { %4054 = vmatpush3.bf16.msra.mxu1 %v4232_v56  ;;  %v4248_v56 = vld [vmem:[%s5518_s3 + $0x100] sm:$0xff]  }
0x16f9   :  { %4055 = vmatprep.subr.bf16.mxu1 %v4372_v11 }
0x16fc   :  { %4056 = vmatpush3.bf16.msra.mxu1 %v4233_v58  ;;  %v4249_v58 = vld [vmem:[%s5518_s3 + $0x158] sm:$0xff]  }
0x16fd   :  { %4057 = vmatprep.subr.bf16.mxu1 %v4372_v11 }
0x1700   :  { %4058 = vmatpush3.bf16.msra.mxu1 %v4234_v55  ;;  %v4250_v55 = vld [vmem:[%s5518_s3 + $0x118] sm:$0xff]  }
0x1701   :  { %4059 = vmatprep.subr.bf16.mxu1 %v4372_v11 }
0x1704   :  { %4060 = vmatpush3.bf16.msra.mxu1 %v4235_v2 }
0x1705   :  { %4061 = vmatprep.subr.bf16.mxu1 %v4372_v11 }
0x1708   :  { %4062 = vmatpush3.bf16.msra.mxu1 %v4236_v8 }
0x1709   :  { %4091 = vmatprep.subr.bf16.mxu1 %v4372_v11 }
0x17ad   :  { %v4047_v50 = vpop.f32.mrb[60].mxu0 }
0x17ae   :  { %2432 = vrot.lane.b32.xlu0 %v4047_v50, %s4378_s21  ;;  %v2413_v1 = vpop.f32.mrb[61].mxu0 }
0x17af   :  { %2428 = vst.msk [vmem:[#allocation2] sm:$0xff] %vm382_vm10, %v2413_v1  ;;  %v4048_v53 = vpop.f32.mrb[62].mxu0  ;;  %v4245_v1 = vld [vmem:[%s5518_s3 + $0xe8] sm:$0xff]  }
0x17b0   :  { %2434 = vrot.lane.b32.xlu1 %v4048_v53, %s4378_s21  ;;  %v2416_v54 = vpop.f32.mrb[63].mxu0  ;;  %v4246_v53 = vld [vmem:[%s5518_s3 + $0xf0] sm:$0xff]  }
0x17b1   :  { %2429 = vst.msk [vmem:[#allocation2 + $0x8] sm:$0xff] %vm382_vm10, %v2416_v54  ;;  %v4247_v54 = vld [vmem:[%s5518_s3 + $0xf8] sm:$0xff]  }
0x17b4   :  { %2444 = vrot.lane.b32.xlu1 %v4992_v20, %s4376_s19  ;;  %v2300_v20 = vld [vmem:[%s5519_s4 + $0x2] sm:$0x1] }
0x17b8   :  { %2613 = vrot.lane.b32.xlu1 %v5090_v10, %s4378_s21 }
0x17c2   :  { %v2368_v60 = vpop.f32.mrb[36].mxu1 }
0x17c3   :  { %v2369_v61 = vadd.f32 %v2368_v60, %v2300_v20  ;;  %v4041_v62 = vpop.f32.mrb[37].mxu1  ;;  %v4251_v20 = vld [vmem:[%s5518_s3 + $0x160] sm:$0xff]  }
0x17c4   :  { %v2371_v63 = vpop.f32.mrb[38].mxu1  ;;  %v4252_v60 = vld [vmem:[%s5518_s3 + $0x120] sm:$0xff]  }
0x17c5   :  { %4313 = vtanh.f32 %v2369_v61  ;;  %v4042_v10 = vpop.f32.mrb[39].mxu1  ;;  %v4253_v61 = vld [vmem:[%s5518_s3 + $0x168] sm:$0xff]   ;;  %v3537_v62 = vld [vmem:[%s5519_s4 + $0x4] ss:$0 sm:$0xff] }
0x17cf   :  { %v5263_v9 = vpop.eup %4313 }
0x17d0   :  { %v2453_v45 = vrot.slane %v5263_v9, %v4454_v7 }
0x17d2   :  { %2455 = vrot.lane.b32.xlu0 %v2453_v45, %s4379_s15 }
0x1820   :  { %v2433_v34 = vpop.permute.xlu0 %2432 }
0x1821   :  { %2438 = vst.msk [vmem:[#allocation2] sm:$0xff] %vm568_vm11, %v2433_v34  ;;  %v4254_v34 = vld [vmem:[%s5518_s3 + $0x128] sm:$0xff]  }
0x1822   :  { %2448 = vst.msk [vmem:[#allocation2] sm:$0xff] %vm571_vm7, %v2443_v12  ;;  %v2435_v14 = vpop.permute.xlu1 %2434 }
0x1823   :  { %2439 = vst.msk [vmem:[#allocation2 + $0x8] sm:$0xff] %vm568_vm11, %v2435_v14 }
0x1826   :  { %v2445_v13 = vpop.permute.xlu1 %2444 }
0x1827   :  { %2449 = vst.msk [vmem:[#allocation2 + $0x8] sm:$0xff] %vm571_vm7, %v2445_v13  ;;  %v4255_v13 = vld [vmem:[%s5518_s3 + $0x170] sm:$0xff]  }
0x182a   :  { %v2614_v15 = vpop.permute.xlu1 %2613 }
0x182b   :  { %2616 = vst.msk [vmem:[#allocation3] sm:$0xff] %vm568_vm11, %v2614_v15  ;;  %vm5563_vm11 = vmmov %vm5561_vm5  ;;  %v4256_v15 = vld [vmem:[%s5518_s3 + $0x130] sm:$0xff]  }
0x1844   :  { %v5273_v16 = vpop.permute.xlu0 %2455 }
0x1845   :  { %2458 = vst.msk [vmem:[#allocation2] sm:$0xff] %vm5559_vm0, %v5273_v16 }
0x1846   :  { %2459 = vst.msk [vmem:[#allocation2 + $0x8] sm:$0xff] %vm5560_vm2, %v5273_v16  ;;  %vm3354_vm2 = vcmask 122880  }
0x184c   :  { %v2460_v17 = vld [vmem:[#allocation2] sm:$0xff] }
0x184d   :  { %v2461_v0 = vld [vmem:[#allocation2 + $0x8] sm:$0xff] }
0x184e   :  { %v2476_v18 = vpack.c.bf16 %v2461_v0, %v2460_v17  ;;  %v4257_v0 = vld [vmem:[%s5518_s3 + $0x178] sm:$0xff]  }
0x1850   :  { %4064 = vmatmul.mubr.msk.bf16.vlgmr.msra.gmra.mrb[40].mxu1 %vm5561_vm5, %v2476_v18 }
0x1851   :  { %4101 = vmatprep.mubr.msk.bf16.mxu1 %vm4373_vm3, %v4372_v11  ;;  %4092 = vmatpush3.bf16.msra.mxu1 %v4244_v51  ;;  %v2936_v51 = vld [vmem:[%s5519_s4 + $0x7] sm:$0x1] }
0x1852   :  { %4093 = vmatprep.subr.bf16.mxu1 %v4372_v11 }
0x1855   :  { %4094 = vmatpush3.bf16.msra.mxu1 %v4245_v1  ;;  %v2941_v1 = vpack.c.bf16 %v2936_v51, %v2936_v51 }
0x1856   :  { %4095 = vmatprep.subr.bf16.mxu1 %v4372_v11 }
0x1859   :  { %4096 = vmatpush3.bf16.msra.mxu1 %v4246_v53 }
0x185a   :  { %4097 = vmatprep.subr.bf16.mxu1 %v4372_v11 }
0x185d   :  { %4098 = vmatpush3.bf16.msra.mxu1 %v4247_v54 }
0x185e   :  { %4099 = vmatprep.subr.bf16.mxu1 %v4372_v11 }
0x1861   :  { %4100 = vmatpush3.bf16.msra.mxu1 %v4248_v56 }
0x1862   :  { %4105 = vmatprep.subr.bf16.mxu1 %v4372_v11 }
0x1923   :  { %v2561_v36 = vpop.f32.mrb[40].mxu1 }
0x1924   :  { %v2562_v44 = vadd.f32 %v3527_v35, %v2561_v36  ;;  %v4065_v23 = vpop.f32.mrb[41].mxu1 }
0x1925   :  { %v2564_v21 = vpop.f32.mrb[42].mxu1 }
0x1926   :  { %4315 = vtanh.f32 %v2562_v44  ;;  %v2565_v33 = vadd.f32 %v3527_v35, %v2564_v21  ;;  %v4066_v19 = vpop.f32.mrb[43].mxu1  ;;  %v4258_v35 = vld [vmem:[%s5518_s3 + $0x138] sm:$0xff]  }
0x1928   :  { %4317 = vtanh.f32 %v2565_v33 }
0x1930   :  { %v4316_v22 = vpop.eup %4315 }
0x1931   :  { %v2739_v57 = vsel %vm382_vm10, %v4316_v22, 0.0 }
0x1932   :  { %v4318_v49 = vpop.eup %4317 }
0x1933   :  { %v2570_v24 = vpack.c.bf16 %v4318_v49, %v4316_v22  ;;  %v2740_v25 = vsel %vm382_vm10, %v4318_v49, 0.0  ;;  %v4259_v22 = vld [vmem:[%s5518_s3 + $0x180] sm:$0xff]  }
0x1934   :  { %v2741_v27 = vadd.f32 %v2740_v25, %v2739_v57  ;;  %v4261_v57 = vld [vmem:[%s5518_s3 + $0x188] sm:$0xff]  }
0x1935   :  { %4068 = vmatpush3.bf16.msra.mxu0 %v2570_v24  ;;  %v4260_v24 = vld [vmem:[%s5518_s3 + $0x140] sm:$0xff]  }
0x1936   :  { %v2742_v4 = vrot.slane %v2741_v27, 4  ;;  %4073 = vmatprep.subr.bf16.mxu0 %v4372_v11 }
0x1938   :  { %4070 = vmatmul.mubr.msk.bf16.vlgmr.msra.gmra.mrb[64].mxu0 %vm224_vm8, %v5146_v59  ;;  %v2743_v28 = vadd.f32 %v2742_v4, %v2741_v27  ;;  %v4238_v59 = vld [vmem:[%s5518_s3 + $0xb0] sm:$0xff]   ;;  %vm5562_vm8 = vmmov %vm5559_vm0 }
0x1939   :  { %4087 = vmatprep.mubr.msk.bf16.mxu0 %vm4373_vm3, %v4372_v11  ;;  %4074 = vmatpush3.bf16.msra.mxu0 %v4237_v31  ;;  %vm2895_vm0 = vmand %vm2893_vm6, %vm2894_vm9 }
0x193a   :  { %v2744_v3 = vrot.slane %v2743_v28, 2  ;;  %4075 = vmatprep.subr.bf16.mxu0 %v4372_v11 }
0x193c   :  { %v2745_v29 = vadd.f32 %v2744_v3, %v2743_v28 }
0x193d   :  { %4076 = vmatpush3.bf16.msra.mxu0 %v4238_v59 }
0x193e   :  { %v2746_v47 = vrot.slane %v2745_v29, 1  ;;  %4077 = vmatprep.subr.bf16.mxu0 %v4372_v11 }
0x1940   :  { %v2747_v30 = vadd.f32 %v2746_v47, %v2745_v29  ;;  %v4262_v29 = vld [vmem:[%s5518_s3 + $0x148] sm:$0xff]  }
0x1941   :  { %4078 = vmatpush3.bf16.msra.mxu0 %v4239_v32  ;;  %v4265_v32 = vld [vmem:[%s5518_s3 + $0x150] sm:$0xff]  }
0x1942   :  { %v2748_v43 = vmul.f32 0.0625, %v2747_v30  ;;  %4079 = vmatprep.subr.bf16.mxu0 %v4372_v11  ;;  %v4263_v30 = vld [vmem:[%s5518_s3 + $0x190] sm:$0xff]  }
0x1944   :  { %2750 = vrot.lane.b32.xlu1 %v2748_v43, %s4378_s21 }
0x1945   :  { %4080 = vmatpush3.bf16.msra.mxu0 %v4240_v37 }
0x1946   :  { %4081 = vmatprep.subr.bf16.mxu0 %v4372_v11 }
0x1949   :  { %4082 = vmatpush3.bf16.msra.mxu0 %v4241_v38 }
0x194a   :  { %4083 = vmatprep.subr.bf16.mxu0 %v4372_v11 }
0x194d   :  { %4084 = vmatpush3.bf16.msra.mxu0 %v4242_v40 }
0x194e   :  { %4085 = vmatprep.subr.bf16.mxu0 %v4372_v11 }
0x1951   :  { %4086 = vmatpush3.bf16.msra.mxu0 %v4243_v41 }
0x1952   :  { %3729 = vmatprep.subr.bf16.mxu0 %v4249_v58 }
0x1a0b   :  { %v2605_v39 = vpop.f32.mrb[64].mxu0 }
0x1a0c   :  { %2618 = vrot.lane.b32.xlu0 %v2605_v39, %s4376_s19  ;;  %v4071_v42 = vpop.f32.mrb[65].mxu0 }
0x1a0d   :  { %v2608_v46 = vpop.f32.mrb[66].mxu0  ;;  %v2751_v42 = vpop.permute.xlu1 %2750 }
0x1a0e   :  { %v4072_v26 = vpop.f32.mrb[67].mxu0 }
0x1a10   :  { %2755 = vrot.lane.b32.xlu0 %v5263_v9, %s4376_s19  ;;  %v4381_v9 = vmov 1966171168  }
0x1a11   :  { %v2853_v45 = vunpack.c.l.s4 %v4381_v9  ;;  %v4267_v9 = vld [vmem:[%s5520_s5] ss:$12 sps:$4 sm:$0xff]  }
0x1a13   :  { %v2854_v14 = vunpack.c.0.s8 %v2853_v45  ;;  %v4272_v45 = vld [vmem:[%s5520_s5 + $0x1c] ss:$12 sps:$4 sm:$0xff]  }
0x1a7e   :  { %v2619_v48 = vpop.permute.xlu0 %2618 }
0x1a7f   :  { %2621 = vst.msk [vmem:[#allocation3] sm:$0xff] %vm571_vm7, %v2619_v48  ;;  %vm5378_vm7 = vcmp.lt.s32.totalorder %v126_v5, 32  ;;  %v4264_v48 = vld [vmem:[%s5518_s3 + $0x108] sm:$0xff]  }
0x1a80   :  { %2622 = vst.msk [vmem:[#allocation3] sm:$0xff] %vm5562_vm8, %v5273_v16  ;;  %v5375_v16 = vsub.s32 %v2854_v14, %v4451_v6 }
0x1a82   :  { %v2756_v46 = vpop.permute.xlu0 %2755 }
0x1a87   :  { %v2623_v52 = vld [vmem:[#allocation3] sm:$0xff] }
0x1a88   :  { %v2638_v50 = vpack.c.bf16 %v2623_v52, %v2623_v52 }
0x1a8a   :  { %4088 = vmatmul.mubr.msk.bf16.vlgmr.msra.gmra.mrb[68].mxu0 %vm5563_vm11, %v2638_v50  ;;  %v4266_v50 = vld [vmem:[%s5518_s3 + $0x110] sm:$0xff]  }
0x1a8b   :  { %3730 = vmatpush3.bf16.msra.mxu0 %v4250_v55 }
0x1a8c   :  { %3731 = vmatprep.subr.bf16.mxu0 %v4251_v20 }
0x1a8f   :  { %3732 = vmatpush3.bf16.msra.mxu0 %v4252_v60  ;;  %v2982_v60 = vsub.s32 1, %v4451_v6 }
0x1a90   :  { %3733 = vmatprep.subr.bf16.mxu0 %v4253_v61 }
0x1a93   :  { %3734 = vmatpush3.bf16.msra.mxu0 %v4254_v34  ;;  %v2771_v34 = vld [vmem:[%s5519_s4 + $0x5] sm:$0x1] }
0x1a94   :  { %3735 = vmatprep.subr.bf16.mxu0 %v4255_v13  ;;  %v4382_v13 = vmov 0  }
0x1a97   :  { %3736 = vmatpush3.bf16.msra.mxu0 %v4256_v15 }
0x1a98   :  { %3737 = vmatprep.subr.bf16.mxu0 %v4257_v0 }
0x1a9b   :  { %3738 = vmatpush3.bf16.msra.mxu0 %v4258_v35 }
0x1a9c   :  { %3739 = vmatprep.subr.bf16.mxu0 %v4259_v22 }
0x1a9f   :  { %3740 = vmatpush3.bf16.msra.mxu0 %v4260_v24 }
0x1aa0   :  { %3741 = vmatprep.subr.bf16.mxu0 %v4261_v57  ;;  %v3179_v57 = vld [vmem:[%s5519_s4 + $0x6] sm:$0x1]  ;;  %s4383_s4 = smov [#allocation8]  }
0x1aa1   :  { %s3372_s18 = sshll.u32 %s4383_s4, 4  ;;  %s3373_s18 = int_to_ptr.vmem [resolvable:$true] %s3372_s18 }
0x1aa2   :  { %s4323_s16 = scalar_lea.vmem %s3373_s18, 16  ;;  %s4327_s17 = scalar_lea.vmem %s3373_s18, 32 }
0x1aa3   :  { %3742 = vmatpush3.bf16.msra.mxu0 %v4262_v29  ;;  %v4274_v29 = vld [vmem:[%s5520_s5 + $0x20] ss:$12 sps:$4 sm:$0xff]   ;;  %p4324_p0 = scmp.ne.s32.totalorder %s3373_s18, %s4323_s16  ;;  %p4328_p1 = scmp.lt.s32.totalorder %s3373_s18, %s3373_s18 }
0x1aa4   :  { %3743 = vmatprep.subr.bf16.mxu0 %v4263_v30  ;;  %p4329_p2 = scmp.lt.s32.totalorder %s4327_s17, %s4323_s16 }
0x1aa6   :  { %p4330_p3 = por %p4329_p2, %p4328_p1 }
0x1aa7   :  { %3744 = vmatpush3.bf16.msra.mxu0 %v4265_v32 }
0x1aa8   :  { %p4331_p4 = pnand %p4330_p3, %p4324_p0 }
0x1b5d   :  { %v2723_v63 = vpop.f32.mrb[68].mxu0 }
0x1b5e   :  { %v2724_v10 = vadd.f32 %v3537_v62, %v2723_v63  ;;  %v4089_v2 = vpop.f32.mrb[69].mxu0 }
0x1b5f   :  { %v2726_v8 = vpop.f32.mrb[70].mxu0 }
0x1b60   :  { %4319 = vtanh.f32 %v2724_v10  ;;  %v4090_v12 = vpop.f32.mrb[71].mxu0  ;;  %v4269_v8 = vld [vmem:[%s5520_s5 + $0x4] ss:$12 sps:$4 sm:$0xff]  }
0x1b61   :  { %v4270_v12 = vld [vmem:[%s5520_s5 + $0x18] ss:$12 sps:$4 sm:$0xff]  }
0x1b6a   :  { %v4320_v18 = vpop.eup %4319 }
0x1b6b   :  { %v2730_v36 = vsel %vm382_vm10, %v4320_v18, 0.0  ;;  %v2858_v44 = vrot.slane %v4320_v18, %v5375_v16  ;;  %v2897_v23 = vcombine.high %v4320_v18, %v4320_v18  ;;  %2850 = vst.msk [vmem:[#allocation5] sm:$0x1] %vm5378_vm7, %v4320_v18 }
0x1b6c   :  { %v2731_v21 = vrot.slane %v2730_v36, 4 }
0x1b6d   :  { %v2859_v33 = vcombine.high %v2858_v44, %v2858_v44  ;;  %v2904_v19 = vrot.slane %v2897_v23, %v5375_v16  ;;  %v2866_v4 = vrot.slane %v2858_v44, %v5375_v16 }
0x1b6e   :  { %v2732_v49 = vadd.f32 %v2731_v21, %v2730_v36 }
0x1b6f   :  { %v2873_v25 = vrot.slane %v2859_v33, %v5375_v16  ;;  %v2914_v27 = vcombine.high %v2904_v19, %v2904_v19  ;;  %v2911_v28 = vrot.slane %v2904_v19, %v5375_v16  ;;  %v2881_v31 = vcombine.high %v2866_v4, %v2866_v4 }
0x1b70   :  { %v2733_v3 = vrot.slane %v2732_v49, 2 }
0x1b71   :  { %2874 = vrot.lane.b32.xlu1 %v2873_v25, %s4378_s21  ;;  %v2921_v47 = vrot.slane %v2914_v27, %v5375_v16  ;;  %2913 = vst.msk [vmem:[#allocation5 + $0x1] sm:$0x1] %vm5378_vm7, %v2911_v28  ;;  %v2926_v37 = vcombine.high %v2911_v28, %v2911_v28  ;;  %v2889_v40 = vcombine.high %v2873_v25, %v2873_v25  ;;  %v4273_v28 = vld [vmem:[%s5520_s5 + $0x8] ss:$12 sps:$4 sm:$0xff]  }
0x1b72   :  { %v2734_v43 = vadd.f32 %v2733_v3, %v2732_v49 }
0x1b73   :  { %2922 = vrot.lane.b32.xlu0 %v2921_v47, %s4378_s21  ;;  %v2931_v39 = vcombine.high %v2921_v47, %v2921_v47 }
0x1b74   :  { %v2735_v59 = vrot.slane %v2734_v43, 1 }
0x1b75   :  { %2882 = vrot.lane.b32.xlu1 %v2881_v31, %s4376_s19 }
0x1b76   :  { %v2736_v38 = vadd.f32 %v2735_v59, %v2734_v43 }
0x1b77   :  { %2927 = vrot.lane.b32.xlu0 %v2926_v37, %s4376_s19 }
0x1b78   :  { %v2737_v41 = vmul.f32 0.125, %v2736_v38 }
0x1b79   :  { %2890 = vrot.lane.b32.xlu1 %v2889_v40, %s4379_s15 }
0x1b7a   :  { %2738 = vst.msk [vmem:[#allocation4] sm:$0x1] %vm392_vm15, %v2737_v41  ;;  %vm2885_vm15 = vcmp.ge.s32.totalorder %v126_v5, 64 }
0x1b7b   :  { %2753 = vst.msk [vmem:[#allocation4] sm:$0x1] %vm409_vm14, %v2751_v42  ;;  %2932 = vrot.lane.b32.xlu0 %v2931_v39, %s4379_s15  ;;  %vm2887_vm4 = vmand %vm2885_vm15, %vm2886_vm1 }
0x1b7c   :  { %2758 = vst.msk [vmem:[#allocation4] sm:$0x1] %vm415_vm13, %v2756_v46  ;;  %vm2878_vm13 = vcmp.lt.s32.totalorder %v126_v5, 64 }
0x1b83   :  { %v2759_v26 = vld [vmem:[#allocation4] sm:$0x1] }
0x1b84   :  { %v2770_v52 = vpack.c.bf16 %v2759_v26, %v2759_v26 }
0x1b86   :  { %4102 = vmatmul.mubr.msk.bf16.vlgmr.msra.gmra.mrb[44].mxu1 %vm460_vm12, %v2770_v52  ;;  %vm2877_vm12 = vcmp.ge.s32.totalorder %v126_v5, 32 }
0x1b87   :  { %4106 = vmatpush3.bf16.msra.mxu1 %v4264_v48  ;;  %4109 = vmatprep.mubr.msk.bf16.mxu1 %vm4373_vm3, %v4372_v11  ;;  %vm2879_vm14 = vmand %vm2877_vm12, %vm2878_vm13 }
0x1b88   :  { %4107 = vmatprep.subr.bf16.mxu1 %v4372_v11 }
0x1b8b   :  { %4108 = vmatpush3.bf16.msra.mxu1 %v4266_v50 }
0x1b8c   :  { %3243 = vmatprep.subr.bf16.mxu1 %v4269_v8 }
0x1b8e   :  { %4110 = vmatmul.mubr.msk.bf16.vlgmr.msra.gmra.mrb[48].mxu1 %vm382_vm10, %v2941_v1 }
0x1b8f   :  { %3244 = vmatpush1.bf16.msra.mxu1 %v4267_v9  ;;  %3275 = vmatprep.mubr.bf16.mxu1 %v4382_v13 }
0x1b90   :  { %3245 = vmatprep.subr.bf16.mxu1 %v4272_v45 }
0x1b93   :  { %3246 = vmatpush1.bf16.msra.mxu1 %v4270_v12 }
0x1b94   :  { %4113 = vmatprep.subr.bf16.mxu1 %v4372_v11 }
0x1be3   :  { %v2875_v53 = vpop.permute.xlu1 %2874 }
0x1be4   :  { %2880 = vst.msk [vmem:[#allocation5] sm:$0x1] %vm2879_vm14, %v2875_v53 }
0x1be5   :  { %v2923_v54 = vpop.permute.xlu0 %2922 }
0x1be6   :  { %2925 = vst.msk [vmem:[#allocation5 + $0x1] sm:$0x1] %vm2879_vm14, %v2923_v54 }
0x1be7   :  { %v2883_v56 = vpop.permute.xlu1 %2882 }
0x1be8   :  { %2888 = vst.msk [vmem:[#allocation5] sm:$0x1] %vm2887_vm4, %v2883_v56 }
0x1be9   :  { %v2928_v58 = vpop.permute.xlu0 %2927 }
0x1bea   :  { %2930 = vst.msk [vmem:[#allocation5 + $0x1] sm:$0x1] %vm2887_vm4, %v2928_v58 }
0x1beb   :  { %v2891_v55 = vpop.permute.xlu1 %2890 }
0x1bec   :  { %2896 = vst.msk [vmem:[#allocation5] sm:$0x1] %vm2895_vm0, %v2891_v55 }
0x1bed   :  { %v2933_v20 = vpop.permute.xlu0 %2932 }
0x1bee   :  { %2935 = vst.msk [vmem:[#allocation5 + $0x1] sm:$0x1] %vm2895_vm0, %v2933_v20 }
0x1bf5   :  { %v2942_v61 = vld [vmem:[#allocation5] sm:$0x3] }
0x1bf6   :  { %v2979_v62 = vrot.slane %v2942_v61, %v4454_v7  ;;  %v2983_v63 = vrot.slane %v2942_v61, %v2982_v60 }
0x1bf8   :  { %v2986_v10 = vpack.c.bf16 %v2979_v62, %v2979_v62  ;;  %v2987_v2 = vpack.c.bf16 %v2983_v63, %v2983_v63 }
0x1bfa   :  { %3116 = vmatprep.mubr.bf16.mxu0 %v2987_v2 }
0x1bfb   :  { %3117 = vmatmul.mubr.bf16.vlgmr.msra.gmra.mrb[72].mxu0 %v2986_v10 }
0x1c59   :  { %v2839_v14 = vpop.f32.mrb[44].mxu1 }
0x1c5a   :  { %v2840_v15 = vadd.f32 %v2839_v14, %v2771_v34  ;;  %v4103_v17 = vpop.f32.mrb[45].mxu1 }
0x1c5b   :  { %v2842_v0 = vpop.f32.mrb[46].mxu1 }
0x1c5c   :  { %4321 = vtanh.f32 %v2840_v15  ;;  %v4104_v18 = vpop.f32.mrb[47].mxu1 }
0x1c61   :  { %v3173_v35 = vpop.f32.mrb[48].mxu1 }
0x1c62   :  { %v4111_v36 = vpop.f32.mrb[49].mxu1 }
0x1c63   :  { %v3176_v44 = vpop.f32.mrb[50].mxu1 }
0x1c64   :  { %v4112_v23 = vpop.f32.mrb[51].mxu1 }
0x1c66   :  { %v4322_v21 = vpop.eup %4321 }
0x1c67   :  { %3355 = vst.msk [vmem:[#allocation8] sm:$0x1] %vm3354_vm2, %v4322_v21 }
0x1cce   :  { %v3745_v33 = vpop.f32.mrb[72].mxu0 }
0x1ccf   :  { %v3746_v19 = vpop.f32.mrb[73].mxu0 }
0x1cd0   :  { %v3747_v22 = vadd.f32 %v3746_v19, %v3745_v33  ;;  %v3748_v49 = vpop.f32.mrb[74].mxu0 }
0x1cd1   :  { %v3749_v24 = vpop.f32.mrb[75].mxu0 }
0x1cd2   :  { %v3174_v25 = vadd.f32 %v3747_v22, %v3173_v35 }
0x1cd4   :  { %v3180_v27 = vadd.f32 %v3179_v57, %v3174_v25 }
0x1cd6   :  { %v3181_v4 = vmax.f32 %v3180_v27, 0.0 }
0x1cd8   :  { %v3190_v3 = vpack.c.bf16 %v3181_v4, %v3181_v4 }
0x1cda   :  { %3577 = vmatmul.mubr.msk.bf16.vlgmr.msra.gmra.mrb[52].mxu1 %vm382_vm10, %v3190_v3 }
0x1cdb   :  { %4114 = vmatpush3.bf16.msra.mxu1 %v4273_v28  ;;  %4117 = vmatprep.mubr.msk.bf16.mxu1 %vm4373_vm3, %v4372_v11 }
0x1cdc   :  { %4115 = vmatprep.subr.bf16.mxu1 %v4372_v11 }
0x1cdf   :  { %4116 = vmatpush3.bf16.msra.mxu1 %v4274_v29 }
0x1ce2   :  { %4118 = vmatmul.mubr.msk.bf16.vlgmr.msra.gmra.mrb[56].mxu1 %vm382_vm10, %v3190_v3 }
0x1ce3   :  { %4334 = shalt.err (!%p4331_p4)
}
0x1ce4   :  { %s4335_s21 = scalar_lea.hbm %s5523_s8, 16 }
0x1ce5   :  { %p4336_p5 = scmp.ne.s32.totalorder %s5523_s8, %s4335_s21  ;;  %p4339_p6 = scmp.lt.u32.totalorder %s4335_s21, %s5523_s8 }
0x1ce7   :  { %p4341_p7 = pnand %p4339_p6, %p4336_p5 }
0x1ce9   :  { %4344 = shalt.err (!%p4341_p7)
}
0x1cea   :  { %3375 = dma.vmem_to_hbm [thread:$0]  %s3373_s18, 16, %s5523_s8, [#allocation9]   ;;  %v3191_v11 = vld [vmem:[%s5521_s6] sm:$0x7]  ;;  %v3235_v32 = vsub.s32 2, %v4451_v6  ;;  %vm3351_vm3 = vcmp.lt.s32.totalorder %v126_v5, 288 }
0x1ceb   :  { %v3228_v47 = vrot.slane %v3191_v11, %v4454_v7  ;;  %v3232_v30 = vrot.slane %v3191_v11, %v2982_v60  ;;  %s4384_s6 = smov [#allocation6]  }
0x1cec   :  { %v3236_v39 = vrot.slane %v3191_v11, %v3235_v32  ;;  %s3362_s8 = sshll.u32 %s4384_s6, 4  ;;  %s3363_s8 = int_to_ptr.vmem [resolvable:$true] %s3362_s8 }
0x1ced   :  { %s4345_s28 = scalar_lea.vmem %s3363_s8, 48  ;;  %s4349_s29 = scalar_lea.vmem %s3363_s8, 64 }
0x1cee   :  { %p4346_p8 = scmp.ne.s32.totalorder %s3363_s8, %s4345_s28  ;;  %p4350_p9 = scmp.lt.s32.totalorder %s3363_s8, %s3363_s8 }
0x1cef   :  { %p4351_p10 = scmp.lt.s32.totalorder %s4349_s29, %s4345_s28 }
0x1cf1   :  { %p4352_p11 = por %p4351_p10, %p4350_p9 }
0x1cf3   :  { %p4353_p12 = pnand %p4352_p11, %p4346_p8 }
0x1dad   :  { %v3277_v43 = vpop.f32.mrb[52].mxu1 }
0x1dae   :  { %v3278_v31 = vadd.f32 %v3277_v43, %v3228_v47  ;;  %v3279_v59 = vpop.f32.mrb[53].mxu1 }
0x1daf   :  { %v3280_v37 = vadd.f32 %v3279_v59, %v3232_v30  ;;  %v3281_v38 = vpop.f32.mrb[54].mxu1 }
0x1db0   :  { %v3282_v40 = vpop.f32.mrb[55].mxu1 }
0x1db1   :  { %v3327_v41 = vcombine.low %v3278_v31, %v3280_v37 }
0x1db3   :  { %v3334_v52 = vrot.slane %v3327_v41, %v5375_v16 }
0x1db5   :  { %v3318_v42 = vpop.f32.mrb[56].mxu1 }
0x1db6   :  { %v3319_v46 = vadd.f32 %v3318_v42, %v3236_v39  ;;  %v4119_v26 = vpop.f32.mrb[57].mxu1 }
0x1db7   :  { %v3321_v48 = vpop.f32.mrb[58].mxu1 }
0x1db8   :  { %v3341_v7 = vrot.slane %v3319_v46, %v5375_v16  ;;  %v4120_v50 = vpop.f32.mrb[59].mxu1 }
0x1dba   :  { %v3342_v51 = vcombine.low %v3334_v52, %v3341_v7 }
0x1dbc   :  { %v3349_v6 = vrot.slane %v3342_v51, %v5375_v16 }
0x1dbe   :  { %3353 = vst.msk [vmem:[#allocation6] sm:$0x7] %vm3351_vm3, %v3349_v6 }
0x1dbf   :  { %4356 = shalt.err (!%p4353_p12)
}
0x1dc0   :  { %s4357_s27 = scalar_lea.hbm %s5522_s7, 48 }
0x1dc1   :  { %p4358_p13 = scmp.ne.s32.totalorder %s5522_s7, %s4357_s27  ;;  %p4361_p0 = scmp.lt.u32.totalorder %s4357_s27, %s5522_s7 }
0x1dc3   :  { %p4363_p1 = pnand %p4361_p0, %p4358_p13 }
0x1dc5   :  { %4366 = shalt.err (!%p4363_p1)
}
0x1dc6   :  { %3365 = dma.vmem_to_hbm [thread:$0]  %s3363_s8, 48, %s5522_s7, [#allocation7]  }
0x1dc7   :  { %4367 = dma.done.wait [#allocation7], 48  }
0x1dc8   :  { %4368 = vsyncadd [#allocation7], 4294967248 }
0x1dc9   :  { %4369 = dma.done.wait [#allocation9], 16  }
0x1dca   :  { %4370 = vsyncadd [#allocation9], 4294967280 }
0x1dcb   :  { %3382 = vsyncpa [#allocation7], 1 }
0x1dcc   :  { %3383 = vsyncpa [#allocation9], 1 }

</bundles_post_ra>
